<compile_context>
chip_gen: v7x
topology: tpu7x:2x2x1
jax: 0.10.0
libtpu: 0.0.40
codegen_flags: <defaults>
</compile_context>

<pallas_src>
import math

import jax
import jax.numpy as jnp
from jax import lax
from jax.experimental import pallas as pl
from jax.experimental.pallas import tpu as pltpu

# ----------------------------- model config --------------------------------
INPUT_SIZE = 8     # number of sensors (features)
TIME_STEP = 16     # sequence length
DEC_SEQ_LEN = 4
DIM_VAL = 32
DIM_ATTN = 32
N_HEADS = 2
N_ENCODER_LAYERS = 2
N_DECODER_LAYERS = 1
BATCH = 2
LN_EPS = 1e-5

# ----------------------------- slab layout ----------------------------------
N_ATTN_BLOCKS = 2 * N_ENCODER_LAYERS + 2 * N_DECODER_LAYERS      # 6
NQ = N_HEADS * DIM_ATTN                                           # 64
ATTN_COLS = 2 * NQ + N_HEADS * DIM_VAL                            # 192 = [Q|K|Vf]

# 32-column slab (WSLAB) row offsets — weight blocks first (8-aligned), then
# one row per bias / LayerNorm vector.
W_SENSOR = 0                                     # (TIME_STEP, 32)
W_TIME = W_SENSOR + TIME_STEP                    # 16  (INPUT_SIZE, 32)
W_DEC = W_TIME + INPUT_SIZE                      # 24  (INPUT_SIZE, 32)
W_PE = W_DEC + INPUT_SIZE                        # 32  (TIME_STEP, 32)
W_ENC_FC = W_PE + TIME_STEP                      # 48  per enc layer: fc2(32), fc1(32)
W_DEC_FC = W_ENC_FC + 2 * DIM_VAL * (2 * N_ENCODER_LAYERS)        # 304
V_BASE = W_DEC_FC + 2 * DIM_VAL * N_DECODER_LAYERS                # 368
V_SENSOR_B = V_BASE + 0
V_TIME_B = V_BASE + 1
V_DEC_B = V_BASE + 2
V_CAT_G = V_BASE + 3
V_CAT_B = V_BASE + 4
V_ENC = V_BASE + 5          # per enc layer (6 rows): fc2_b, fc1_b, n1g, n1b, n2g, n2b
V_DEC = V_ENC + 6 * (2 * N_ENCODER_LAYERS)                         # 397 (8 rows)
_WSLAB_USED = V_DEC + 8 * N_DECODER_LAYERS                         # 405
WSLAB_ROWS = ((_WSLAB_USED + 7) // 8) * 8                          # 408


# ------------------------------ fused kernel --------------------------------
def _dast_kernel(xs_ref, xt_ref, aw_ref, ws_ref, o_ref):
    """Entire DAST forward for one batch element (grid axis = batch).

    xs_ref: (1, INPUT_SIZE, TIME_STEP)  sensor-branch view (x transposed)
    xt_ref: (1, TIME_STEP, INPUT_SIZE)  raw input
    aw_ref: (N_ATTN_BLOCKS*32, 192)     packed attention weights [Qs|K|Vfused]
    ws_ref: (WSLAB_ROWS, 32)            all other weights + biases + LN params + PE
    """
    f32 = jnp.float32

    # --- static-slice unpackers (zero runtime cost: static offsets) ----------
    def wblk(off, rows):
        return ws_ref[off:off + rows, :]

    def wrow(i):                       # (1, 32) bias / gamma / beta row
        return ws_ref[i:i + 1, :]

    # --- building blocks ------------------------------------------------------
    def ln(z, gi, bi):
        mu = jnp.mean(z, axis=-1, keepdims=True)
        var = jnp.mean(jnp.square(z - mu), axis=-1, keepdims=True)
        return (z - mu) * lax.rsqrt(var + LN_EPS) * wrow(gi) + wrow(bi)

    def softmax_rows(s):
        m = jnp.max(s, axis=-1, keepdims=True)
        p = jnp.exp(s - m)
        return p / jnp.sum(p, axis=-1, keepdims=True)   # exact (review: approx not needed)

    def attn_core(q, k, vf):
        # q:(Sq,NQ) k:(Sk,NQ) vf:(Sk,H*D).  Softmax scale is folded into the Q
        # weights and the output projection into vf, so the per-head result is
        # simply softmax(q_h k_h^T) @ vf_h, summed over heads.
        out = None
        for h in range(N_HEADS):
            qh = q[:, h * DIM_ATTN:(h + 1) * DIM_ATTN]
            kh = k[:, h * DIM_ATTN:(h + 1) * DIM_ATTN]
            s = lax.dot_general(qh, kh, (((1,), (1,)), ((), ())),
                                preferred_element_type=f32)
            p = softmax_rows(s)
            c = jnp.dot(p, vf[:, h * DIM_VAL:(h + 1) * DIM_VAL],
                        preferred_element_type=f32)
            out = c if out is None else out + c
        return out

    def self_attn(x2, blk):
        w = aw_ref[blk * DIM_VAL:(blk + 1) * DIM_VAL, :]           # (32, 192)
        qkv = jnp.dot(x2, w, preferred_element_type=f32)           # (S, 192)
        return attn_core(qkv[:, :NQ], qkv[:, NQ:2 * NQ], qkv[:, 2 * NQ:])

    def cross_attn(x2, enc2, blk):
        w = aw_ref[blk * DIM_VAL:(blk + 1) * DIM_VAL, :]           # (32, 192)
        q = jnp.dot(x2, w[:, :NQ], preferred_element_type=f32)
        kv = jnp.dot(enc2, w[:, NQ:], preferred_element_type=f32)  # (Sk, 128)
        return attn_core(q, kv[:, :NQ], kv[:, NQ:])

    def elu(h):
        return jnp.where(h > 0, h, jnp.exp(jnp.minimum(h, 0.0)) - 1.0)

    def ffn(x2, fc_off, b2_row, b1_row):
        # fc1(elu(fc2(x)))
        h = jnp.dot(x2, wblk(fc_off, DIM_VAL),
                    preferred_element_type=f32) + wrow(b2_row)
        h = elu(h)
        return jnp.dot(h, wblk(fc_off + DIM_VAL, DIM_VAL),
                       preferred_element_type=f32) + wrow(b1_row)

    def encoder_layer(x2, layer):
        fc_off = W_ENC_FC + 2 * DIM_VAL * layer
        v = V_ENC + 6 * layer
        a = self_attn(x2, layer)
        x2 = ln(x2 + a, v + 2, v + 3)
        a = ffn(x2, fc_off, v + 0, v + 1)
        return ln(x2 + a, v + 4, v + 5)

    def decoder_layer(x2, enc2):
        v = V_DEC
        a = self_attn(x2, 2 * N_ENCODER_LAYERS)
        x2 = ln(a + x2, v + 2, v + 3)
        a = cross_attn(x2, enc2, 2 * N_ENCODER_LAYERS + 1)
        x2 = ln(a + x2, v + 4, v + 5)
        a = ffn(x2, W_DEC_FC, v + 0, v + 1)
        return ln(x2 + a, v + 6, v + 7)

    # --- forward --------------------------------------------------------------
    xs = xs_ref[0]                                   # (F, T)
    xt = xt_ref[0]                                   # (T, F)

    # sensor branch: sensors as tokens, (F, T) @ (T, D)
    e = jnp.dot(xs, wblk(W_SENSOR, TIME_STEP),
                preferred_element_type=f32) + wrow(V_SENSOR_B)
    # time branch: timesteps as tokens + sinusoidal positional encoding
    o = (jnp.dot(xt, wblk(W_TIME, INPUT_SIZE), preferred_element_type=f32)
         + wrow(V_TIME_B) + wblk(W_PE, TIME_STEP))

    for l in range(N_ENCODER_LAYERS):                # sensor encoder (attn blocks 0..1)
        e = encoder_layer(e, l)
    for l in range(N_ENCODER_LAYERS):                # time encoder   (attn blocks 2..3)
        o = encoder_layer(o, N_ENCODER_LAYERS + l)

    # concat on token axis + plain LayerNorm
    p = ln(jnp.concatenate([e, o], axis=0), V_CAT_G, V_CAT_B)

    # decoder input: last dec_seq_len timesteps, sliced in-kernel (static slice)
    xd = xt[TIME_STEP - DEC_SEQ_LEN:, :]             # (dec_seq_len, F)
    d = jnp.dot(xd, wblk(W_DEC, INPUT_SIZE),
                preferred_element_type=f32) + wrow(V_DEC_B)
    d = decoder_layer(d, p)

    o_ref[0] = d


@jax.jit
def dast_forward(x, aslab, wslab):
    """x: (B, time_step, input_size) f32; aslab/wslab from pack_params."""
    B = x.shape[0]
    # Tiny (1 KB) transpose kept in the wrapper: avoids an in-kernel
    # transposed-LHS matmul / relayout for the sensor-branch view.
    xs = jnp.transpose(x, (0, 2, 1))                 # (B, F, T)

    out = pl.pallas_call(
        _dast_kernel,
        out_shape=jax.ShapeDtypeStruct((B, DEC_SEQ_LEN, DIM_VAL), jnp.float32),
        grid=(B,),
        in_specs=[
            pl.BlockSpec((1, INPUT_SIZE, TIME_STEP), lambda b: (b, 0, 0)),
            pl.BlockSpec((1, TIME_STEP, INPUT_SIZE), lambda b: (b, 0, 0)),
            # parameter slabs: full-array blocks, constant index -> resident
            pl.BlockSpec(aslab.shape, lambda b: (0, 0)),
            pl.BlockSpec(wslab.shape, lambda b: (0, 0)),
        ],
        out_specs=pl.BlockSpec((1, DEC_SEQ_LEN, DIM_VAL), lambda b: (b, 0, 0)),
        compiler_params=pltpu.CompilerParams(
            dimension_semantics=("parallel",)),      # v7x: split batch across 2 TCs
    )(xs, x, aslab, wslab)
    return out.reshape(B, DEC_SEQ_LEN * DIM_VAL)     # flatten(start_dim=1)


# ------------------------ param packing (done once) -------------------------
def positional_encoding(seq_len, d_model):
    position = jnp.arange(seq_len, dtype=jnp.float32)[:, None]
    div_term = jnp.exp(
        jnp.arange(0, d_model, 2, dtype=jnp.float32) * (-math.log(10000.0) / d_model)
    )
    pe = jnp.zeros((seq_len, d_model), jnp.float32)
    pe = pe.at[:, 0::2].set(jnp.sin(position * div_term))
    pe = pe.at[:, 1::2].set(jnp.cos(position * div_term))
    return pe


def pack_params(params):
    """Pre-transpose / fuse / slab-pack torch-layout params.  Runs once."""
    t = jnp.transpose
    scale = 1.0 / math.sqrt(DIM_ATTN)

    def attn_block(a):
        # Columns: [Q_h0 Q_h1 | K_h0 K_h1 | Vf_h0 Vf_h1]  (each 32 wide).
        # Softmax scale folded into Q; torch stack(dim=-1)+flatten output
        # projection folded into V:  Vf_h = t(wv_h) @ t(wfc[:, h::H]).
        wq, wk, wv, wfc = a["wq"], a["wk"], a["wv"], a["wfc"]
        H = wq.shape[0]
        q_cols = [t(wq[h]) * scale for h in range(H)]
        k_cols = [t(wk[h]) for h in range(H)]
        v_cols = [t(wv[h]) @ t(wfc[:, h::H]) for h in range(H)]   # lossless: dv == dim_val
        return jnp.concatenate(q_cols + k_cols + v_cols, axis=1)  # (32, 192)

    sens = params["sensor_encoder"]
    time_ = params["time_encoder"]
    dec = params["decoder"]

    # ---- attention slab: sensor layers, time layers, then (attn1, attn2) per decoder
    attn_blocks = [attn_block(lp["attn"]) for lp in sens + time_]
    for lp in dec:
        attn_blocks += [attn_block(lp["attn1"]), attn_block(lp["attn2"])]
    aslab = jnp.concatenate(attn_blocks, axis=0)
    assert aslab.shape == (N_ATTN_BLOCKS * DIM_VAL, ATTN_COLS), aslab.shape

    # ---- 32-wide slab: weight blocks (8-aligned) then one row per vector
    wparts = [t(params["sensor_enc_input_fc_w"]),          # rows   0:16
              t(params["timestep_enc_input_fc_w"]),        # rows  16:24
              t(params["dec_input_fc_w"]),                 # rows  24:32
              positional_encoding(TIME_STEP, DIM_VAL)]     # rows  32:48
    for lp in sens + time_:
        wparts += [t(lp["fc2_w"]), t(lp["fc1_w"])]         # 64 rows / layer
    for lp in dec:
        wparts += [t(lp["fc2_w"]), t(lp["fc1_w"])]

    vecs = [params["sensor_enc_input_fc_b"], params["timestep_enc_input_fc_b"],
            params["dec_input_fc_b"], params["norm1_g"], params["norm1_b"]]
    for lp in sens + time_:
        vecs += [lp["fc2_b"], lp["fc1_b"], lp["norm1_g"], lp["norm1_b"],
                 lp["norm2_g"], lp["norm2_b"]]
    for lp in dec:
        vecs += [lp["fc2_b"], lp["fc1_b"], lp["norm1_g"], lp["norm1_b"],
                 lp["norm2_g"], lp["norm2_b"], lp["norm3_g"], lp["norm3_b"]]

    wslab = jnp.concatenate(wparts + [jnp.stack(vecs, axis=0)], axis=0)
    assert wslab.shape[0] == _WSLAB_USED, wslab.shape
    pad = WSLAB_ROWS - wslab.shape[0]
    if pad:
        wslab = jnp.concatenate(
            [wslab, jnp.zeros((pad, DIM_VAL), jnp.float32)], axis=0)
    return aslab.astype(jnp.float32), wslab.astype(jnp.float32)


# ------------------------------ parameter init ------------------------------
def init_params(key):
    keys = iter(jax.random.split(key, 256))

    def w(shape, scale=0.05):
        return jax.random.normal(next(keys), shape, jnp.float32) * scale

    def mha_params():
        return dict(
            wq=w((N_HEADS, DIM_ATTN, DIM_VAL)),     # per-head Linear(dim_val, dim_attn)
            wk=w((N_HEADS, DIM_ATTN, DIM_VAL)),
            wv=w((N_HEADS, DIM_VAL, DIM_VAL)),
            wfc=w((DIM_VAL, N_HEADS * DIM_VAL)),    # bias-free head mix
        )

    def enc_layer_params():
        return dict(
            attn=mha_params(),
            fc1_w=w((DIM_VAL, DIM_VAL)), fc1_b=w((DIM_VAL,)),
            fc2_w=w((DIM_VAL, DIM_VAL)), fc2_b=w((DIM_VAL,)),
            norm1_g=jnp.ones((DIM_VAL,), jnp.float32), norm1_b=jnp.zeros((DIM_VAL,), jnp.float32),
            norm2_g=jnp.ones((DIM_VAL,), jnp.float32), norm2_b=jnp.zeros((DIM_VAL,), jnp.float32),
        )

    def dec_layer_params():
        return dict(
            attn1=mha_params(),
            attn2=mha_params(),
            fc1_w=w((DIM_VAL, DIM_VAL)), fc1_b=w((DIM_VAL,)),
            fc2_w=w((DIM_VAL, DIM_VAL)), fc2_b=w((DIM_VAL,)),
            norm1_g=jnp.ones((DIM_VAL,), jnp.float32), norm1_b=jnp.zeros((DIM_VAL,), jnp.float32),
            norm2_g=jnp.ones((DIM_VAL,), jnp.float32), norm2_b=jnp.zeros((DIM_VAL,), jnp.float32),
            norm3_g=jnp.ones((DIM_VAL,), jnp.float32), norm3_b=jnp.zeros((DIM_VAL,), jnp.float32),
        )

    return dict(
        sensor_enc_input_fc_w=w((DIM_VAL, TIME_STEP)),
        sensor_enc_input_fc_b=w((DIM_VAL,)),
        timestep_enc_input_fc_w=w((DIM_VAL, INPUT_SIZE)),
        timestep_enc_input_fc_b=w((DIM_VAL,)),
        dec_input_fc_w=w((DIM_VAL, INPUT_SIZE)),
        dec_input_fc_b=w((DIM_VAL,)),
        norm1_g=jnp.ones((DIM_VAL,), jnp.float32),
        norm1_b=jnp.zeros((DIM_VAL,), jnp.float32),
        sensor_encoder=[enc_layer_params() for _ in range(N_ENCODER_LAYERS)],
        time_encoder=[enc_layer_params() for _ in range(N_ENCODER_LAYERS)],
        decoder=[dec_layer_params() for _ in range(N_DECODER_LAYERS)],
    )


# -------------------------- pure-JAX f32 reference --------------------------
def _ref_linear(x, w_torch, b=None):
    y = jnp.einsum("...i,oi->...o", x, w_torch)
    return y if b is None else y + b


def _ref_mha(x, kv, a):
    H = a["wq"].shape[0]
    outs = []
    for h in range(H):
        q = _ref_linear(x, a["wq"][h])
        k = _ref_linear(kv, a["wk"][h])
        v = _ref_linear(kv, a["wv"][h])
        s = jnp.einsum("bqd,bkd->bqk", q, k) / math.sqrt(q.shape[-1])
        outs.append(jnp.einsum("bqk,bkd->bqd", jax.nn.softmax(s, axis=-1), v))
    st = jnp.stack(outs, axis=-1)                      # (B, Sq, dv, H)
    flat = st.reshape(st.shape[0], st.shape[1], -1)    # torch flatten interleave
    return _ref_linear(flat, a["wfc"])


def _ref_ln(z, g, b):
    mu = jnp.mean(z, axis=-1, keepdims=True)
    var = jnp.mean((z - mu) ** 2, axis=-1, keepdims=True)
    return (z - mu) / jnp.sqrt(var + LN_EPS) * g + b


def _ref_ffn(x, lp):
    h = _ref_linear(x, lp["fc2_w"], lp["fc2_b"])
    return _ref_linear(jax.nn.elu(h), lp["fc1_w"], lp["fc1_b"])


def _ref_encoder_layer(x, lp):
    a = _ref_mha(x, x, lp["attn"])
    x = _ref_ln(x + a, lp["norm1_g"], lp["norm1_b"])
    a = _ref_ffn(x, lp)
    return _ref_ln(x + a, lp["norm2_g"], lp["norm2_b"])


def _ref_decoder_layer(x, enc, lp):
    a = _ref_mha(x, x, lp["attn1"])
    x = _ref_ln(a + x, lp["norm1_g"], lp["norm1_b"])
    a = _ref_mha(x, enc, lp["attn2"])
    x = _ref_ln(a + x, lp["norm2_g"], lp["norm2_b"])
    a = _ref_ffn(x, lp)
    return _ref_ln(x + a, lp["norm3_g"], lp["norm3_b"])


def dast_reference(x, params):
    B, T, _ = x.shape
    sensor_x = jnp.transpose(x, (0, 2, 1))
    e = _ref_linear(sensor_x, params["sensor_enc_input_fc_w"], params["sensor_enc_input_fc_b"])
    o = _ref_linear(x, params["timestep_enc_input_fc_w"], params["timestep_enc_input_fc_b"])
    o = o + positional_encoding(T, DIM_VAL)[None]
    for lp in params["sensor_encoder"]:
        e = _ref_encoder_layer(e, lp)
    for lp in params["time_encoder"]:
        o = _ref_encoder_layer(o, lp)
    p = _ref_ln(jnp.concatenate([e, o], axis=1), params["norm1_g"], params["norm1_b"])
    d = _ref_linear(x[:, -DEC_SEQ_LEN:], params["dec_input_fc_w"], params["dec_input_fc_b"])
    for lp in params["decoder"]:
        d = _ref_decoder_layer(d, p, lp)
    return d.reshape(B, -1)


# ---------------------------------- main -------------------------------------
if __name__ == "__main__":
    key = jax.random.PRNGKey(0)
    k_x, k_p = jax.random.split(key)
    x = jax.random.normal(k_x, (BATCH, TIME_STEP, INPUT_SIZE), jnp.float32)
    params = init_params(k_p)

    # one-time pre-transpose / QKV+output-projection fusion / slab packing
    aslab, wslab = pack_params(params)

    out = dast_forward(x, aslab, wslab)
    out = jax.block_until_ready(out)

    assert out.shape == (BATCH, DEC_SEQ_LEN * DIM_VAL), out.shape
    assert bool(jnp.all(jnp.isfinite(out)))

    # verify against the pure-JAX f32 reference of the torch forward
    ref = dast_reference(x, params)
    max_err = float(jnp.max(jnp.abs(out - ref)))
    assert max_err < 2e-3, f"max abs err vs reference: {max_err}"

    print("KERNEL_OK")
</pallas_src>

<mosaic_0001>
module attributes {stable_mosaic.version = 11 : i64} {
  func.func @_dast_kernel(%arg0: i32, %arg1: memref<1x8x16xf32, #tpu.memory_space<vmem>>, %arg2: memref<1x16x8xf32, #tpu.memory_space<vmem>>, %arg3: memref<192x192xf32, #tpu.memory_space<vmem>>, %arg4: memref<408x32xf32, #tpu.memory_space<vmem>>, %arg5: memref<1x4x32xf32, #tpu.memory_space<vmem>>) attributes {dimension_semantics = [#tpu.dimension_semantics<parallel>], iteration_bounds = array<i64: 2>, scalar_prefetch = 0 : i64, scratch_operands = 0 : i64, tpu.core_type = #tpu.core_type<tc>, window_params = [{transform_indices = @transform_0, window_bounds = array<i64: 1, 8, 16>}, {transform_indices = @transform_1, window_bounds = array<i64: 1, 16, 8>}, {pipeline_mode = #tpu.pipeline_mode<synchronous>, transform_indices = @transform_2, window_bounds = array<i64: 192, 192>}, {pipeline_mode = #tpu.pipeline_mode<synchronous>, transform_indices = @transform_3, window_bounds = array<i64: 408, 32>}, {transform_indices = @transform_4, window_bounds = array<i64: 1, 4, 32>}]} {
    %c0 = arith.constant 0 : index
    %c0_0 = arith.constant 0 : index
    %c0_1 = arith.constant 0 : index
    %0 = vector.load %arg1[%c0, %c0_0, %c0_1] : memref<1x8x16xf32, #tpu.memory_space<vmem>>, vector<1x8x16xf32>
    %1 = vector.shape_cast %0 : vector<1x8x16xf32> to vector<8x16xf32>
    %c0_2 = arith.constant 0 : index
    %c0_3 = arith.constant 0 : index
    %c0_4 = arith.constant 0 : index
    %2 = vector.load %arg2[%c0_2, %c0_3, %c0_4] : memref<1x16x8xf32, #tpu.memory_space<vmem>>, vector<1x16x8xf32>
    %3 = vector.shape_cast %2 : vector<1x16x8xf32> to vector<16x8xf32>
    %c0_5 = arith.constant 0 : index
    %c0_6 = arith.constant 0 : index
    %4 = vector.load %arg4[%c0_5, %c0_6] : memref<408x32xf32, #tpu.memory_space<vmem>>, vector<16x32xf32>
    %cst = arith.constant dense<0.000000e+00> : vector<8x32xf32>
    %5 = tpu.matmul %1, %4, %cst {dimension_numbers = #tpu.dot_dimension_numbers<[1], [0], [0], [1], [0, 0, 1, 1], [], []>} : vector<8x16xf32>, vector<16x32xf32>, vector<8x32xf32> -> vector<8x32xf32>
    %c368 = arith.constant 368 : index
    %c0_7 = arith.constant 0 : index
    %6 = vector.load %arg4[%c368, %c0_7] : memref<408x32xf32, #tpu.memory_space<vmem>>, vector<1x32xf32>
    %7 = vector.broadcast %6 : vector<1x32xf32> to vector<8x32xf32>
    %8 = arith.addf %5, %7 : vector<8x32xf32>
    %c16 = arith.constant 16 : index
    %c0_8 = arith.constant 0 : index
    %9 = vector.load %arg4[%c16, %c0_8] : memref<408x32xf32, #tpu.memory_space<vmem>>, vector<8x32xf32>
    %cst_9 = arith.constant dense<0.000000e+00> : vector<16x32xf32>
    %10 = tpu.matmul %3, %9, %cst_9 {dimension_numbers = #tpu.dot_dimension_numbers<[1], [0], [0], [1], [0, 0, 1, 1], [], []>} : vector<16x8xf32>, vector<8x32xf32>, vector<16x32xf32> -> vector<16x32xf32>
    %c369 = arith.constant 369 : index
    %c0_10 = arith.constant 0 : index
    %11 = vector.load %arg4[%c369, %c0_10] : memref<408x32xf32, #tpu.memory_space<vmem>>, vector<1x32xf32>
    %12 = vector.broadcast %11 : vector<1x32xf32> to vector<16x32xf32>
    %13 = arith.addf %10, %12 : vector<16x32xf32>
    %c32 = arith.constant 32 : index
    %c0_11 = arith.constant 0 : index
    %14 = vector.load %arg4[%c32, %c0_11] : memref<408x32xf32, #tpu.memory_space<vmem>>, vector<16x32xf32>
    %15 = arith.addf %13, %14 : vector<16x32xf32>
    %c0_12 = arith.constant 0 : index
    %c0_13 = arith.constant 0 : index
    %16 = vector.load %arg3[%c0_12, %c0_13] : memref<192x192xf32, #tpu.memory_space<vmem>>, vector<32x192xf32>
    %cst_14 = arith.constant dense<0.000000e+00> : vector<8x192xf32>
    %17 = tpu.matmul %8, %16, %cst_14 {dimension_numbers = #tpu.dot_dimension_numbers<[1], [0], [0], [1], [0, 0, 1, 1], [], []>} : vector<8x32xf32>, vector<32x192xf32>, vector<8x192xf32> -> vector<8x192xf32>
    %18 = vector.extract_strided_slice %17 {offsets = [0, 0], sizes = [8, 64], strides = [1, 1]} : vector<8x192xf32> to vector<8x64xf32>
    %19 = vector.extract_strided_slice %17 {offsets = [0, 64], sizes = [8, 64], strides = [1, 1]} : vector<8x192xf32> to vector<8x64xf32>
    %20 = vector.extract_strided_slice %17 {offsets = [0, 128], sizes = [8, 64], strides = [1, 1]} : vector<8x192xf32> to vector<8x64xf32>
    %21 = vector.extract_strided_slice %18 {offsets = [0, 0], sizes = [8, 32], strides = [1, 1]} : vector<8x64xf32> to vector<8x32xf32>
    %22 = vector.extract_strided_slice %19 {offsets = [0, 0], sizes = [8, 32], strides = [1, 1]} : vector<8x64xf32> to vector<8x32xf32>
    %cst_15 = arith.constant dense<0.000000e+00> : vector<8x8xf32>
    %23 = tpu.matmul %21, %22, %cst_15 {dimension_numbers = #tpu.dot_dimension_numbers<[1], [1], [0], [0], [0, 0, 1, 0], [], []>} : vector<8x32xf32>, vector<8x32xf32>, vector<8x8xf32> -> vector<8x8xf32>
    %cst_16 = arith.constant dense<0xFF800000> : vector<8xf32>
    %24 = vector.multi_reduction <maximumf>, %23, %cst_16 [1] : vector<8x8xf32> to vector<8xf32>
    %25 = vector.shape_cast %24 : vector<8xf32> to vector<8x1xf32>
    %26 = vector.broadcast %25 : vector<8x1xf32> to vector<8x8xf32>
    %27 = arith.subf %23, %26 : vector<8x8xf32>
    %28 = math.exp %27 : vector<8x8xf32>
    %cst_17 = arith.constant dense<0.000000e+00> : vector<8xf32>
    %29 = vector.multi_reduction <add>, %28, %cst_17 [1] : vector<8x8xf32> to vector<8xf32>
    %30 = vector.shape_cast %29 : vector<8xf32> to vector<8x1xf32>
    %31 = vector.broadcast %30 : vector<8x1xf32> to vector<8x8xf32>
    %32 = arith.divf %28, %31 : vector<8x8xf32>
    %33 = vector.extract_strided_slice %20 {offsets = [0, 0], sizes = [8, 32], strides = [1, 1]} : vector<8x64xf32> to vector<8x32xf32>
    %cst_18 = arith.constant dense<0.000000e+00> : vector<8x32xf32>
    %34 = tpu.matmul %32, %33, %cst_18 {dimension_numbers = #tpu.dot_dimension_numbers<[1], [0], [0], [1], [0, 0, 1, 1], [], []>} : vector<8x8xf32>, vector<8x32xf32>, vector<8x32xf32> -> vector<8x32xf32>
    %35 = vector.extract_strided_slice %18 {offsets = [0, 32], sizes = [8, 32], strides = [1, 1]} : vector<8x64xf32> to vector<8x32xf32>
    %36 = vector.extract_strided_slice %19 {offsets = [0, 32], sizes = [8, 32], strides = [1, 1]} : vector<8x64xf32> to vector<8x32xf32>
    %cst_19 = arith.constant dense<0.000000e+00> : vector<8x8xf32>
    %37 = tpu.matmul %35, %36, %cst_19 {dimension_numbers = #tpu.dot_dimension_numbers<[1], [1], [0], [0], [0, 0, 1, 0], [], []>} : vector<8x32xf32>, vector<8x32xf32>, vector<8x8xf32> -> vector<8x8xf32>
    %cst_20 = arith.constant dense<0xFF800000> : vector<8xf32>
    %38 = vector.multi_reduction <maximumf>, %37, %cst_20 [1] : vector<8x8xf32> to vector<8xf32>
    %39 = vector.shape_cast %38 : vector<8xf32> to vector<8x1xf32>
    %40 = vector.broadcast %39 : vector<8x1xf32> to vector<8x8xf32>
    %41 = arith.subf %37, %40 : vector<8x8xf32>
    %42 = math.exp %41 : vector<8x8xf32>
    %cst_21 = arith.constant dense<0.000000e+00> : vector<8xf32>
    %43 = vector.multi_reduction <add>, %42, %cst_21 [1] : vector<8x8xf32> to vector<8xf32>
    %44 = vector.shape_cast %43 : vector<8xf32> to vector<8x1xf32>
    %45 = vector.broadcast %44 : vector<8x1xf32> to vector<8x8xf32>
    %46 = arith.divf %42, %45 : vector<8x8xf32>
    %47 = vector.extract_strided_slice %20 {offsets = [0, 32], sizes = [8, 32], strides = [1, 1]} : vector<8x64xf32> to vector<8x32xf32>
    %cst_22 = arith.constant dense<0.000000e+00> : vector<8x32xf32>
    %48 = tpu.matmul %46, %47, %cst_22 {dimension_numbers = #tpu.dot_dimension_numbers<[1], [0], [0], [1], [0, 0, 1, 1], [], []>} : vector<8x8xf32>, vector<8x32xf32>, vector<8x32xf32> -> vector<8x32xf32>
    %49 = arith.addf %34, %48 : vector<8x32xf32>
    %50 = arith.addf %8, %49 : vector<8x32xf32>
    %cst_23 = arith.constant dense<0.000000e+00> : vector<8xf32>
    %51 = vector.multi_reduction <add>, %50, %cst_23 [1] : vector<8x32xf32> to vector<8xf32>
    %52 = vector.shape_cast %51 : vector<8xf32> to vector<8x1xf32>
    %cst_24 = arith.constant 3.200000e+01 : f32
    %53 = vector.broadcast %cst_24 : f32 to vector<8x1xf32>
    %54 = arith.divf %52, %53 : vector<8x1xf32>
    %55 = vector.broadcast %54 : vector<8x1xf32> to vector<8x32xf32>
    %56 = arith.subf %50, %55 : vector<8x32xf32>
    %57 = arith.mulf %56, %56 : vector<8x32xf32>
    %cst_25 = arith.constant dense<0.000000e+00> : vector<8xf32>
    %58 = vector.multi_reduction <add>, %57, %cst_25 [1] : vector<8x32xf32> to vector<8xf32>
    %59 = vector.shape_cast %58 : vector<8xf32> to vector<8x1xf32>
    %cst_26 = arith.constant 3.200000e+01 : f32
    %60 = vector.broadcast %cst_26 : f32 to vector<8x1xf32>
    %61 = arith.divf %59, %60 : vector<8x1xf32>
    %62 = vector.broadcast %54 : vector<8x1xf32> to vector<8x32xf32>
    %63 = arith.subf %50, %62 : vector<8x32xf32>
    %cst_27 = arith.constant 9.99999974E-6 : f32
    %64 = vector.broadcast %cst_27 : f32 to vector<8x1xf32>
    %65 = arith.addf %61, %64 : vector<8x1xf32>
    %66 = math.rsqrt %65 : vector<8x1xf32>
    %67 = vector.broadcast %66 : vector<8x1xf32> to vector<8x32xf32>
    %68 = arith.mulf %63, %67 : vector<8x32xf32>
    %c375 = arith.constant 375 : index
    %c0_28 = arith.constant 0 : index
    %69 = vector.load %arg4[%c375, %c0_28] : memref<408x32xf32, #tpu.memory_space<vmem>>, vector<1x32xf32>
    %70 = vector.broadcast %69 : vector<1x32xf32> to vector<8x32xf32>
    %71 = arith.mulf %68, %70 : vector<8x32xf32>
    %c376 = arith.constant 376 : index
    %c0_29 = arith.constant 0 : index
    %72 = vector.load %arg4[%c376, %c0_29] : memref<408x32xf32, #tpu.memory_space<vmem>>, vector<1x32xf32>
    %73 = vector.broadcast %72 : vector<1x32xf32> to vector<8x32xf32>
    %74 = arith.addf %71, %73 : vector<8x32xf32>
    %c48 = arith.constant 48 : index
    %c0_30 = arith.constant 0 : index
    %75 = vector.load %arg4[%c48, %c0_30] : memref<408x32xf32, #tpu.memory_space<vmem>>, vector<32x32xf32>
    %cst_31 = arith.constant dense<0.000000e+00> : vector<8x32xf32>
    %76 = tpu.matmul %74, %75, %cst_31 {dimension_numbers = #tpu.dot_dimension_numbers<[1], [0], [0], [1], [0, 0, 1, 1], [], []>} : vector<8x32xf32>, vector<32x32xf32>, vector<8x32xf32> -> vector<8x32xf32>
    %c373 = arith.constant 373 : index
    %c0_32 = arith.constant 0 : index
    %77 = vector.load %arg4[%c373, %c0_32] : memref<408x32xf32, #tpu.memory_space<vmem>>, vector<1x32xf32>
    %78 = vector.broadcast %77 : vector<1x32xf32> to vector<8x32xf32>
    %79 = arith.addf %76, %78 : vector<8x32xf32>
    %cst_33 = arith.constant 0.000000e+00 : f32
    %80 = vector.broadcast %cst_33 : f32 to vector<8x32xf32>
    %81 = arith.cmpf ogt, %79, %80 : vector<8x32xf32>
    %cst_34 = arith.constant 0.000000e+00 : f32
    %82 = vector.broadcast %cst_34 : f32 to vector<8x32xf32>
    %83 = arith.minimumf %79, %82 : vector<8x32xf32>
    %84 = math.exp %83 : vector<8x32xf32>
    %cst_35 = arith.constant 1.000000e+00 : f32
    %85 = vector.broadcast %cst_35 : f32 to vector<8x32xf32>
    %86 = arith.subf %84, %85 : vector<8x32xf32>
    %87 = arith.select %81, %79, %86 : vector<8x32xi1>, vector<8x32xf32>
    %c80 = arith.constant 80 : index
    %c0_36 = arith.constant 0 : index
    %88 = vector.load %arg4[%c80, %c0_36] : memref<408x32xf32, #tpu.memory_space<vmem>>, vector<32x32xf32>
    %cst_37 = arith.constant dense<0.000000e+00> : vector<8x32xf32>
    %89 = tpu.matmul %87, %88, %cst_37 {dimension_numbers = #tpu.dot_dimension_numbers<[1], [0], [0], [1], [0, 0, 1, 1], [], []>} : vector<8x32xf32>, vector<32x32xf32>, vector<8x32xf32> -> vector<8x32xf32>
    %c374 = arith.constant 374 : index
    %c0_38 = arith.constant 0 : index
    %90 = vector.load %arg4[%c374, %c0_38] : memref<408x32xf32, #tpu.memory_space<vmem>>, vector<1x32xf32>
    %91 = vector.broadcast %90 : vector<1x32xf32> to vector<8x32xf32>
    %92 = arith.addf %89, %91 : vector<8x32xf32>
    %93 = arith.addf %74, %92 : vector<8x32xf32>
    %cst_39 = arith.constant dense<0.000000e+00> : vector<8xf32>
    %94 = vector.multi_reduction <add>, %93, %cst_39 [1] : vector<8x32xf32> to vector<8xf32>
    %95 = vector.shape_cast %94 : vector<8xf32> to vector<8x1xf32>
    %cst_40 = arith.constant 3.200000e+01 : f32
    %96 = vector.broadcast %cst_40 : f32 to vector<8x1xf32>
    %97 = arith.divf %95, %96 : vector<8x1xf32>
    %98 = vector.broadcast %97 : vector<8x1xf32> to vector<8x32xf32>
    %99 = arith.subf %93, %98 : vector<8x32xf32>
    %100 = arith.mulf %99, %99 : vector<8x32xf32>
    %cst_41 = arith.constant dense<0.000000e+00> : vector<8xf32>
    %101 = vector.multi_reduction <add>, %100, %cst_41 [1] : vector<8x32xf32> to vector<8xf32>
    %102 = vector.shape_cast %101 : vector<8xf32> to vector<8x1xf32>
    %cst_42 = arith.constant 3.200000e+01 : f32
    %103 = vector.broadcast %cst_42 : f32 to vector<8x1xf32>
    %104 = arith.divf %102, %103 : vector<8x1xf32>
    %105 = vector.broadcast %97 : vector<8x1xf32> to vector<8x32xf32>
    %106 = arith.subf %93, %105 : vector<8x32xf32>
    %cst_43 = arith.constant 9.99999974E-6 : f32
    %107 = vector.broadcast %cst_43 : f32 to vector<8x1xf32>
    %108 = arith.addf %104, %107 : vector<8x1xf32>
    %109 = math.rsqrt %108 : vector<8x1xf32>
    %110 = vector.broadcast %109 : vector<8x1xf32> to vector<8x32xf32>
    %111 = arith.mulf %106, %110 : vector<8x32xf32>
    %c377 = arith.constant 377 : index
    %c0_44 = arith.constant 0 : index
    %112 = vector.load %arg4[%c377, %c0_44] : memref<408x32xf32, #tpu.memory_space<vmem>>, vector<1x32xf32>
    %113 = vector.broadcast %112 : vector<1x32xf32> to vector<8x32xf32>
    %114 = arith.mulf %111, %113 : vector<8x32xf32>
    %c378 = arith.constant 378 : index
    %c0_45 = arith.constant 0 : index
    %115 = vector.load %arg4[%c378, %c0_45] : memref<408x32xf32, #tpu.memory_space<vmem>>, vector<1x32xf32>
    %116 = vector.broadcast %115 : vector<1x32xf32> to vector<8x32xf32>
    %117 = arith.addf %114, %116 : vector<8x32xf32>
    %c32_46 = arith.constant 32 : index
    %c0_47 = arith.constant 0 : index
    %118 = vector.load %arg3[%c32_46, %c0_47] : memref<192x192xf32, #tpu.memory_space<vmem>>, vector<32x192xf32>
    %cst_48 = arith.constant dense<0.000000e+00> : vector<8x192xf32>
    %119 = tpu.matmul %117, %118, %cst_48 {dimension_numbers = #tpu.dot_dimension_numbers<[1], [0], [0], [1], [0, 0, 1, 1], [], []>} : vector<8x32xf32>, vector<32x192xf32>, vector<8x192xf32> -> vector<8x192xf32>
    %120 = vector.extract_strided_slice %119 {offsets = [0, 0], sizes = [8, 64], strides = [1, 1]} : vector<8x192xf32> to vector<8x64xf32>
    %121 = vector.extract_strided_slice %119 {offsets = [0, 64], sizes = [8, 64], strides = [1, 1]} : vector<8x192xf32> to vector<8x64xf32>
    %122 = vector.extract_strided_slice %119 {offsets = [0, 128], sizes = [8, 64], strides = [1, 1]} : vector<8x192xf32> to vector<8x64xf32>
    %123 = vector.extract_strided_slice %120 {offsets = [0, 0], sizes = [8, 32], strides = [1, 1]} : vector<8x64xf32> to vector<8x32xf32>
    %124 = vector.extract_strided_slice %121 {offsets = [0, 0], sizes = [8, 32], strides = [1, 1]} : vector<8x64xf32> to vector<8x32xf32>
    %cst_49 = arith.constant dense<0.000000e+00> : vector<8x8xf32>
    %125 = tpu.matmul %123, %124, %cst_49 {dimension_numbers = #tpu.dot_dimension_numbers<[1], [1], [0], [0], [0, 0, 1, 0], [], []>} : vector<8x32xf32>, vector<8x32xf32>, vector<8x8xf32> -> vector<8x8xf32>
    %cst_50 = arith.constant dense<0xFF800000> : vector<8xf32>
    %126 = vector.multi_reduction <maximumf>, %125, %cst_50 [1] : vector<8x8xf32> to vector<8xf32>
    %127 = vector.shape_cast %126 : vector<8xf32> to vector<8x1xf32>
    %128 = vector.broadcast %127 : vector<8x1xf32> to vector<8x8xf32>
    %129 = arith.subf %125, %128 : vector<8x8xf32>
    %130 = math.exp %129 : vector<8x8xf32>
    %cst_51 = arith.constant dense<0.000000e+00> : vector<8xf32>
    %131 = vector.multi_reduction <add>, %130, %cst_51 [1] : vector<8x8xf32> to vector<8xf32>
    %132 = vector.shape_cast %131 : vector<8xf32> to vector<8x1xf32>
    %133 = vector.broadcast %132 : vector<8x1xf32> to vector<8x8xf32>
    %134 = arith.divf %130, %133 : vector<8x8xf32>
    %135 = vector.extract_strided_slice %122 {offsets = [0, 0], sizes = [8, 32], strides = [1, 1]} : vector<8x64xf32> to vector<8x32xf32>
    %cst_52 = arith.constant dense<0.000000e+00> : vector<8x32xf32>
    %136 = tpu.matmul %134, %135, %cst_52 {dimension_numbers = #tpu.dot_dimension_numbers<[1], [0], [0], [1], [0, 0, 1, 1], [], []>} : vector<8x8xf32>, vector<8x32xf32>, vector<8x32xf32> -> vector<8x32xf32>
    %137 = vector.extract_strided_slice %120 {offsets = [0, 32], sizes = [8, 32], strides = [1, 1]} : vector<8x64xf32> to vector<8x32xf32>
    %138 = vector.extract_strided_slice %121 {offsets = [0, 32], sizes = [8, 32], strides = [1, 1]} : vector<8x64xf32> to vector<8x32xf32>
    %cst_53 = arith.constant dense<0.000000e+00> : vector<8x8xf32>
    %139 = tpu.matmul %137, %138, %cst_53 {dimension_numbers = #tpu.dot_dimension_numbers<[1], [1], [0], [0], [0, 0, 1, 0], [], []>} : vector<8x32xf32>, vector<8x32xf32>, vector<8x8xf32> -> vector<8x8xf32>
    %cst_54 = arith.constant dense<0xFF800000> : vector<8xf32>
    %140 = vector.multi_reduction <maximumf>, %139, %cst_54 [1] : vector<8x8xf32> to vector<8xf32>
    %141 = vector.shape_cast %140 : vector<8xf32> to vector<8x1xf32>
    %142 = vector.broadcast %141 : vector<8x1xf32> to vector<8x8xf32>
    %143 = arith.subf %139, %142 : vector<8x8xf32>
    %144 = math.exp %143 : vector<8x8xf32>
    %cst_55 = arith.constant dense<0.000000e+00> : vector<8xf32>
    %145 = vector.multi_reduction <add>, %144, %cst_55 [1] : vector<8x8xf32> to vector<8xf32>
    %146 = vector.shape_cast %145 : vector<8xf32> to vector<8x1xf32>
    %147 = vector.broadcast %146 : vector<8x1xf32> to vector<8x8xf32>
    %148 = arith.divf %144, %147 : vector<8x8xf32>
    %149 = vector.extract_strided_slice %122 {offsets = [0, 32], sizes = [8, 32], strides = [1, 1]} : vector<8x64xf32> to vector<8x32xf32>
    %cst_56 = arith.constant dense<0.000000e+00> : vector<8x32xf32>
    %150 = tpu.matmul %148, %149, %cst_56 {dimension_numbers = #tpu.dot_dimension_numbers<[1], [0], [0], [1], [0, 0, 1, 1], [], []>} : vector<8x8xf32>, vector<8x32xf32>, vector<8x32xf32> -> vector<8x32xf32>
    %151 = arith.addf %136, %150 : vector<8x32xf32>
    %152 = arith.addf %117, %151 : vector<8x32xf32>
    %cst_57 = arith.constant dense<0.000000e+00> : vector<8xf32>
    %153 = vector.multi_reduction <add>, %152, %cst_57 [1] : vector<8x32xf32> to vector<8xf32>
    %154 = vector.shape_cast %153 : vector<8xf32> to vector<8x1xf32>
    %cst_58 = arith.constant 3.200000e+01 : f32
    %155 = vector.broadcast %cst_58 : f32 to vector<8x1xf32>
    %156 = arith.divf %154, %155 : vector<8x1xf32>
    %157 = vector.broadcast %156 : vector<8x1xf32> to vector<8x32xf32>
    %158 = arith.subf %152, %157 : vector<8x32xf32>
    %159 = arith.mulf %158, %158 : vector<8x32xf32>
    %cst_59 = arith.constant dense<0.000000e+00> : vector<8xf32>
    %160 = vector.multi_reduction <add>, %159, %cst_59 [1] : vector<8x32xf32> to vector<8xf32>
    %161 = vector.shape_cast %160 : vector<8xf32> to vector<8x1xf32>
    %cst_60 = arith.constant 3.200000e+01 : f32
    %162 = vector.broadcast %cst_60 : f32 to vector<8x1xf32>
    %163 = arith.divf %161, %162 : vector<8x1xf32>
    %164 = vector.broadcast %156 : vector<8x1xf32> to vector<8x32xf32>
    %165 = arith.subf %152, %164 : vector<8x32xf32>
    %cst_61 = arith.constant 9.99999974E-6 : f32
    %166 = vector.broadcast %cst_61 : f32 to vector<8x1xf32>
    %167 = arith.addf %163, %166 : vector<8x1xf32>
    %168 = math.rsqrt %167 : vector<8x1xf32>
    %169 = vector.broadcast %168 : vector<8x1xf32> to vector<8x32xf32>
    %170 = arith.mulf %165, %169 : vector<8x32xf32>
    %c381 = arith.constant 381 : index
    %c0_62 = arith.constant 0 : index
    %171 = vector.load %arg4[%c381, %c0_62] : memref<408x32xf32, #tpu.memory_space<vmem>>, vector<1x32xf32>
    %172 = vector.broadcast %171 : vector<1x32xf32> to vector<8x32xf32>
    %173 = arith.mulf %170, %172 : vector<8x32xf32>
    %c382 = arith.constant 382 : index
    %c0_63 = arith.constant 0 : index
    %174 = vector.load %arg4[%c382, %c0_63] : memref<408x32xf32, #tpu.memory_space<vmem>>, vector<1x32xf32>
    %175 = vector.broadcast %174 : vector<1x32xf32> to vector<8x32xf32>
    %176 = arith.addf %173, %175 : vector<8x32xf32>
    %c112 = arith.constant 112 : index
    %c0_64 = arith.constant 0 : index
    %177 = vector.load %arg4[%c112, %c0_64] : memref<408x32xf32, #tpu.memory_space<vmem>>, vector<32x32xf32>
    %cst_65 = arith.constant dense<0.000000e+00> : vector<8x32xf32>
    %178 = tpu.matmul %176, %177, %cst_65 {dimension_numbers = #tpu.dot_dimension_numbers<[1], [0], [0], [1], [0, 0, 1, 1], [], []>} : vector<8x32xf32>, vector<32x32xf32>, vector<8x32xf32> -> vector<8x32xf32>
    %c379 = arith.constant 379 : index
    %c0_66 = arith.constant 0 : index
    %179 = vector.load %arg4[%c379, %c0_66] : memref<408x32xf32, #tpu.memory_space<vmem>>, vector<1x32xf32>
    %180 = vector.broadcast %179 : vector<1x32xf32> to vector<8x32xf32>
    %181 = arith.addf %178, %180 : vector<8x32xf32>
    %cst_67 = arith.constant 0.000000e+00 : f32
    %182 = vector.broadcast %cst_67 : f32 to vector<8x32xf32>
    %183 = arith.cmpf ogt, %181, %182 : vector<8x32xf32>
    %cst_68 = arith.constant 0.000000e+00 : f32
    %184 = vector.broadcast %cst_68 : f32 to vector<8x32xf32>
    %185 = arith.minimumf %181, %184 : vector<8x32xf32>
    %186 = math.exp %185 : vector<8x32xf32>
    %cst_69 = arith.constant 1.000000e+00 : f32
    %187 = vector.broadcast %cst_69 : f32 to vector<8x32xf32>
    %188 = arith.subf %186, %187 : vector<8x32xf32>
    %189 = arith.select %183, %181, %188 : vector<8x32xi1>, vector<8x32xf32>
    %c144 = arith.constant 144 : index
    %c0_70 = arith.constant 0 : index
    %190 = vector.load %arg4[%c144, %c0_70] : memref<408x32xf32, #tpu.memory_space<vmem>>, vector<32x32xf32>
    %cst_71 = arith.constant dense<0.000000e+00> : vector<8x32xf32>
    %191 = tpu.matmul %189, %190, %cst_71 {dimension_numbers = #tpu.dot_dimension_numbers<[1], [0], [0], [1], [0, 0, 1, 1], [], []>} : vector<8x32xf32>, vector<32x32xf32>, vector<8x32xf32> -> vector<8x32xf32>
    %c380 = arith.constant 380 : index
    %c0_72 = arith.constant 0 : index
    %192 = vector.load %arg4[%c380, %c0_72] : memref<408x32xf32, #tpu.memory_space<vmem>>, vector<1x32xf32>
    %193 = vector.broadcast %192 : vector<1x32xf32> to vector<8x32xf32>
    %194 = arith.addf %191, %193 : vector<8x32xf32>
    %195 = arith.addf %176, %194 : vector<8x32xf32>
    %cst_73 = arith.constant dense<0.000000e+00> : vector<8xf32>
    %196 = vector.multi_reduction <add>, %195, %cst_73 [1] : vector<8x32xf32> to vector<8xf32>
    %197 = vector.shape_cast %196 : vector<8xf32> to vector<8x1xf32>
    %cst_74 = arith.constant 3.200000e+01 : f32
    %198 = vector.broadcast %cst_74 : f32 to vector<8x1xf32>
    %199 = arith.divf %197, %198 : vector<8x1xf32>
    %200 = vector.broadcast %199 : vector<8x1xf32> to vector<8x32xf32>
    %201 = arith.subf %195, %200 : vector<8x32xf32>
    %202 = arith.mulf %201, %201 : vector<8x32xf32>
    %cst_75 = arith.constant dense<0.000000e+00> : vector<8xf32>
    %203 = vector.multi_reduction <add>, %202, %cst_75 [1] : vector<8x32xf32> to vector<8xf32>
    %204 = vector.shape_cast %203 : vector<8xf32> to vector<8x1xf32>
    %cst_76 = arith.constant 3.200000e+01 : f32
    %205 = vector.broadcast %cst_76 : f32 to vector<8x1xf32>
    %206 = arith.divf %204, %205 : vector<8x1xf32>
    %207 = vector.broadcast %199 : vector<8x1xf32> to vector<8x32xf32>
    %208 = arith.subf %195, %207 : vector<8x32xf32>
    %cst_77 = arith.constant 9.99999974E-6 : f32
    %209 = vector.broadcast %cst_77 : f32 to vector<8x1xf32>
    %210 = arith.addf %206, %209 : vector<8x1xf32>
    %211 = math.rsqrt %210 : vector<8x1xf32>
    %212 = vector.broadcast %211 : vector<8x1xf32> to vector<8x32xf32>
    %213 = arith.mulf %208, %212 : vector<8x32xf32>
    %c383 = arith.constant 383 : index
    %c0_78 = arith.constant 0 : index
    %214 = vector.load %arg4[%c383, %c0_78] : memref<408x32xf32, #tpu.memory_space<vmem>>, vector<1x32xf32>
    %215 = vector.broadcast %214 : vector<1x32xf32> to vector<8x32xf32>
    %216 = arith.mulf %213, %215 : vector<8x32xf32>
    %c384 = arith.constant 384 : index
    %c0_79 = arith.constant 0 : index
    %217 = vector.load %arg4[%c384, %c0_79] : memref<408x32xf32, #tpu.memory_space<vmem>>, vector<1x32xf32>
    %218 = vector.broadcast %217 : vector<1x32xf32> to vector<8x32xf32>
    %219 = arith.addf %216, %218 : vector<8x32xf32>
    %c64 = arith.constant 64 : index
    %c0_80 = arith.constant 0 : index
    %220 = vector.load %arg3[%c64, %c0_80] : memref<192x192xf32, #tpu.memory_space<vmem>>, vector<32x192xf32>
    %cst_81 = arith.constant dense<0.000000e+00> : vector<16x192xf32>
    %221 = tpu.matmul %15, %220, %cst_81 {dimension_numbers = #tpu.dot_dimension_numbers<[1], [0], [0], [1], [0, 0, 1, 1], [], []>} : vector<16x32xf32>, vector<32x192xf32>, vector<16x192xf32> -> vector<16x192xf32>
    %222 = vector.extract_strided_slice %221 {offsets = [0, 0], sizes = [16, 64], strides = [1, 1]} : vector<16x192xf32> to vector<16x64xf32>
    %223 = vector.extract_strided_slice %221 {offsets = [0, 64], sizes = [16, 64], strides = [1, 1]} : vector<16x192xf32> to vector<16x64xf32>
    %224 = vector.extract_strided_slice %221 {offsets = [0, 128], sizes = [16, 64], strides = [1, 1]} : vector<16x192xf32> to vector<16x64xf32>
    %225 = vector.extract_strided_slice %222 {offsets = [0, 0], sizes = [16, 32], strides = [1, 1]} : vector<16x64xf32> to vector<16x32xf32>
    %226 = vector.extract_strided_slice %223 {offsets = [0, 0], sizes = [16, 32], strides = [1, 1]} : vector<16x64xf32> to vector<16x32xf32>
    %cst_82 = arith.constant dense<0.000000e+00> : vector<16x16xf32>
    %227 = tpu.matmul %225, %226, %cst_82 {dimension_numbers = #tpu.dot_dimension_numbers<[1], [1], [0], [0], [0, 0, 1, 0], [], []>} : vector<16x32xf32>, vector<16x32xf32>, vector<16x16xf32> -> vector<16x16xf32>
    %cst_83 = arith.constant dense<0xFF800000> : vector<16xf32>
    %228 = vector.multi_reduction <maximumf>, %227, %cst_83 [1] : vector<16x16xf32> to vector<16xf32>
    %229 = vector.shape_cast %228 : vector<16xf32> to vector<16x1xf32>
    %230 = vector.broadcast %229 : vector<16x1xf32> to vector<16x16xf32>
    %231 = arith.subf %227, %230 : vector<16x16xf32>
    %232 = math.exp %231 : vector<16x16xf32>
    %cst_84 = arith.constant dense<0.000000e+00> : vector<16xf32>
    %233 = vector.multi_reduction <add>, %232, %cst_84 [1] : vector<16x16xf32> to vector<16xf32>
    %234 = vector.shape_cast %233 : vector<16xf32> to vector<16x1xf32>
    %235 = vector.broadcast %234 : vector<16x1xf32> to vector<16x16xf32>
    %236 = arith.divf %232, %235 : vector<16x16xf32>
    %237 = vector.extract_strided_slice %224 {offsets = [0, 0], sizes = [16, 32], strides = [1, 1]} : vector<16x64xf32> to vector<16x32xf32>
    %cst_85 = arith.constant dense<0.000000e+00> : vector<16x32xf32>
    %238 = tpu.matmul %236, %237, %cst_85 {dimension_numbers = #tpu.dot_dimension_numbers<[1], [0], [0], [1], [0, 0, 1, 1], [], []>} : vector<16x16xf32>, vector<16x32xf32>, vector<16x32xf32> -> vector<16x32xf32>
    %239 = vector.extract_strided_slice %222 {offsets = [0, 32], sizes = [16, 32], strides = [1, 1]} : vector<16x64xf32> to vector<16x32xf32>
    %240 = vector.extract_strided_slice %223 {offsets = [0, 32], sizes = [16, 32], strides = [1, 1]} : vector<16x64xf32> to vector<16x32xf32>
    %cst_86 = arith.constant dense<0.000000e+00> : vector<16x16xf32>
    %241 = tpu.matmul %239, %240, %cst_86 {dimension_numbers = #tpu.dot_dimension_numbers<[1], [1], [0], [0], [0, 0, 1, 0], [], []>} : vector<16x32xf32>, vector<16x32xf32>, vector<16x16xf32> -> vector<16x16xf32>
    %cst_87 = arith.constant dense<0xFF800000> : vector<16xf32>
    %242 = vector.multi_reduction <maximumf>, %241, %cst_87 [1] : vector<16x16xf32> to vector<16xf32>
    %243 = vector.shape_cast %242 : vector<16xf32> to vector<16x1xf32>
    %244 = vector.broadcast %243 : vector<16x1xf32> to vector<16x16xf32>
    %245 = arith.subf %241, %244 : vector<16x16xf32>
    %246 = math.exp %245 : vector<16x16xf32>
    %cst_88 = arith.constant dense<0.000000e+00> : vector<16xf32>
    %247 = vector.multi_reduction <add>, %246, %cst_88 [1] : vector<16x16xf32> to vector<16xf32>
    %248 = vector.shape_cast %247 : vector<16xf32> to vector<16x1xf32>
    %249 = vector.broadcast %248 : vector<16x1xf32> to vector<16x16xf32>
    %250 = arith.divf %246, %249 : vector<16x16xf32>
    %251 = vector.extract_strided_slice %224 {offsets = [0, 32], sizes = [16, 32], strides = [1, 1]} : vector<16x64xf32> to vector<16x32xf32>
    %cst_89 = arith.constant dense<0.000000e+00> : vector<16x32xf32>
    %252 = tpu.matmul %250, %251, %cst_89 {dimension_numbers = #tpu.dot_dimension_numbers<[1], [0], [0], [1], [0, 0, 1, 1], [], []>} : vector<16x16xf32>, vector<16x32xf32>, vector<16x32xf32> -> vector<16x32xf32>
    %253 = arith.addf %238, %252 : vector<16x32xf32>
    %254 = arith.addf %15, %253 : vector<16x32xf32>
    %cst_90 = arith.constant dense<0.000000e+00> : vector<16xf32>
    %255 = vector.multi_reduction <add>, %254, %cst_90 [1] : vector<16x32xf32> to vector<16xf32>
    %256 = vector.shape_cast %255 : vector<16xf32> to vector<16x1xf32>
    %cst_91 = arith.constant 3.200000e+01 : f32
    %257 = vector.broadcast %cst_91 : f32 to vector<16x1xf32>
    %258 = arith.divf %256, %257 : vector<16x1xf32>
    %259 = vector.broadcast %258 : vector<16x1xf32> to vector<16x32xf32>
    %260 = arith.subf %254, %259 : vector<16x32xf32>
    %261 = arith.mulf %260, %260 : vector<16x32xf32>
    %cst_92 = arith.constant dense<0.000000e+00> : vector<16xf32>
    %262 = vector.multi_reduction <add>, %261, %cst_92 [1] : vector<16x32xf32> to vector<16xf32>
    %263 = vector.shape_cast %262 : vector<16xf32> to vector<16x1xf32>
    %cst_93 = arith.constant 3.200000e+01 : f32
    %264 = vector.broadcast %cst_93 : f32 to vector<16x1xf32>
    %265 = arith.divf %263, %264 : vector<16x1xf32>
    %266 = vector.broadcast %258 : vector<16x1xf32> to vector<16x32xf32>
    %267 = arith.subf %254, %266 : vector<16x32xf32>
    %cst_94 = arith.constant 9.99999974E-6 : f32
    %268 = vector.broadcast %cst_94 : f32 to vector<16x1xf32>
    %269 = arith.addf %265, %268 : vector<16x1xf32>
    %270 = math.rsqrt %269 : vector<16x1xf32>
    %271 = vector.broadcast %270 : vector<16x1xf32> to vector<16x32xf32>
    %272 = arith.mulf %267, %271 : vector<16x32xf32>
    %c387 = arith.constant 387 : index
    %c0_95 = arith.constant 0 : index
    %273 = vector.load %arg4[%c387, %c0_95] : memref<408x32xf32, #tpu.memory_space<vmem>>, vector<1x32xf32>
    %274 = vector.broadcast %273 : vector<1x32xf32> to vector<16x32xf32>
    %275 = arith.mulf %272, %274 : vector<16x32xf32>
    %c388 = arith.constant 388 : index
    %c0_96 = arith.constant 0 : index
    %276 = vector.load %arg4[%c388, %c0_96] : memref<408x32xf32, #tpu.memory_space<vmem>>, vector<1x32xf32>
    %277 = vector.broadcast %276 : vector<1x32xf32> to vector<16x32xf32>
    %278 = arith.addf %275, %277 : vector<16x32xf32>
    %c176 = arith.constant 176 : index
    %c0_97 = arith.constant 0 : index
    %279 = vector.load %arg4[%c176, %c0_97] : memref<408x32xf32, #tpu.memory_space<vmem>>, vector<32x32xf32>
    %cst_98 = arith.constant dense<0.000000e+00> : vector<16x32xf32>
    %280 = tpu.matmul %278, %279, %cst_98 {dimension_numbers = #tpu.dot_dimension_numbers<[1], [0], [0], [1], [0, 0, 1, 1], [], []>} : vector<16x32xf32>, vector<32x32xf32>, vector<16x32xf32> -> vector<16x32xf32>
    %c385 = arith.constant 385 : index
    %c0_99 = arith.constant 0 : index
    %281 = vector.load %arg4[%c385, %c0_99] : memref<408x32xf32, #tpu.memory_space<vmem>>, vector<1x32xf32>
    %282 = vector.broadcast %281 : vector<1x32xf32> to vector<16x32xf32>
    %283 = arith.addf %280, %282 : vector<16x32xf32>
    %cst_100 = arith.constant 0.000000e+00 : f32
    %284 = vector.broadcast %cst_100 : f32 to vector<16x32xf32>
    %285 = arith.cmpf ogt, %283, %284 : vector<16x32xf32>
    %cst_101 = arith.constant 0.000000e+00 : f32
    %286 = vector.broadcast %cst_101 : f32 to vector<16x32xf32>
    %287 = arith.minimumf %283, %286 : vector<16x32xf32>
    %288 = math.exp %287 : vector<16x32xf32>
    %cst_102 = arith.constant 1.000000e+00 : f32
    %289 = vector.broadcast %cst_102 : f32 to vector<16x32xf32>
    %290 = arith.subf %288, %289 : vector<16x32xf32>
    %291 = arith.select %285, %283, %290 : vector<16x32xi1>, vector<16x32xf32>
    %c208 = arith.constant 208 : index
    %c0_103 = arith.constant 0 : index
    %292 = vector.load %arg4[%c208, %c0_103] : memref<408x32xf32, #tpu.memory_space<vmem>>, vector<32x32xf32>
    %cst_104 = arith.constant dense<0.000000e+00> : vector<16x32xf32>
    %293 = tpu.matmul %291, %292, %cst_104 {dimension_numbers = #tpu.dot_dimension_numbers<[1], [0], [0], [1], [0, 0, 1, 1], [], []>} : vector<16x32xf32>, vector<32x32xf32>, vector<16x32xf32> -> vector<16x32xf32>
    %c386 = arith.constant 386 : index
    %c0_105 = arith.constant 0 : index
    %294 = vector.load %arg4[%c386, %c0_105] : memref<408x32xf32, #tpu.memory_space<vmem>>, vector<1x32xf32>
    %295 = vector.broadcast %294 : vector<1x32xf32> to vector<16x32xf32>
    %296 = arith.addf %293, %295 : vector<16x32xf32>
    %297 = arith.addf %278, %296 : vector<16x32xf32>
    %cst_106 = arith.constant dense<0.000000e+00> : vector<16xf32>
    %298 = vector.multi_reduction <add>, %297, %cst_106 [1] : vector<16x32xf32> to vector<16xf32>
    %299 = vector.shape_cast %298 : vector<16xf32> to vector<16x1xf32>
    %cst_107 = arith.constant 3.200000e+01 : f32
    %300 = vector.broadcast %cst_107 : f32 to vector<16x1xf32>
    %301 = arith.divf %299, %300 : vector<16x1xf32>
    %302 = vector.broadcast %301 : vector<16x1xf32> to vector<16x32xf32>
    %303 = arith.subf %297, %302 : vector<16x32xf32>
    %304 = arith.mulf %303, %303 : vector<16x32xf32>
    %cst_108 = arith.constant dense<0.000000e+00> : vector<16xf32>
    %305 = vector.multi_reduction <add>, %304, %cst_108 [1] : vector<16x32xf32> to vector<16xf32>
    %306 = vector.shape_cast %305 : vector<16xf32> to vector<16x1xf32>
    %cst_109 = arith.constant 3.200000e+01 : f32
    %307 = vector.broadcast %cst_109 : f32 to vector<16x1xf32>
    %308 = arith.divf %306, %307 : vector<16x1xf32>
    %309 = vector.broadcast %301 : vector<16x1xf32> to vector<16x32xf32>
    %310 = arith.subf %297, %309 : vector<16x32xf32>
    %cst_110 = arith.constant 9.99999974E-6 : f32
    %311 = vector.broadcast %cst_110 : f32 to vector<16x1xf32>
    %312 = arith.addf %308, %311 : vector<16x1xf32>
    %313 = math.rsqrt %312 : vector<16x1xf32>
    %314 = vector.broadcast %313 : vector<16x1xf32> to vector<16x32xf32>
    %315 = arith.mulf %310, %314 : vector<16x32xf32>
    %c389 = arith.constant 389 : index
    %c0_111 = arith.constant 0 : index
    %316 = vector.load %arg4[%c389, %c0_111] : memref<408x32xf32, #tpu.memory_space<vmem>>, vector<1x32xf32>
    %317 = vector.broadcast %316 : vector<1x32xf32> to vector<16x32xf32>
    %318 = arith.mulf %315, %317 : vector<16x32xf32>
    %c390 = arith.constant 390 : index
    %c0_112 = arith.constant 0 : index
    %319 = vector.load %arg4[%c390, %c0_112] : memref<408x32xf32, #tpu.memory_space<vmem>>, vector<1x32xf32>
    %320 = vector.broadcast %319 : vector<1x32xf32> to vector<16x32xf32>
    %321 = arith.addf %318, %320 : vector<16x32xf32>
    %c96 = arith.constant 96 : index
    %c0_113 = arith.constant 0 : index
    %322 = vector.load %arg3[%c96, %c0_113] : memref<192x192xf32, #tpu.memory_space<vmem>>, vector<32x192xf32>
    %cst_114 = arith.constant dense<0.000000e+00> : vector<16x192xf32>
    %323 = tpu.matmul %321, %322, %cst_114 {dimension_numbers = #tpu.dot_dimension_numbers<[1], [0], [0], [1], [0, 0, 1, 1], [], []>} : vector<16x32xf32>, vector<32x192xf32>, vector<16x192xf32> -> vector<16x192xf32>
    %324 = vector.extract_strided_slice %323 {offsets = [0, 0], sizes = [16, 64], strides = [1, 1]} : vector<16x192xf32> to vector<16x64xf32>
    %325 = vector.extract_strided_slice %323 {offsets = [0, 64], sizes = [16, 64], strides = [1, 1]} : vector<16x192xf32> to vector<16x64xf32>
    %326 = vector.extract_strided_slice %323 {offsets = [0, 128], sizes = [16, 64], strides = [1, 1]} : vector<16x192xf32> to vector<16x64xf32>
    %327 = vector.extract_strided_slice %324 {offsets = [0, 0], sizes = [16, 32], strides = [1, 1]} : vector<16x64xf32> to vector<16x32xf32>
    %328 = vector.extract_strided_slice %325 {offsets = [0, 0], sizes = [16, 32], strides = [1, 1]} : vector<16x64xf32> to vector<16x32xf32>
    %cst_115 = arith.constant dense<0.000000e+00> : vector<16x16xf32>
    %329 = tpu.matmul %327, %328, %cst_115 {dimension_numbers = #tpu.dot_dimension_numbers<[1], [1], [0], [0], [0, 0, 1, 0], [], []>} : vector<16x32xf32>, vector<16x32xf32>, vector<16x16xf32> -> vector<16x16xf32>
    %cst_116 = arith.constant dense<0xFF800000> : vector<16xf32>
    %330 = vector.multi_reduction <maximumf>, %329, %cst_116 [1] : vector<16x16xf32> to vector<16xf32>
    %331 = vector.shape_cast %330 : vector<16xf32> to vector<16x1xf32>
    %332 = vector.broadcast %331 : vector<16x1xf32> to vector<16x16xf32>
    %333 = arith.subf %329, %332 : vector<16x16xf32>
    %334 = math.exp %333 : vector<16x16xf32>
    %cst_117 = arith.constant dense<0.000000e+00> : vector<16xf32>
    %335 = vector.multi_reduction <add>, %334, %cst_117 [1] : vector<16x16xf32> to vector<16xf32>
    %336 = vector.shape_cast %335 : vector<16xf32> to vector<16x1xf32>
    %337 = vector.broadcast %336 : vector<16x1xf32> to vector<16x16xf32>
    %338 = arith.divf %334, %337 : vector<16x16xf32>
    %339 = vector.extract_strided_slice %326 {offsets = [0, 0], sizes = [16, 32], strides = [1, 1]} : vector<16x64xf32> to vector<16x32xf32>
    %cst_118 = arith.constant dense<0.000000e+00> : vector<16x32xf32>
    %340 = tpu.matmul %338, %339, %cst_118 {dimension_numbers = #tpu.dot_dimension_numbers<[1], [0], [0], [1], [0, 0, 1, 1], [], []>} : vector<16x16xf32>, vector<16x32xf32>, vector<16x32xf32> -> vector<16x32xf32>
    %341 = vector.extract_strided_slice %324 {offsets = [0, 32], sizes = [16, 32], strides = [1, 1]} : vector<16x64xf32> to vector<16x32xf32>
    %342 = vector.extract_strided_slice %325 {offsets = [0, 32], sizes = [16, 32], strides = [1, 1]} : vector<16x64xf32> to vector<16x32xf32>
    %cst_119 = arith.constant dense<0.000000e+00> : vector<16x16xf32>
    %343 = tpu.matmul %341, %342, %cst_119 {dimension_numbers = #tpu.dot_dimension_numbers<[1], [1], [0], [0], [0, 0, 1, 0], [], []>} : vector<16x32xf32>, vector<16x32xf32>, vector<16x16xf32> -> vector<16x16xf32>
    %cst_120 = arith.constant dense<0xFF800000> : vector<16xf32>
    %344 = vector.multi_reduction <maximumf>, %343, %cst_120 [1] : vector<16x16xf32> to vector<16xf32>
    %345 = vector.shape_cast %344 : vector<16xf32> to vector<16x1xf32>
    %346 = vector.broadcast %345 : vector<16x1xf32> to vector<16x16xf32>
    %347 = arith.subf %343, %346 : vector<16x16xf32>
    %348 = math.exp %347 : vector<16x16xf32>
    %cst_121 = arith.constant dense<0.000000e+00> : vector<16xf32>
    %349 = vector.multi_reduction <add>, %348, %cst_121 [1] : vector<16x16xf32> to vector<16xf32>
    %350 = vector.shape_cast %349 : vector<16xf32> to vector<16x1xf32>
    %351 = vector.broadcast %350 : vector<16x1xf32> to vector<16x16xf32>
    %352 = arith.divf %348, %351 : vector<16x16xf32>
    %353 = vector.extract_strided_slice %326 {offsets = [0, 32], sizes = [16, 32], strides = [1, 1]} : vector<16x64xf32> to vector<16x32xf32>
    %cst_122 = arith.constant dense<0.000000e+00> : vector<16x32xf32>
    %354 = tpu.matmul %352, %353, %cst_122 {dimension_numbers = #tpu.dot_dimension_numbers<[1], [0], [0], [1], [0, 0, 1, 1], [], []>} : vector<16x16xf32>, vector<16x32xf32>, vector<16x32xf32> -> vector<16x32xf32>
    %355 = arith.addf %340, %354 : vector<16x32xf32>
    %356 = arith.addf %321, %355 : vector<16x32xf32>
    %cst_123 = arith.constant dense<0.000000e+00> : vector<16xf32>
    %357 = vector.multi_reduction <add>, %356, %cst_123 [1] : vector<16x32xf32> to vector<16xf32>
    %358 = vector.shape_cast %357 : vector<16xf32> to vector<16x1xf32>
    %cst_124 = arith.constant 3.200000e+01 : f32
    %359 = vector.broadcast %cst_124 : f32 to vector<16x1xf32>
    %360 = arith.divf %358, %359 : vector<16x1xf32>
    %361 = vector.broadcast %360 : vector<16x1xf32> to vector<16x32xf32>
    %362 = arith.subf %356, %361 : vector<16x32xf32>
    %363 = arith.mulf %362, %362 : vector<16x32xf32>
    %cst_125 = arith.constant dense<0.000000e+00> : vector<16xf32>
    %364 = vector.multi_reduction <add>, %363, %cst_125 [1] : vector<16x32xf32> to vector<16xf32>
    %365 = vector.shape_cast %364 : vector<16xf32> to vector<16x1xf32>
    %cst_126 = arith.constant 3.200000e+01 : f32
    %366 = vector.broadcast %cst_126 : f32 to vector<16x1xf32>
    %367 = arith.divf %365, %366 : vector<16x1xf32>
    %368 = vector.broadcast %360 : vector<16x1xf32> to vector<16x32xf32>
    %369 = arith.subf %356, %368 : vector<16x32xf32>
    %cst_127 = arith.constant 9.99999974E-6 : f32
    %370 = vector.broadcast %cst_127 : f32 to vector<16x1xf32>
    %371 = arith.addf %367, %370 : vector<16x1xf32>
    %372 = math.rsqrt %371 : vector<16x1xf32>
    %373 = vector.broadcast %372 : vector<16x1xf32> to vector<16x32xf32>
    %374 = arith.mulf %369, %373 : vector<16x32xf32>
    %c393 = arith.constant 393 : index
    %c0_128 = arith.constant 0 : index
    %375 = vector.load %arg4[%c393, %c0_128] : memref<408x32xf32, #tpu.memory_space<vmem>>, vector<1x32xf32>
    %376 = vector.broadcast %375 : vector<1x32xf32> to vector<16x32xf32>
    %377 = arith.mulf %374, %376 : vector<16x32xf32>
    %c394 = arith.constant 394 : index
    %c0_129 = arith.constant 0 : index
    %378 = vector.load %arg4[%c394, %c0_129] : memref<408x32xf32, #tpu.memory_space<vmem>>, vector<1x32xf32>
    %379 = vector.broadcast %378 : vector<1x32xf32> to vector<16x32xf32>
    %380 = arith.addf %377, %379 : vector<16x32xf32>
    %c240 = arith.constant 240 : index
    %c0_130 = arith.constant 0 : index
    %381 = vector.load %arg4[%c240, %c0_130] : memref<408x32xf32, #tpu.memory_space<vmem>>, vector<32x32xf32>
    %cst_131 = arith.constant dense<0.000000e+00> : vector<16x32xf32>
    %382 = tpu.matmul %380, %381, %cst_131 {dimension_numbers = #tpu.dot_dimension_numbers<[1], [0], [0], [1], [0, 0, 1, 1], [], []>} : vector<16x32xf32>, vector<32x32xf32>, vector<16x32xf32> -> vector<16x32xf32>
    %c391 = arith.constant 391 : index
    %c0_132 = arith.constant 0 : index
    %383 = vector.load %arg4[%c391, %c0_132] : memref<408x32xf32, #tpu.memory_space<vmem>>, vector<1x32xf32>
    %384 = vector.broadcast %383 : vector<1x32xf32> to vector<16x32xf32>
    %385 = arith.addf %382, %384 : vector<16x32xf32>
    %cst_133 = arith.constant 0.000000e+00 : f32
    %386 = vector.broadcast %cst_133 : f32 to vector<16x32xf32>
    %387 = arith.cmpf ogt, %385, %386 : vector<16x32xf32>
    %cst_134 = arith.constant 0.000000e+00 : f32
    %388 = vector.broadcast %cst_134 : f32 to vector<16x32xf32>
    %389 = arith.minimumf %385, %388 : vector<16x32xf32>
    %390 = math.exp %389 : vector<16x32xf32>
    %cst_135 = arith.constant 1.000000e+00 : f32
    %391 = vector.broadcast %cst_135 : f32 to vector<16x32xf32>
    %392 = arith.subf %390, %391 : vector<16x32xf32>
    %393 = arith.select %387, %385, %392 : vector<16x32xi1>, vector<16x32xf32>
    %c272 = arith.constant 272 : index
    %c0_136 = arith.constant 0 : index
    %394 = vector.load %arg4[%c272, %c0_136] : memref<408x32xf32, #tpu.memory_space<vmem>>, vector<32x32xf32>
    %cst_137 = arith.constant dense<0.000000e+00> : vector<16x32xf32>
    %395 = tpu.matmul %393, %394, %cst_137 {dimension_numbers = #tpu.dot_dimension_numbers<[1], [0], [0], [1], [0, 0, 1, 1], [], []>} : vector<16x32xf32>, vector<32x32xf32>, vector<16x32xf32> -> vector<16x32xf32>
    %c392 = arith.constant 392 : index
    %c0_138 = arith.constant 0 : index
    %396 = vector.load %arg4[%c392, %c0_138] : memref<408x32xf32, #tpu.memory_space<vmem>>, vector<1x32xf32>
    %397 = vector.broadcast %396 : vector<1x32xf32> to vector<16x32xf32>
    %398 = arith.addf %395, %397 : vector<16x32xf32>
    %399 = arith.addf %380, %398 : vector<16x32xf32>
    %cst_139 = arith.constant dense<0.000000e+00> : vector<16xf32>
    %400 = vector.multi_reduction <add>, %399, %cst_139 [1] : vector<16x32xf32> to vector<16xf32>
    %401 = vector.shape_cast %400 : vector<16xf32> to vector<16x1xf32>
    %cst_140 = arith.constant 3.200000e+01 : f32
    %402 = vector.broadcast %cst_140 : f32 to vector<16x1xf32>
    %403 = arith.divf %401, %402 : vector<16x1xf32>
    %404 = vector.broadcast %403 : vector<16x1xf32> to vector<16x32xf32>
    %405 = arith.subf %399, %404 : vector<16x32xf32>
    %406 = arith.mulf %405, %405 : vector<16x32xf32>
    %cst_141 = arith.constant dense<0.000000e+00> : vector<16xf32>
    %407 = vector.multi_reduction <add>, %406, %cst_141 [1] : vector<16x32xf32> to vector<16xf32>
    %408 = vector.shape_cast %407 : vector<16xf32> to vector<16x1xf32>
    %cst_142 = arith.constant 3.200000e+01 : f32
    %409 = vector.broadcast %cst_142 : f32 to vector<16x1xf32>
    %410 = arith.divf %408, %409 : vector<16x1xf32>
    %411 = vector.broadcast %403 : vector<16x1xf32> to vector<16x32xf32>
    %412 = arith.subf %399, %411 : vector<16x32xf32>
    %cst_143 = arith.constant 9.99999974E-6 : f32
    %413 = vector.broadcast %cst_143 : f32 to vector<16x1xf32>
    %414 = arith.addf %410, %413 : vector<16x1xf32>
    %415 = math.rsqrt %414 : vector<16x1xf32>
    %416 = vector.broadcast %415 : vector<16x1xf32> to vector<16x32xf32>
    %417 = arith.mulf %412, %416 : vector<16x32xf32>
    %c395 = arith.constant 395 : index
    %c0_144 = arith.constant 0 : index
    %418 = vector.load %arg4[%c395, %c0_144] : memref<408x32xf32, #tpu.memory_space<vmem>>, vector<1x32xf32>
    %419 = vector.broadcast %418 : vector<1x32xf32> to vector<16x32xf32>
    %420 = arith.mulf %417, %419 : vector<16x32xf32>
    %c396 = arith.constant 396 : index
    %c0_145 = arith.constant 0 : index
    %421 = vector.load %arg4[%c396, %c0_145] : memref<408x32xf32, #tpu.memory_space<vmem>>, vector<1x32xf32>
    %422 = vector.broadcast %421 : vector<1x32xf32> to vector<16x32xf32>
    %423 = arith.addf %420, %422 : vector<16x32xf32>
    %424 = tpu.concatenate %219, %423 in 0 : vector<8x32xf32>, vector<16x32xf32> -> vector<24x32xf32>
    %cst_146 = arith.constant dense<0.000000e+00> : vector<24xf32>
    %425 = vector.multi_reduction <add>, %424, %cst_146 [1] : vector<24x32xf32> to vector<24xf32>
    %426 = vector.shape_cast %425 : vector<24xf32> to vector<24x1xf32>
    %cst_147 = arith.constant 3.200000e+01 : f32
    %427 = vector.broadcast %cst_147 : f32 to vector<24x1xf32>
    %428 = arith.divf %426, %427 : vector<24x1xf32>
    %429 = vector.broadcast %428 : vector<24x1xf32> to vector<24x32xf32>
    %430 = arith.subf %424, %429 : vector<24x32xf32>
    %431 = arith.mulf %430, %430 : vector<24x32xf32>
    %cst_148 = arith.constant dense<0.000000e+00> : vector<24xf32>
    %432 = vector.multi_reduction <add>, %431, %cst_148 [1] : vector<24x32xf32> to vector<24xf32>
    %433 = vector.shape_cast %432 : vector<24xf32> to vector<24x1xf32>
    %cst_149 = arith.constant 3.200000e+01 : f32
    %434 = vector.broadcast %cst_149 : f32 to vector<24x1xf32>
    %435 = arith.divf %433, %434 : vector<24x1xf32>
    %436 = vector.broadcast %428 : vector<24x1xf32> to vector<24x32xf32>
    %437 = arith.subf %424, %436 : vector<24x32xf32>
    %cst_150 = arith.constant 9.99999974E-6 : f32
    %438 = vector.broadcast %cst_150 : f32 to vector<24x1xf32>
    %439 = arith.addf %435, %438 : vector<24x1xf32>
    %440 = math.rsqrt %439 : vector<24x1xf32>
    %441 = vector.broadcast %440 : vector<24x1xf32> to vector<24x32xf32>
    %442 = arith.mulf %437, %441 : vector<24x32xf32>
    %c371 = arith.constant 371 : index
    %c0_151 = arith.constant 0 : index
    %443 = vector.load %arg4[%c371, %c0_151] : memref<408x32xf32, #tpu.memory_space<vmem>>, vector<1x32xf32>
    %444 = vector.broadcast %443 : vector<1x32xf32> to vector<24x32xf32>
    %445 = arith.mulf %442, %444 : vector<24x32xf32>
    %c372 = arith.constant 372 : index
    %c0_152 = arith.constant 0 : index
    %446 = vector.load %arg4[%c372, %c0_152] : memref<408x32xf32, #tpu.memory_space<vmem>>, vector<1x32xf32>
    %447 = vector.broadcast %446 : vector<1x32xf32> to vector<24x32xf32>
    %448 = arith.addf %445, %447 : vector<24x32xf32>
    %449 = vector.extract_strided_slice %3 {offsets = [12, 0], sizes = [4, 8], strides = [1, 1]} : vector<16x8xf32> to vector<4x8xf32>
    %c24 = arith.constant 24 : index
    %c0_153 = arith.constant 0 : index
    %450 = vector.load %arg4[%c24, %c0_153] : memref<408x32xf32, #tpu.memory_space<vmem>>, vector<8x32xf32>
    %cst_154 = arith.constant dense<0.000000e+00> : vector<4x32xf32>
    %451 = tpu.matmul %449, %450, %cst_154 {dimension_numbers = #tpu.dot_dimension_numbers<[1], [0], [0], [1], [0, 0, 1, 1], [], []>} : vector<4x8xf32>, vector<8x32xf32>, vector<4x32xf32> -> vector<4x32xf32>
    %c370 = arith.constant 370 : index
    %c0_155 = arith.constant 0 : index
    %452 = vector.load %arg4[%c370, %c0_155] : memref<408x32xf32, #tpu.memory_space<vmem>>, vector<1x32xf32>
    %453 = vector.broadcast %452 : vector<1x32xf32> to vector<4x32xf32>
    %454 = arith.addf %451, %453 : vector<4x32xf32>
    %c128 = arith.constant 128 : index
    %c0_156 = arith.constant 0 : index
    %455 = vector.load %arg3[%c128, %c0_156] : memref<192x192xf32, #tpu.memory_space<vmem>>, vector<32x192xf32>
    %cst_157 = arith.constant dense<0.000000e+00> : vector<4x192xf32>
    %456 = tpu.matmul %454, %455, %cst_157 {dimension_numbers = #tpu.dot_dimension_numbers<[1], [0], [0], [1], [0, 0, 1, 1], [], []>} : vector<4x32xf32>, vector<32x192xf32>, vector<4x192xf32> -> vector<4x192xf32>
    %457 = vector.extract_strided_slice %456 {offsets = [0, 0], sizes = [4, 64], strides = [1, 1]} : vector<4x192xf32> to vector<4x64xf32>
    %458 = vector.extract_strided_slice %456 {offsets = [0, 64], sizes = [4, 64], strides = [1, 1]} : vector<4x192xf32> to vector<4x64xf32>
    %459 = vector.extract_strided_slice %456 {offsets = [0, 128], sizes = [4, 64], strides = [1, 1]} : vector<4x192xf32> to vector<4x64xf32>
    %460 = vector.extract_strided_slice %457 {offsets = [0, 0], sizes = [4, 32], strides = [1, 1]} : vector<4x64xf32> to vector<4x32xf32>
    %461 = vector.extract_strided_slice %458 {offsets = [0, 0], sizes = [4, 32], strides = [1, 1]} : vector<4x64xf32> to vector<4x32xf32>
    %cst_158 = arith.constant dense<0.000000e+00> : vector<4x4xf32>
    %462 = tpu.matmul %460, %461, %cst_158 {dimension_numbers = #tpu.dot_dimension_numbers<[1], [1], [0], [0], [0, 0, 1, 0], [], []>} : vector<4x32xf32>, vector<4x32xf32>, vector<4x4xf32> -> vector<4x4xf32>
    %cst_159 = arith.constant dense<0xFF800000> : vector<4xf32>
    %463 = vector.multi_reduction <maximumf>, %462, %cst_159 [1] : vector<4x4xf32> to vector<4xf32>
    %464 = vector.shape_cast %463 : vector<4xf32> to vector<4x1xf32>
    %465 = vector.broadcast %464 : vector<4x1xf32> to vector<4x4xf32>
    %466 = arith.subf %462, %465 : vector<4x4xf32>
    %467 = math.exp %466 : vector<4x4xf32>
    %cst_160 = arith.constant dense<0.000000e+00> : vector<4xf32>
    %468 = vector.multi_reduction <add>, %467, %cst_160 [1] : vector<4x4xf32> to vector<4xf32>
    %469 = vector.shape_cast %468 : vector<4xf32> to vector<4x1xf32>
    %470 = vector.broadcast %469 : vector<4x1xf32> to vector<4x4xf32>
    %471 = arith.divf %467, %470 : vector<4x4xf32>
    %472 = vector.extract_strided_slice %459 {offsets = [0, 0], sizes = [4, 32], strides = [1, 1]} : vector<4x64xf32> to vector<4x32xf32>
    %cst_161 = arith.constant dense<0.000000e+00> : vector<4x32xf32>
    %473 = tpu.matmul %471, %472, %cst_161 {dimension_numbers = #tpu.dot_dimension_numbers<[1], [0], [0], [1], [0, 0, 1, 1], [], []>} : vector<4x4xf32>, vector<4x32xf32>, vector<4x32xf32> -> vector<4x32xf32>
    %474 = vector.extract_strided_slice %457 {offsets = [0, 32], sizes = [4, 32], strides = [1, 1]} : vector<4x64xf32> to vector<4x32xf32>
    %475 = vector.extract_strided_slice %458 {offsets = [0, 32], sizes = [4, 32], strides = [1, 1]} : vector<4x64xf32> to vector<4x32xf32>
    %cst_162 = arith.constant dense<0.000000e+00> : vector<4x4xf32>
    %476 = tpu.matmul %474, %475, %cst_162 {dimension_numbers = #tpu.dot_dimension_numbers<[1], [1], [0], [0], [0, 0, 1, 0], [], []>} : vector<4x32xf32>, vector<4x32xf32>, vector<4x4xf32> -> vector<4x4xf32>
    %cst_163 = arith.constant dense<0xFF800000> : vector<4xf32>
    %477 = vector.multi_reduction <maximumf>, %476, %cst_163 [1] : vector<4x4xf32> to vector<4xf32>
    %478 = vector.shape_cast %477 : vector<4xf32> to vector<4x1xf32>
    %479 = vector.broadcast %478 : vector<4x1xf32> to vector<4x4xf32>
    %480 = arith.subf %476, %479 : vector<4x4xf32>
    %481 = math.exp %480 : vector<4x4xf32>
    %cst_164 = arith.constant dense<0.000000e+00> : vector<4xf32>
    %482 = vector.multi_reduction <add>, %481, %cst_164 [1] : vector<4x4xf32> to vector<4xf32>
    %483 = vector.shape_cast %482 : vector<4xf32> to vector<4x1xf32>
    %484 = vector.broadcast %483 : vector<4x1xf32> to vector<4x4xf32>
    %485 = arith.divf %481, %484 : vector<4x4xf32>
    %486 = vector.extract_strided_slice %459 {offsets = [0, 32], sizes = [4, 32], strides = [1, 1]} : vector<4x64xf32> to vector<4x32xf32>
    %cst_165 = arith.constant dense<0.000000e+00> : vector<4x32xf32>
    %487 = tpu.matmul %485, %486, %cst_165 {dimension_numbers = #tpu.dot_dimension_numbers<[1], [0], [0], [1], [0, 0, 1, 1], [], []>} : vector<4x4xf32>, vector<4x32xf32>, vector<4x32xf32> -> vector<4x32xf32>
    %488 = arith.addf %473, %487 : vector<4x32xf32>
    %489 = arith.addf %488, %454 : vector<4x32xf32>
    %cst_166 = arith.constant dense<0.000000e+00> : vector<4xf32>
    %490 = vector.multi_reduction <add>, %489, %cst_166 [1] : vector<4x32xf32> to vector<4xf32>
    %491 = vector.shape_cast %490 : vector<4xf32> to vector<4x1xf32>
    %cst_167 = arith.constant 3.200000e+01 : f32
    %492 = vector.broadcast %cst_167 : f32 to vector<4x1xf32>
    %493 = arith.divf %491, %492 : vector<4x1xf32>
    %494 = vector.broadcast %493 : vector<4x1xf32> to vector<4x32xf32>
    %495 = arith.subf %489, %494 : vector<4x32xf32>
    %496 = arith.mulf %495, %495 : vector<4x32xf32>
    %cst_168 = arith.constant dense<0.000000e+00> : vector<4xf32>
    %497 = vector.multi_reduction <add>, %496, %cst_168 [1] : vector<4x32xf32> to vector<4xf32>
    %498 = vector.shape_cast %497 : vector<4xf32> to vector<4x1xf32>
    %cst_169 = arith.constant 3.200000e+01 : f32
    %499 = vector.broadcast %cst_169 : f32 to vector<4x1xf32>
    %500 = arith.divf %498, %499 : vector<4x1xf32>
    %501 = vector.broadcast %493 : vector<4x1xf32> to vector<4x32xf32>
    %502 = arith.subf %489, %501 : vector<4x32xf32>
    %cst_170 = arith.constant 9.99999974E-6 : f32
    %503 = vector.broadcast %cst_170 : f32 to vector<4x1xf32>
    %504 = arith.addf %500, %503 : vector<4x1xf32>
    %505 = math.rsqrt %504 : vector<4x1xf32>
    %506 = vector.broadcast %505 : vector<4x1xf32> to vector<4x32xf32>
    %507 = arith.mulf %502, %506 : vector<4x32xf32>
    %c399 = arith.constant 399 : index
    %c0_171 = arith.constant 0 : index
    %508 = vector.load %arg4[%c399, %c0_171] : memref<408x32xf32, #tpu.memory_space<vmem>>, vector<1x32xf32>
    %509 = vector.broadcast %508 : vector<1x32xf32> to vector<4x32xf32>
    %510 = arith.mulf %507, %509 : vector<4x32xf32>
    %c400 = arith.constant 400 : index
    %c0_172 = arith.constant 0 : index
    %511 = vector.load %arg4[%c400, %c0_172] : memref<408x32xf32, #tpu.memory_space<vmem>>, vector<1x32xf32>
    %512 = vector.broadcast %511 : vector<1x32xf32> to vector<4x32xf32>
    %513 = arith.addf %510, %512 : vector<4x32xf32>
    %c160 = arith.constant 160 : index
    %c0_173 = arith.constant 0 : index
    %514 = vector.load %arg3[%c160, %c0_173] : memref<192x192xf32, #tpu.memory_space<vmem>>, vector<32x192xf32>
    %515 = vector.extract_strided_slice %514 {offsets = [0, 0], sizes = [32, 64], strides = [1, 1]} : vector<32x192xf32> to vector<32x64xf32>
    %cst_174 = arith.constant dense<0.000000e+00> : vector<4x64xf32>
    %516 = tpu.matmul %513, %515, %cst_174 {dimension_numbers = #tpu.dot_dimension_numbers<[1], [0], [0], [1], [0, 0, 1, 1], [], []>} : vector<4x32xf32>, vector<32x64xf32>, vector<4x64xf32> -> vector<4x64xf32>
    %517 = vector.extract_strided_slice %514 {offsets = [0, 64], sizes = [32, 128], strides = [1, 1]} : vector<32x192xf32> to vector<32x128xf32>
    %cst_175 = arith.constant dense<0.000000e+00> : vector<24x128xf32>
    %518 = tpu.matmul %448, %517, %cst_175 {dimension_numbers = #tpu.dot_dimension_numbers<[1], [0], [0], [1], [0, 0, 1, 1], [], []>} : vector<24x32xf32>, vector<32x128xf32>, vector<24x128xf32> -> vector<24x128xf32>
    %519 = vector.extract_strided_slice %518 {offsets = [0, 0], sizes = [24, 64], strides = [1, 1]} : vector<24x128xf32> to vector<24x64xf32>
    %520 = vector.extract_strided_slice %518 {offsets = [0, 64], sizes = [24, 64], strides = [1, 1]} : vector<24x128xf32> to vector<24x64xf32>
    %521 = vector.extract_strided_slice %516 {offsets = [0, 0], sizes = [4, 32], strides = [1, 1]} : vector<4x64xf32> to vector<4x32xf32>
    %522 = vector.extract_strided_slice %519 {offsets = [0, 0], sizes = [24, 32], strides = [1, 1]} : vector<24x64xf32> to vector<24x32xf32>
    %cst_176 = arith.constant dense<0.000000e+00> : vector<4x24xf32>
    %523 = tpu.matmul %521, %522, %cst_176 {dimension_numbers = #tpu.dot_dimension_numbers<[1], [1], [0], [0], [0, 0, 1, 0], [], []>} : vector<4x32xf32>, vector<24x32xf32>, vector<4x24xf32> -> vector<4x24xf32>
    %cst_177 = arith.constant dense<0xFF800000> : vector<4xf32>
    %524 = vector.multi_reduction <maximumf>, %523, %cst_177 [1] : vector<4x24xf32> to vector<4xf32>
    %525 = vector.shape_cast %524 : vector<4xf32> to vector<4x1xf32>
    %526 = vector.broadcast %525 : vector<4x1xf32> to vector<4x24xf32>
    %527 = arith.subf %523, %526 : vector<4x24xf32>
    %528 = math.exp %527 : vector<4x24xf32>
    %cst_178 = arith.constant dense<0.000000e+00> : vector<4xf32>
    %529 = vector.multi_reduction <add>, %528, %cst_178 [1] : vector<4x24xf32> to vector<4xf32>
    %530 = vector.shape_cast %529 : vector<4xf32> to vector<4x1xf32>
    %531 = vector.broadcast %530 : vector<4x1xf32> to vector<4x24xf32>
    %532 = arith.divf %528, %531 : vector<4x24xf32>
    %533 = vector.extract_strided_slice %520 {offsets = [0, 0], sizes = [24, 32], strides = [1, 1]} : vector<24x64xf32> to vector<24x32xf32>
    %cst_179 = arith.constant dense<0.000000e+00> : vector<4x32xf32>
    %534 = tpu.matmul %532, %533, %cst_179 {dimension_numbers = #tpu.dot_dimension_numbers<[1], [0], [0], [1], [0, 0, 1, 1], [], []>} : vector<4x24xf32>, vector<24x32xf32>, vector<4x32xf32> -> vector<4x32xf32>
    %535 = vector.extract_strided_slice %516 {offsets = [0, 32], sizes = [4, 32], strides = [1, 1]} : vector<4x64xf32> to vector<4x32xf32>
    %536 = vector.extract_strided_slice %519 {offsets = [0, 32], sizes = [24, 32], strides = [1, 1]} : vector<24x64xf32> to vector<24x32xf32>
    %cst_180 = arith.constant dense<0.000000e+00> : vector<4x24xf32>
    %537 = tpu.matmul %535, %536, %cst_180 {dimension_numbers = #tpu.dot_dimension_numbers<[1], [1], [0], [0], [0, 0, 1, 0], [], []>} : vector<4x32xf32>, vector<24x32xf32>, vector<4x24xf32> -> vector<4x24xf32>
    %cst_181 = arith.constant dense<0xFF800000> : vector<4xf32>
    %538 = vector.multi_reduction <maximumf>, %537, %cst_181 [1] : vector<4x24xf32> to vector<4xf32>
    %539 = vector.shape_cast %538 : vector<4xf32> to vector<4x1xf32>
    %540 = vector.broadcast %539 : vector<4x1xf32> to vector<4x24xf32>
    %541 = arith.subf %537, %540 : vector<4x24xf32>
    %542 = math.exp %541 : vector<4x24xf32>
    %cst_182 = arith.constant dense<0.000000e+00> : vector<4xf32>
    %543 = vector.multi_reduction <add>, %542, %cst_182 [1] : vector<4x24xf32> to vector<4xf32>
    %544 = vector.shape_cast %543 : vector<4xf32> to vector<4x1xf32>
    %545 = vector.broadcast %544 : vector<4x1xf32> to vector<4x24xf32>
    %546 = arith.divf %542, %545 : vector<4x24xf32>
    %547 = vector.extract_strided_slice %520 {offsets = [0, 32], sizes = [24, 32], strides = [1, 1]} : vector<24x64xf32> to vector<24x32xf32>
    %cst_183 = arith.constant dense<0.000000e+00> : vector<4x32xf32>
    %548 = tpu.matmul %546, %547, %cst_183 {dimension_numbers = #tpu.dot_dimension_numbers<[1], [0], [0], [1], [0, 0, 1, 1], [], []>} : vector<4x24xf32>, vector<24x32xf32>, vector<4x32xf32> -> vector<4x32xf32>
    %549 = arith.addf %534, %548 : vector<4x32xf32>
    %550 = arith.addf %549, %513 : vector<4x32xf32>
    %cst_184 = arith.constant dense<0.000000e+00> : vector<4xf32>
    %551 = vector.multi_reduction <add>, %550, %cst_184 [1] : vector<4x32xf32> to vector<4xf32>
    %552 = vector.shape_cast %551 : vector<4xf32> to vector<4x1xf32>
    %cst_185 = arith.constant 3.200000e+01 : f32
    %553 = vector.broadcast %cst_185 : f32 to vector<4x1xf32>
    %554 = arith.divf %552, %553 : vector<4x1xf32>
    %555 = vector.broadcast %554 : vector<4x1xf32> to vector<4x32xf32>
    %556 = arith.subf %550, %555 : vector<4x32xf32>
    %557 = arith.mulf %556, %556 : vector<4x32xf32>
    %cst_186 = arith.constant dense<0.000000e+00> : vector<4xf32>
    %558 = vector.multi_reduction <add>, %557, %cst_186 [1] : vector<4x32xf32> to vector<4xf32>
    %559 = vector.shape_cast %558 : vector<4xf32> to vector<4x1xf32>
    %cst_187 = arith.constant 3.200000e+01 : f32
    %560 = vector.broadcast %cst_187 : f32 to vector<4x1xf32>
    %561 = arith.divf %559, %560 : vector<4x1xf32>
    %562 = vector.broadcast %554 : vector<4x1xf32> to vector<4x32xf32>
    %563 = arith.subf %550, %562 : vector<4x32xf32>
    %cst_188 = arith.constant 9.99999974E-6 : f32
    %564 = vector.broadcast %cst_188 : f32 to vector<4x1xf32>
    %565 = arith.addf %561, %564 : vector<4x1xf32>
    %566 = math.rsqrt %565 : vector<4x1xf32>
    %567 = vector.broadcast %566 : vector<4x1xf32> to vector<4x32xf32>
    %568 = arith.mulf %563, %567 : vector<4x32xf32>
    %c401 = arith.constant 401 : index
    %c0_189 = arith.constant 0 : index
    %569 = vector.load %arg4[%c401, %c0_189] : memref<408x32xf32, #tpu.memory_space<vmem>>, vector<1x32xf32>
    %570 = vector.broadcast %569 : vector<1x32xf32> to vector<4x32xf32>
    %571 = arith.mulf %568, %570 : vector<4x32xf32>
    %c402 = arith.constant 402 : index
    %c0_190 = arith.constant 0 : index
    %572 = vector.load %arg4[%c402, %c0_190] : memref<408x32xf32, #tpu.memory_space<vmem>>, vector<1x32xf32>
    %573 = vector.broadcast %572 : vector<1x32xf32> to vector<4x32xf32>
    %574 = arith.addf %571, %573 : vector<4x32xf32>
    %c304 = arith.constant 304 : index
    %c0_191 = arith.constant 0 : index
    %575 = vector.load %arg4[%c304, %c0_191] : memref<408x32xf32, #tpu.memory_space<vmem>>, vector<32x32xf32>
    %cst_192 = arith.constant dense<0.000000e+00> : vector<4x32xf32>
    %576 = tpu.matmul %574, %575, %cst_192 {dimension_numbers = #tpu.dot_dimension_numbers<[1], [0], [0], [1], [0, 0, 1, 1], [], []>} : vector<4x32xf32>, vector<32x32xf32>, vector<4x32xf32> -> vector<4x32xf32>
    %c397 = arith.constant 397 : index
    %c0_193 = arith.constant 0 : index
    %577 = vector.load %arg4[%c397, %c0_193] : memref<408x32xf32, #tpu.memory_space<vmem>>, vector<1x32xf32>
    %578 = vector.broadcast %577 : vector<1x32xf32> to vector<4x32xf32>
    %579 = arith.addf %576, %578 : vector<4x32xf32>
    %cst_194 = arith.constant 0.000000e+00 : f32
    %580 = vector.broadcast %cst_194 : f32 to vector<4x32xf32>
    %581 = arith.cmpf ogt, %579, %580 : vector<4x32xf32>
    %cst_195 = arith.constant 0.000000e+00 : f32
    %582 = vector.broadcast %cst_195 : f32 to vector<4x32xf32>
    %583 = arith.minimumf %579, %582 : vector<4x32xf32>
    %584 = math.exp %583 : vector<4x32xf32>
    %cst_196 = arith.constant 1.000000e+00 : f32
    %585 = vector.broadcast %cst_196 : f32 to vector<4x32xf32>
    %586 = arith.subf %584, %585 : vector<4x32xf32>
    %587 = arith.select %581, %579, %586 : vector<4x32xi1>, vector<4x32xf32>
    %c336 = arith.constant 336 : index
    %c0_197 = arith.constant 0 : index
    %588 = vector.load %arg4[%c336, %c0_197] : memref<408x32xf32, #tpu.memory_space<vmem>>, vector<32x32xf32>
    %cst_198 = arith.constant dense<0.000000e+00> : vector<4x32xf32>
    %589 = tpu.matmul %587, %588, %cst_198 {dimension_numbers = #tpu.dot_dimension_numbers<[1], [0], [0], [1], [0, 0, 1, 1], [], []>} : vector<4x32xf32>, vector<32x32xf32>, vector<4x32xf32> -> vector<4x32xf32>
    %c398 = arith.constant 398 : index
    %c0_199 = arith.constant 0 : index
    %590 = vector.load %arg4[%c398, %c0_199] : memref<408x32xf32, #tpu.memory_space<vmem>>, vector<1x32xf32>
    %591 = vector.broadcast %590 : vector<1x32xf32> to vector<4x32xf32>
    %592 = arith.addf %589, %591 : vector<4x32xf32>
    %593 = arith.addf %574, %592 : vector<4x32xf32>
    %cst_200 = arith.constant dense<0.000000e+00> : vector<4xf32>
    %594 = vector.multi_reduction <add>, %593, %cst_200 [1] : vector<4x32xf32> to vector<4xf32>
    %595 = vector.shape_cast %594 : vector<4xf32> to vector<4x1xf32>
    %cst_201 = arith.constant 3.200000e+01 : f32
    %596 = vector.broadcast %cst_201 : f32 to vector<4x1xf32>
    %597 = arith.divf %595, %596 : vector<4x1xf32>
    %598 = vector.broadcast %597 : vector<4x1xf32> to vector<4x32xf32>
    %599 = arith.subf %593, %598 : vector<4x32xf32>
    %600 = arith.mulf %599, %599 : vector<4x32xf32>
    %cst_202 = arith.constant dense<0.000000e+00> : vector<4xf32>
    %601 = vector.multi_reduction <add>, %600, %cst_202 [1] : vector<4x32xf32> to vector<4xf32>
    %602 = vector.shape_cast %601 : vector<4xf32> to vector<4x1xf32>
    %cst_203 = arith.constant 3.200000e+01 : f32
    %603 = vector.broadcast %cst_203 : f32 to vector<4x1xf32>
    %604 = arith.divf %602, %603 : vector<4x1xf32>
    %605 = vector.broadcast %597 : vector<4x1xf32> to vector<4x32xf32>
    %606 = arith.subf %593, %605 : vector<4x32xf32>
    %cst_204 = arith.constant 9.99999974E-6 : f32
    %607 = vector.broadcast %cst_204 : f32 to vector<4x1xf32>
    %608 = arith.addf %604, %607 : vector<4x1xf32>
    %609 = math.rsqrt %608 : vector<4x1xf32>
    %610 = vector.broadcast %609 : vector<4x1xf32> to vector<4x32xf32>
    %611 = arith.mulf %606, %610 : vector<4x32xf32>
    %c403 = arith.constant 403 : index
    %c0_205 = arith.constant 0 : index
    %612 = vector.load %arg4[%c403, %c0_205] : memref<408x32xf32, #tpu.memory_space<vmem>>, vector<1x32xf32>
    %613 = vector.broadcast %612 : vector<1x32xf32> to vector<4x32xf32>
    %614 = arith.mulf %611, %613 : vector<4x32xf32>
    %c404 = arith.constant 404 : index
    %c0_206 = arith.constant 0 : index
    %615 = vector.load %arg4[%c404, %c0_206] : memref<408x32xf32, #tpu.memory_space<vmem>>, vector<1x32xf32>
    %616 = vector.broadcast %615 : vector<1x32xf32> to vector<4x32xf32>
    %617 = arith.addf %614, %616 : vector<4x32xf32>
    %c0_207 = arith.constant 0 : index
    %c0_208 = arith.constant 0 : index
    %c0_209 = arith.constant 0 : index
    %618 = vector.load %arg5[%c0_207, %c0_208, %c0_209] : memref<1x4x32xf32, #tpu.memory_space<vmem>>, vector<1x4x32xf32>
    %619 = vector.shape_cast %618 : vector<1x4x32xf32> to vector<4x32xf32>
    %620 = vector.shape_cast %617 : vector<4x32xf32> to vector<1x4x32xf32>
    tpu.vector_store %arg5[%c0_207, %c0_208, %c0_209], %620 {strides = array<i32>} : memref<1x4x32xf32, #tpu.memory_space<vmem>>, vector<1x4x32xf32>,
    return
  }
  func.func @transform_0(%arg0: i32) -> (i32, i32, i32) {
    %c0_i32 = arith.constant 0 : i32
    %c0_i32_0 = arith.constant 0 : i32
    %c0_i32_1 = arith.constant 0 : i32
    return %arg0, %c0_i32, %c0_i32_0 : i32, i32, i32
  }
  func.func @transform_1(%arg0: i32) -> (i32, i32, i32) {
    %c0_i32 = arith.constant 0 : i32
    %c0_i32_0 = arith.constant 0 : i32
    %c0_i32_1 = arith.constant 0 : i32
    return %arg0, %c0_i32, %c0_i32_0 : i32, i32, i32
  }
  func.func @transform_2(%arg0: i32) -> (i32, i32) {
    %c0_i32 = arith.constant 0 : i32
    %c0_i32_0 = arith.constant 0 : i32
    %c0_i32_1 = arith.constant 0 : i32
    return %c0_i32, %c0_i32_0 : i32, i32
  }
  func.func @transform_3(%arg0: i32) -> (i32, i32) {
    %c0_i32 = arith.constant 0 : i32
    %c0_i32_0 = arith.constant 0 : i32
    %c0_i32_1 = arith.constant 0 : i32
    return %c0_i32, %c0_i32_0 : i32, i32
  }
  func.func @transform_4(%arg0: i32) -> (i32, i32, i32) {
    %c0_i32 = arith.constant 0 : i32
    %c0_i32_0 = arith.constant 0 : i32
    %c0_i32_1 = arith.constant 0 : i32
    return %arg0, %c0_i32, %c0_i32_0 : i32, i32, i32
  }
}

</mosaic_0001>

<bundles_post_ra>
// kernel: dast_forward.1
= control target key start
LH: loop header
LB: loop body
LE: loop exit
PB: predicated region body
PF: predicated region fallthrough
CT: control target
= control target key end

     0   :  { %s5604_s15 = smov 0   ;;  %s6426_s0 = inlined_call_operand.vmem [shape: f32[2,8,16], index: 0, kind: input, shape index: {}]   ;;  %s6427_s1 = inlined_call_operand.vmem [shape: f32[2,16,8], index: 1, kind: input, shape index: {}]   ;;  %s6428_s2 = inlined_call_operand.vmem [shape: f32[192,192], index: 2, kind: input, shape index: {}]   ;;  %s6429_s3 = inlined_call_operand.vmem [shape: f32[408,32], index: 3, kind: input, shape index: {}]   ;;  %s6430_s4 = inlined_call_operand.vmem [shape: f32[2,4,32], index: 4, kind: output, shape index: {}]  }
   0x1 LB: > { %s4598_s16 = sadd.s32 4294967295, %s5571_s15   ;;  %p4602_p0 = scmp.ge.s32.totalorder %s5571_s15, 1  ;;  %s5571_s15 = sphi %s5604_s15, %s14_s15  }
   0x2   : > { %p171_p1 = scmp.lt.s32.totalorder %s5571_s15, 3 }
   0x4   : > { %p172_p2 = pnand %p4602_p0, %p171_p1 }
   0x5   : > { %v216_v0 = vld [vmem:[%s6429_s3] sm:$0xff] (!%p172_p2)  ;;  %v217_v1 = vld [vmem:[%s6429_s3 + $0x8] sm:$0xff] (!%p172_p2)  ;;  %p200_p3 = scmp.lt.s32.totalorder (!%p172_p2), %s4598_s16, 1  ;;  %v5573_v2 = vmov (!%p172_p2), 0.0|0.0   ;;  %vm5574_vm0 = vmmov (!%p172_p2), 0   ;;  %v5575_v4 = vmov (!%p172_p2), 0.0  }
   0x6   : > { %175 = sbr.rel (%p172_p2) target bundleno = 11166 (0x2b9e), region = 36  ;;  %5190 = vmatprep.subr.bf16.mxu0 (!%p172_p2), %v5573_v2  ;;  %v5191_v3 = vpack.c.bf16 (!%p172_p2), %v217_v1, %v216_v0  ;;  %4887 = vmatprep.mubr.msk.f32.mxu0 (!%p172_p2), %vm5574_vm0, %v5575_v4  ;;  %v297_v5 = vld [vmem:[%s6429_s3 + $0x10] sm:$0xff] (!%p172_p2)  ;;  %v390_v6 = vld [vmem:[%s6428_s2 + $0x8] sm:$0xff] (!%p172_p2)  ;;  %v392_v7 = vld [vmem:[%s6428_s2 + $0x18] sm:$0xff] (!%p172_p2)  ;;  %vm223_vm1 = vcmask (!%p172_p2), 130048   ;;  %vm303_vm2 = vcmask (!%p172_p2), 64512  }
   0x7   : > { %4890 = vmatprep.subr.mxu1 (!%p172_p2), %v297_v5  ;;  %v5193_v8 = vpack.c.bf16 (!%p172_p2), %v392_v7, %v390_v6  ;;  %v389_v9 = vld [vmem:[%s6428_s2] sm:$0xff] (!%p172_p2)  ;;  %v391_v10 = vld [vmem:[%s6428_s2 + $0x10] sm:$0xff] (!%p172_p2)  ;;  %v394_v11 = vld [vmem:[%s6428_s2 + $0x28] sm:$0xff] (!%p172_p2)  ;;  %vm397_vm3 = vcmask (!%p172_p2), 261120   ;;  %s5576_s25 = smov (!%p172_p2), 96   ;;  %s5577_s26 = smov (!%p172_p2), 64  }
   0x8   : > { %5192 = vmatpush3.bf16.msra.mxu0 (!%p172_p2), %v5191_v3  ;;  %4891 = vmatpush3.msra.mxu1 (!%p172_p2), %v297_v5  ;;  %v396_v12 = vld [vmem:[%s6428_s2 + $0x38] sm:$0xff] (!%p172_p2)  ;;  %v5195_v14 = vpack.c.bf16 (!%p172_p2), %v391_v10, %v389_v9  ;;  %v393_v18 = vld [vmem:[%s6428_s2 + $0x20] sm:$0xff] (!%p172_p2)  ;;  %v395_v19 = vld [vmem:[%s6428_s2 + $0x30] sm:$0xff] (!%p172_p2)  ;;  %vm3576_vm11 = vcmask (!%p172_p2), 1043456   ;;  %vm3468_vm12 = vcmask (!%p172_p2), 27648   ;;  %vm3572_vm13 = vcmask (!%p172_p2), 31744  }
   0x9   : > { %5194 = vmatprep.subr.bf16.mxu1 (!%p172_p2), %v5193_v8  ;;  %4895 = vmatprep.subr.mxu0 (!%p172_p2), %v5575_v4  ;;  %v5197_v17 = vpack.c.bf16 (!%p172_p2), %v396_v12, %v394_v11  ;;  %v5199_v20 = vpack.c.bf16 (!%p172_p2), %v395_v19, %v393_v18  ;;  %v4607_v21 = vld [vmem:[%s6429_s3 + $0x170] ss:$0 sm:$0xff] (!%p172_p2)  ;;  %v827_v6 = vld [vmem:[%s6429_s3 + $0x38] sm:$0xff] (!%p172_p2)  ;;  %v828_v8 = vld [vmem:[%s6429_s3 + $0x40] sm:$0xff] (!%p172_p2)  ;;  %vm3725_vm14 = vcmask (!%p172_p2), 257024   ;;  %vm3856_vm15 = vcmask (!%p172_p2), 523264  }
   0xa   : > { %v826_v5 = vld [vmem:[%s6429_s3 + $0x30] sm:$0xff] (!%p172_p2)  ;;  %v829_v9 = vld [vmem:[%s6429_s3 + $0x48] sm:$0xff] (!%p172_p2)  ;;  %vm5926_vm6 = vmpackc.low (!%p172_p2), %vm397_vm3, %vm397_vm3 }
   0xb   : > { %v5202_v7 = vpack.c.bf16 (!%p172_p2), %v827_v6, %v826_v5  ;;  %v5205_v10 = vpack.c.bf16 (!%p172_p2), %v829_v9, %v828_v8 }
   0xd   : > { %s6434_s16 = smov (!%p200_p3, %s4598_s16), 1 }
   0xe   : > { %s4603_s27 = sshll.u32 %s6434_s16, 3  ;;  %s4736_s13 = sshll.u32 %s6434_s16, 4 }
   0xf   : > { %s203_s8 = scalar_lea.vmem %s6426_s0, %s4603_s27  ;;  %s5654_s18 = scalar_lea.vmem %s6427_s1, %s4736_s13 }
  0x10   : > { %v213_v13 = vld [vmem:[%s203_s8] sm:$0xff]  ;;  %v215_v16 = vld [vmem:[%s5654_s18 + $0x8] sm:$0xff]  ;;  %s5578_s27 = smov 32  }
  0x11   : > { %4888 = vmatmul.mubr.msk.f32.vlgmr.msra.gmra.mrb[0].mxu0 %vm223_vm1, %v213_v13  ;;  %v214_v15 = vld [vmem:[%s5654_s18] sm:$0xff] }
  0x12   : > { %4897 = vmatprep.mubr.msk.f32.mxu0 %vm5574_vm0, %v5575_v4  ;;  %4892 = vmatprep.mubr.msk.f32.mxu1 %vm303_vm2, %v214_v15  ;;  %v4619_v15 = vld [vmem:[%s6429_s3 + $0x177] ss:$0 sm:$0xff] }
  0x13   : > { %4893 = vmatmul.mubr.msk.f32.vlgmr.msra.gmra.mrb[0].mxu1 %vm303_vm2, %v215_v16 }
  0x14   : > { %5196 = vmatpush1.bf16.msra.mxu1 %v5195_v14  ;;  %465 = vmatprep.mubr.f32.mxu1 %v5575_v4 }
  0x15   : > { %5198 = vmatprep.subr.bf16.mxu1 %v5197_v17  ;;  %v4620_v17 = vld [vmem:[%s6429_s3 + $0x178] ss:$0 sm:$0xff] }
  0x18   : > { %5200 = vmatpush1.bf16.msra.mxu1 %v5199_v20  ;;  %v914_v20 = vld [vmem:[%s6429_s3 + $0x50] sm:$0xff] }
  0x19   : > { %4905 = vmatprep.subr.mxu1 %v5575_v4 }
  0xe4   : > { %v293_v22 = vpop.f32.mrb[0].mxu0 }
  0xe5   : > { %v5673_v23 = vadd.f32 %v4607_v21, %v293_v22  ;;  %v4889_v24 = vpop.f32.mrb[1].mxu0  ;;  %v915_v21 = vld [vmem:[%s6429_s3 + $0x58] sm:$0xff] }
  0xe6   : > { %v5677_v25 = vpop.f32.mrb[0].mxu1  ;;  %v5208_v22 = vpack.c.bf16 %v915_v21, %v914_v20  ;;  %v917_v24 = vld [vmem:[%s6429_s3 + $0x68] sm:$0xff] }
  0xe7   : > { %4612 = vmatmul.mubr.msk.f32.vlgmr.msra.gmra.mrb[2].mxu1 %vm397_vm3, %v5673_v23  ;;  %v5679_v26 = vpop.f32.mrb[1].mxu1 }
  0xe8   : > { %4907 = vmatprep.mubr.msk.f32.mxu1 %vm5574_vm0, %v5575_v4 }
 0x1ba   : > { %v467_v27 = vpop.f32.mrb[2].mxu1 }
 0x1bb   : > { %560 = vrot.lane.b32.xlu1 %v467_v27, %s5576_s25  ;;  %473 = vrot.lane.b32.xlu0 %v467_v27, %s5577_s26  ;;  %v469_v28 = vpop.f32.mrb[3].mxu1 }
 0x1bf   : > { %562 = vrot.lane.b32.xlu0 %v467_v27, %s5578_s27 }
 0x22d   : > { %v474_v29 = vpop.permute.xlu0 %473  ;;  %v561_v31 = vpop.permute.xlu1 %560 }
 0x22e   : > { %4896 = vmatpush3.xpose.msk.msra.mxu0 %vm397_vm3, %v474_v29 }
 0x22f   : > { %4900 = vmatprep.subr.mxu0 %v5575_v4 }
 0x231   : > { %4898 = vmatmul.mubr.msk.f32.vlgmr.msra.gmra.mrb[2].mxu0 %vm397_vm3, %v467_v27  ;;  %v563_v30 = vpop.permute.xlu0 %562 }
 0x232   : > { %4901 = vmatpush3.xpose.msk.msra.mxu0 %vm397_vm3, %v563_v30  ;;  %4902 = vmatprep.mubr.msk.f32.mxu0 %vm5574_vm0, %v5575_v4 }
 0x233   : > { %4910 = vmatprep.subr.mxu0 %v5575_v4 }
 0x235   : > { %4903 = vmatmul.mubr.msk.f32.vlgmr.msra.gmra.mrb[4].mxu0 %vm397_vm3, %v561_v31 }
 0x236   : > { %4911 = vmatpush3.msra.mxu0 %v469_v28  ;;  %4912 = vmatprep.mubr.msk.f32.mxu0 %vm5574_vm0, %v5575_v4 }
 0x237   : > { %5207 = vmatprep.subr.bf16.mxu0 %v5573_v2 }
 0x304   : > { %v545_v32 = vpop.f32.mrb[2].mxu0 }
 0x305   : > { %v4899_v33 = vpop.f32.mrb[3].mxu0  ;;  %v549_v34 = vsel %vm303_vm2, %v545_v32, -inf }
 0x306   : > { %550 = vmax.xlane.f32.xlu1 %v549_v34 }
 0x308   : > { %v634_v35 = vpop.f32.mrb[4].mxu0 }
 0x309   : > { %v4904_v36 = vpop.f32.mrb[5].mxu0  ;;  %v638_v37 = vsel %vm303_vm2, %v634_v35, -inf }
 0x30a   : > { %639 = vmax.xlane.f32.xlu0 %v638_v37  ;;  %v4624_v37 = vld [vmem:[%s6429_s3 + $0x176] ss:$0 sm:$0xff] }
 0x393   : > { %v551_v38 = vpop.xlane.xlu1 %550 }
 0x394   : > { %v552_v39 = vsub.f32 %v545_v32, %v551_v38 }
 0x396   : > { %v553_v40 = vmul.f32 1.442695, %v552_v39 }
 0x397   : > { %v640_v41 = vpop.xlane.xlu0 %639 }
 0x398   : > { %5450 = vpow2.f32 %v553_v40  ;;  %v641_v42 = vsub.f32 %v634_v35, %v640_v41 }
 0x39a   : > { %v642_v43 = vmul.f32 1.442695, %v641_v42 }
 0x39c   : > { %5452 = vpow2.f32 %v642_v43 }
 0x3a2   : > { %v5451_v44 = vpop.eup %5450 }
 0x3a3   : > { %v555_v45 = vsel %vm303_vm2, %v5451_v44, 0.0 }
 0x3a4   : > { %556 = vadd.xlane.f32.xlu0 %v555_v45 }
 0x3a6   : > { %v5453_v46 = vpop.eup %5452 }
 0x3a7   : > { %v644_v47 = vsel %vm303_vm2, %v5453_v46, 0.0 }
 0x3a8   : > { %645 = vadd.xlane.f32.xlu1 %v644_v47 }
 0x3ba   : > { %650 = vrot.lane.b32.xlu0 %v469_v28, %s5576_s25  ;;  %v4621_v28 = vld [vmem:[%s6429_s3 + $0x175] ss:$0 sm:$0xff] }
 0x431   : > { %v557_v48 = vpop.xlane.xlu0 %556 }
 0x432   : > { %5454 = vrcp.f32 %v557_v48  ;;  %v1023_v48 = vld [vmem:[%s6428_s2 + $0x48] sm:$0xff] }
 0x435   : > { %v646_v49 = vpop.xlane.xlu1 %645  ;;  %v651_v50 = vpop.permute.xlu0 %650 }
 0x436   : > { %5456 = vrcp.f32 %v646_v49  ;;  %4906 = vmatpush3.msra.mxu1 %v651_v50  ;;  %v1025_v49 = vld [vmem:[%s6428_s2 + $0x58] sm:$0xff] }
 0x437   : > { %5201 = vmatprep.subr.bf16.mxu1 %v5573_v2  ;;  %v5213_v50 = vpack.c.bf16 %v1025_v49, %v1023_v48  ;;  %v1457_v49 = vld [vmem:[%s6429_s3 + $0x70] sm:$0xff] }
 0x43c   : > { %v5455_v51 = vpop.eup %5454 }
 0x43d   : > { %v559_v52 = vmul.f32 %v5455_v51, %v5451_v44  ;;  %v1022_v51 = vld [vmem:[%s6428_s2 + $0x40] sm:$0xff] }
 0x43f   : > { %4913 = vmatmul.mubr.msk.f32.vlgmr.msra.gmra.mrb[6].mxu0 %vm303_vm2, %v559_v52  ;;  %v1024_v52 = vld [vmem:[%s6428_s2 + $0x50] sm:$0xff] }
 0x440   : > { %v5457_v53 = vpop.eup %5456  ;;  %4934 = vmatprep.mubr.msk.f32.mxu0 %vm5574_vm0, %v5575_v4  ;;  %5209 = vmatpush3.bf16.msra.mxu0 %v5208_v22 }
 0x441   : > { %v648_v54 = vmul.f32 %v5457_v53, %v5453_v46  ;;  %5210 = vmatprep.subr.bf16.mxu0 %v5573_v2  ;;  %v5215_v53 = vpack.c.bf16 %v1024_v52, %v1022_v51  ;;  %v1459_v52 = vld [vmem:[%s6429_s3 + $0x80] sm:$0xff] }
 0x443   : > { %4908 = vmatmul.mubr.msk.f32.vlgmr.msra.gmra.mrb[4].mxu1 %vm303_vm2, %v648_v54  ;;  %v1027_v54 = vld [vmem:[%s6428_s2 + $0x68] sm:$0xff] }
 0x444   : > { %4923 = vmatprep.mubr.msk.f32.mxu1 %vm5574_vm0, %v5575_v4  ;;  %5203 = vmatpush3.bf16.msra.mxu1 %v5202_v7 }
 0x445   : > { %5204 = vmatprep.subr.bf16.mxu1 %v5573_v2 }
 0x448   : > { %5206 = vmatpush3.bf16.msra.mxu1 %v5205_v10 }
 0x449   : > { %5214 = vmatprep.subr.bf16.mxu1 %v5213_v50  ;;  %v1458_v50 = vld [vmem:[%s6429_s3 + $0x78] sm:$0xff] }
 0x44a   : > { %v5222_v51 = vpack.c.bf16 %v1458_v50, %v1457_v49 }
 0x512   : > { %v795_v55 = vpop.f32.mrb[6].mxu0 }
 0x513   : > { %v4914_v56 = vpop.f32.mrb[7].mxu0 }
 0x516   : > { %v722_v57 = vpop.f32.mrb[4].mxu1 }
 0x517   : > { %v796_v58 = vadd.f32 %v795_v55, %v722_v57  ;;  %v4909_v59 = vpop.f32.mrb[5].mxu1  ;;  %v1029_v55 = vld [vmem:[%s6428_s2 + $0x78] sm:$0xff]  ;;  %v1026_v57 = vld [vmem:[%s6428_s2 + $0x60] sm:$0xff] }
 0x518   : > { %v5217_v56 = vpack.c.bf16 %v1029_v55, %v1027_v54  ;;  %v1654_v55 = vld [vmem:[%s6428_s2 + $0x88] sm:$0xff] }
 0x519   : > { %v799_v60 = vadd.f32 %v796_v58, %v5673_v23  ;;  %v916_v23 = vld [vmem:[%s6429_s3 + $0x60] sm:$0xff]  ;;  %v1028_v58 = vld [vmem:[%s6428_s2 + $0x70] sm:$0xff] }
 0x51a   : > { %v5211_v27 = vpack.c.bf16 %v917_v24, %v916_v23  ;;  %v5219_v59 = vpack.c.bf16 %v1028_v58, %v1026_v57 }
 0x51b   : > { %v800_v61 = vsel %vm397_vm3, %v799_v60, 0.0 }
 0x51c   : > { %801 = vadd.xlane.f32.xlu1 %v800_v61  ;;  %5212 = vmatpush3.bf16.msra.mxu0 %v5211_v27 }
 0x51d   : > { %4937 = vmatprep.subr.mxu0 %v5575_v4 }
 0x5a9   : > { %v802_v62 = vpop.xlane.xlu1 %801 }
 0x5aa   : > { %v804_v63 = vmul.f32 0.03125, %v802_v62 }
 0x5ac   : > { %v805_v0 = vsub.f32 %v799_v60, %v804_v63 }
 0x5ae   : > { %v806_v1 = vmul.f32 %v805_v0, %v805_v0 }
 0x5b0   : > { %v807_v3 = vsel %vm397_vm3, %v806_v1, 0.0 }
 0x5b1   : > { %808 = vadd.xlane.f32.xlu1 %v807_v3  ;;  %v4627_v3 = vld [vmem:[%s6429_s3 + $0x17a] ss:$0 sm:$0xff] }
 0x63e   : > { %v809_v11 = vpop.xlane.xlu1 %808 }
 0x63f   : > { %v810_v12 = vmul.f32 0.03125, %v809_v11 }
 0x641   : > { %v811_v13 = vadd.f32 1e-05, %v810_v12 }
 0x643   : > { %5458 = vrsqrt.f32 %v811_v13 }
 0x64d   : > { %v5459_v14 = vpop.eup %5458 }
 0x64e   : > { %v813_v16 = vmul.f32 %v5459_v14, %v805_v0  ;;  %v4626_v0 = vld [vmem:[%s6429_s3 + $0x179] ss:$0 sm:$0xff] }
 0x650   : > { %v819_v18 = vmul.f32 %v4619_v15, %v813_v16 }
 0x652   : > { %v825_v19 = vadd.f32 %v4620_v17, %v819_v18 }
 0x654   : > { %4924 = vmatmul.mubr.msk.f32.vlgmr.msra.gmra.mrb[6].mxu1 %vm397_vm3, %v825_v19 }
 0x655   : > { %1097 = vmatprep.mubr.f32.mxu1 %v5575_v4  ;;  %5216 = vmatpush1.bf16.msra.mxu1 %v5215_v53  ;;  %v1460_v53 = vld [vmem:[%s6429_s3 + $0x88] sm:$0xff] }
 0x656   : > { %5218 = vmatprep.subr.bf16.mxu1 %v5217_v56  ;;  %v5225_v54 = vpack.c.bf16 %v1460_v53, %v1459_v52  ;;  %v1656_v56 = vld [vmem:[%s6428_s2 + $0x98] sm:$0xff] }
 0x657   : > { %v5233_v57 = vpack.c.bf16 %v1656_v56, %v1654_v55 }
 0x659   : > { %5220 = vmatpush1.bf16.msra.mxu1 %v5219_v59 }
 0x65a   : > { %4947 = vmatprep.subr.mxu1 %v5575_v4 }
 0x727   : > { %v904_v29 = vpop.f32.mrb[6].mxu1 }
 0x728   : > { %v905_v30 = vadd.f32 %v4621_v28, %v904_v29  ;;  %v4925_v31 = vpop.f32.mrb[7].mxu1 }
 0x72a   : > { %v909_v32 = vmin.f32 %v905_v30, 0.0  ;;  %vm908_vm4 = vcmp.gt.f32.partialorder %v905_v30, 0.0 }
 0x72c   : > { %v910_v33 = vmul.f32 1.442695, %v909_v32 }
 0x72e   : > { %5460 = vpow2.f32 %v910_v33 }
 0x738   : > { %v5461_v34 = vpop.eup %5460 }
 0x739   : > { %v4623_v35 = vadd.f32 -1.0, %v5461_v34 }
 0x73b   : > { %v913_v36 = vsel %vm908_vm4, %v905_v30, %v4623_v35 }
 0x73c   : > { %4935 = vmatmul.mubr.msk.f32.vlgmr.msra.gmra.mrb[8].mxu0 %vm397_vm3, %v913_v36 }
 0x73d   : > { %4939 = vmatprep.mubr.msk.f32.mxu0 %vm5574_vm0, %v5575_v4 }
 0x80f   : > { %v992_v38 = vpop.f32.mrb[8].mxu0 }
 0x810   : > { %v993_v39 = vadd.f32 %v4624_v37, %v992_v38  ;;  %v4936_v40 = vpop.f32.mrb[9].mxu0 }
 0x812   : > { %v996_v41 = vadd.f32 %v993_v39, %v825_v19 }
 0x814   : > { %v997_v42 = vsel %vm397_vm3, %v996_v41, 0.0 }
 0x815   : > { %998 = vadd.xlane.f32.xlu1 %v997_v42 }
 0x8a2   : > { %v999_v43 = vpop.xlane.xlu1 %998 }
 0x8a3   : > { %v1000_v44 = vmul.f32 0.03125, %v999_v43 }
 0x8a5   : > { %v1001_v45 = vsub.f32 %v996_v41, %v1000_v44 }
 0x8a7   : > { %v1002_v46 = vmul.f32 %v1001_v45, %v1001_v45 }
 0x8a9   : > { %v1003_v47 = vsel %vm397_vm3, %v1002_v46, 0.0 }
 0x8aa   : > { %1004 = vadd.xlane.f32.xlu1 %v1003_v47 }
 0x937   : > { %v1005_v60 = vpop.xlane.xlu1 %1004 }
 0x938   : > { %v1006_v61 = vmul.f32 0.03125, %v1005_v60 }
 0x93a   : > { %v1007_v62 = vadd.f32 1e-05, %v1006_v61 }
 0x93c   : > { %5462 = vrsqrt.f32 %v1007_v62  ;;  %v4635_v62 = vld [vmem:[%s6429_s3 + $0x17d] ss:$0 sm:$0xff] }
 0x946   : > { %v5463_v63 = vpop.eup %5462 }
 0x947   : > { %v1009_v1 = vmul.f32 %v5463_v63, %v1001_v45 }
 0x949   : > { %v1015_v5 = vmul.f32 %v4626_v0, %v1009_v1  ;;  %v1653_v0 = vld [vmem:[%s6428_s2 + $0x80] sm:$0xff]  ;;  %v1655_v1 = vld [vmem:[%s6428_s2 + $0x90] sm:$0xff] }
 0x94b   : > { %v5789_v6 = vadd.f32 %v4627_v3, %v1015_v5  ;;  %v4636_v3 = vld [vmem:[%s6429_s3 + $0x17e] ss:$0 sm:$0xff]  ;;  %v1658_v5 = vld [vmem:[%s6428_s2 + $0xa8] sm:$0xff] }
 0x94d   : > { %4628 = vmatmul.mubr.msk.f32.vlgmr.msra.gmra.mrb[8].mxu1 %vm397_vm3, %v5789_v6 }
 0x94e   : > { %4949 = vmatprep.mubr.msk.f32.mxu1 %vm5574_vm0, %v5575_v4 }
 0xa20   : > { %v1099_v7 = vpop.f32.mrb[8].mxu1 }
 0xa21   : > { %1194 = vrot.lane.b32.xlu0 %v1099_v7, %s5578_s27  ;;  %1105 = vrot.lane.b32.xlu1 %v1099_v7, %s5577_s26  ;;  %v1101_v8 = vpop.f32.mrb[9].mxu1 }
 0xa25   : > { %1192 = vrot.lane.b32.xlu0 %v1099_v7, %s5576_s25 }
 0xa93   : > { %v1106_v9 = vpop.permute.xlu1 %1105  ;;  %v1195_v10 = vpop.permute.xlu0 %1194 }
 0xa94   : > { %4938 = vmatpush3.xpose.msk.msra.mxu0 %vm397_vm3, %v1106_v9 }
 0xa95   : > { %4942 = vmatprep.subr.mxu0 %v5575_v4 }
 0xa97   : > { %4940 = vmatmul.mubr.msk.f32.vlgmr.msra.gmra.mrb[10].mxu0 %vm397_vm3, %v1099_v7  ;;  %v1193_v11 = vpop.permute.xlu0 %1192 }
 0xa98   : > { %4943 = vmatpush3.xpose.msk.msra.mxu0 %vm397_vm3, %v1195_v10  ;;  %4944 = vmatprep.mubr.msk.f32.mxu0 %vm5574_vm0, %v5575_v4 }
 0xa99   : > { %4952 = vmatprep.subr.mxu0 %v5575_v4 }
 0xa9b   : > { %4945 = vmatmul.mubr.msk.f32.vlgmr.msra.gmra.mrb[12].mxu0 %vm397_vm3, %v1193_v11  ;;  %v1657_v11 = vld [vmem:[%s6428_s2 + $0xa0] sm:$0xff] }
 0xa9c   : > { %4953 = vmatpush3.msra.mxu0 %v1101_v8  ;;  %4954 = vmatprep.mubr.msk.f32.mxu0 %vm5574_vm0, %v5575_v4 }
 0xa9d   : > { %5227 = vmatprep.subr.bf16.mxu0 %v5573_v2 }
 0xb6a   : > { %v1177_v12 = vpop.f32.mrb[10].mxu0 }
 0xb6b   : > { %v4941_v13 = vpop.f32.mrb[11].mxu0  ;;  %v1181_v14 = vsel %vm303_vm2, %v1177_v12, -inf }
 0xb6c   : > { %1182 = vmax.xlane.f32.xlu0 %v1181_v14  ;;  %v4609_v13 = vld [vmem:[%s6429_s3 + $0x171] ss:$0 sm:$0xff] }
 0xb6e   : > { %v1266_v15 = vpop.f32.mrb[12].mxu0 }
 0xb6f   : > { %v4946_v16 = vpop.f32.mrb[13].mxu0  ;;  %v1270_v17 = vsel %vm303_vm2, %v1266_v15, -inf }
 0xb70   : > { %1271 = vmax.xlane.f32.xlu1 %v1270_v17  ;;  %v385_v16 = vld [vmem:[%s6429_s3 + $0x20] sm:$0xff]  ;;  %v382_v17 = vadd.f32 %v5677_v25, %v4609_v13  ;;  %v1545_v25 = vld [vmem:[%s6429_s3 + $0x90] sm:$0xff] }
 0xbf9   : > { %v1183_v18 = vpop.xlane.xlu0 %1182 }
 0xbfa   : > { %v1184_v19 = vsub.f32 %v1177_v12, %v1183_v18  ;;  %v1659_v12 = vld [vmem:[%s6428_s2 + $0xb0] sm:$0xff] }
 0xbfb   : > { %v5239_v14 = vpack.c.bf16 %v1659_v12, %v1657_v11 }
 0xbfc   : > { %v1185_v20 = vmul.f32 1.442695, %v1184_v19  ;;  %v386_v19 = vld [vmem:[%s6429_s3 + $0x28] sm:$0xff] }
 0xbfd   : > { %v1272_v21 = vpop.xlane.xlu1 %1271 }
 0xbfe   : > { %5464 = vpow2.f32 %v1185_v20  ;;  %v1273_v22 = vsub.f32 %v1266_v15, %v1272_v21  ;;  %v377_v15 = vadd.f32 %v4609_v13, %v5679_v26  ;;  %v5888_v26 = vadd.f32 %v386_v19, %v382_v17  ;;  %v1546_v20 = vld [vmem:[%s6429_s3 + $0x98] sm:$0xff] }
 0xbff   : > { %v5228_v21 = vpack.c.bf16 %v1546_v20, %v1545_v25 }
 0xc00   : > { %v1274_v23 = vmul.f32 1.442695, %v1273_v22  ;;  %v5880_v18 = vadd.f32 %v385_v16, %v377_v15  ;;  %v1547_v22 = vld [vmem:[%s6429_s3 + $0xa0] sm:$0xff] }
 0xc02   : > { %5466 = vpow2.f32 %v1274_v23  ;;  %v1548_v23 = vld [vmem:[%s6429_s3 + $0xa8] sm:$0xff] }
 0xc08   : > { %v5465_v24 = vpop.eup %5464 }
 0xc09   : > { %v1187_v27 = vsel %vm303_vm2, %v5465_v24, 0.0 }
 0xc0a   : > { %1188 = vadd.xlane.f32.xlu0 %v1187_v27  ;;  %v4637_v27 = vld [vmem:[%s6429_s3 + $0x17b] ss:$0 sm:$0xff] }
 0xc0c   : > { %v5467_v28 = vpop.eup %5466 }
 0xc0d   : > { %v1276_v29 = vsel %vm303_vm2, %v5467_v28, 0.0 }
 0xc0e   : > { %1277 = vadd.xlane.f32.xlu0 %v1276_v29 }
 0xc24   : > { %1282 = vrot.lane.b32.xlu0 %v1101_v8, %s5576_s25  ;;  %v5235_v8 = vpack.c.bf16 %v1655_v1, %v1653_v0 }
 0xc97   : > { %v1189_v30 = vpop.xlane.xlu0 %1188 }
 0xc98   : > { %5468 = vrcp.f32 %v1189_v30 }
 0xc9b   : > { %v1278_v31 = vpop.xlane.xlu0 %1277 }
 0xc9c   : > { %5470 = vrcp.f32 %v1278_v31 }
 0xc9f   : > { %v1283_v32 = vpop.permute.xlu0 %1282 }
 0xca0   : > { %4948 = vmatpush3.msra.mxu1 %v1283_v32 }
 0xca1   : > { %5221 = vmatprep.subr.bf16.mxu1 %v5573_v2 }
 0xca2   : > { %v5469_v33 = vpop.eup %5468 }
 0xca3   : > { %v1191_v34 = vmul.f32 %v5469_v33, %v5465_v24  ;;  %v5231_v24 = vpack.c.bf16 %v1548_v23, %v1547_v22 }
 0xca5   : > { %4955 = vmatmul.mubr.msk.f32.vlgmr.msra.gmra.mrb[14].mxu0 %vm303_vm2, %v1191_v34 }
 0xca6   : > { %v5471_v35 = vpop.eup %5470  ;;  %4976 = vmatprep.mubr.msk.f32.mxu0 %vm5574_vm0, %v5575_v4  ;;  %5229 = vmatpush3.bf16.msra.mxu0 %v5228_v21 }
 0xca7   : > { %v1280_v36 = vmul.f32 %v5471_v35, %v5467_v28  ;;  %5230 = vmatprep.subr.bf16.mxu0 %v5573_v2 }
 0xca9   : > { %4950 = vmatmul.mubr.msk.f32.vlgmr.msra.gmra.mrb[10].mxu1 %vm303_vm2, %v1280_v36 }
 0xcaa   : > { %4965 = vmatprep.mubr.msk.f32.mxu1 %vm5574_vm0, %v5575_v4  ;;  %5223 = vmatpush3.bf16.msra.mxu1 %v5222_v51 }
 0xcab   : > { %5224 = vmatprep.subr.bf16.mxu1 %v5573_v2  ;;  %5232 = vmatpush3.bf16.msra.mxu0 %v5231_v24 }
 0xcae   : > { %5226 = vmatpush3.bf16.msra.mxu1 %v5225_v54 }
 0xcaf   : > { %5234 = vmatprep.subr.bf16.mxu1 %v5233_v57 }
 0xd78   : > { %v1427_v37 = vpop.f32.mrb[14].mxu0 }
 0xd79   : > { %v4956_v38 = vpop.f32.mrb[15].mxu0 }
 0xd7c   : > { %v1354_v39 = vpop.f32.mrb[10].mxu1 }
 0xd7d   : > { %v1428_v40 = vadd.f32 %v1427_v37, %v1354_v39  ;;  %v4951_v41 = vpop.f32.mrb[11].mxu1 }
 0xd7f   : > { %v1431_v42 = vadd.f32 %v1428_v40, %v5789_v6  ;;  %v1660_v6 = vld [vmem:[%s6428_s2 + $0xb8] sm:$0xff] }
 0xd80   : > { %v5237_v10 = vpack.c.bf16 %v1660_v6, %v1658_v5 }
 0xd81   : > { %v1432_v43 = vsel %vm397_vm3, %v1431_v42, 0.0 }
 0xd82   : > { %1433 = vadd.xlane.f32.xlu1 %v1432_v43 }
 0xe0f   : > { %v1434_v44 = vpop.xlane.xlu1 %1433 }
 0xe10   : > { %v1435_v45 = vmul.f32 0.03125, %v1434_v44 }
 0xe12   : > { %v1436_v46 = vsub.f32 %v1431_v42, %v1435_v45 }
 0xe14   : > { %v1437_v47 = vmul.f32 %v1436_v46, %v1436_v46 }
 0xe16   : > { %v1438_v48 = vsel %vm397_vm3, %v1437_v47, 0.0 }
 0xe17   : > { %1439 = vadd.xlane.f32.xlu1 %v1438_v48 }
 0xea4   : > { %v1440_v58 = vpop.xlane.xlu1 %1439 }
 0xea5   : > { %v1441_v59 = vmul.f32 0.03125, %v1440_v58 }
 0xea7   : > { %v1442_v60 = vadd.f32 1e-05, %v1441_v59 }
 0xea9   : > { %5472 = vrsqrt.f32 %v1442_v60 }
 0xeb3   : > { %v5473_v61 = vpop.eup %5472 }
 0xeb4   : > { %v1444_v63 = vmul.f32 %v5473_v61, %v1436_v46 }
 0xeb6   : > { %v1450_v7 = vmul.f32 %v4635_v62, %v1444_v63 }
 0xeb8   : > { %v5861_v9 = vadd.f32 %v4636_v3, %v1450_v7 }
 0xeba   : > { %4966 = vmatmul.mubr.msk.f32.vlgmr.msra.gmra.mrb[12].mxu1 %vm397_vm3, %v5861_v9 }
 0xebb   : > { %5236 = vmatpush1.bf16.msra.mxu1 %v5235_v8  ;;  %1731 = vmatprep.mubr.f32.mxu1 %v5575_v4 }
 0xebc   : > { %5238 = vmatprep.subr.bf16.mxu1 %v5237_v10 }
 0xebf   : > { %5240 = vmatpush1.bf16.msra.mxu1 %v5239_v14 }
 0xec2   : > { %4644 = vmatmul.mubr.msk.f32.vlgmr.msra.gmra.mrb[14].mxu1 %vm397_vm3, %v5880_v18 }
 0xec3   : > { %1737 = vmatprep.mubr.f32.mxu1 %v5575_v4 }
 0xec6   : > { %4645 = vmatmul.mubr.msk.f32.gmra.mrb[16].mxu1 %vm397_vm3, %v5888_v26 }
 0xf8d   : > { %v1535_v28 = vpop.f32.mrb[12].mxu1 }
 0xf8e   : > { %v1536_v29 = vadd.f32 %v4637_v27, %v1535_v28  ;;  %v4967_v30 = vpop.f32.mrb[13].mxu1 }
 0xf90   : > { %v1540_v31 = vmin.f32 %v1536_v29, 0.0  ;;  %vm1539_vm5 = vcmp.gt.f32.partialorder %v1536_v29, 0.0 }
 0xf92   : > { %v1541_v32 = vmul.f32 1.442695, %v1540_v31 }
 0xf94   : > { %5474 = vpow2.f32 %v1541_v32 }
 0xf95   : > { %v1733_v33 = vpop.f32.mrb[14].mxu1 }
 0xf96   : > { %v5908_v34 = vpop.f32.mrb[15].mxu1 }
 0xf99   : > { %v1739_v35 = vpop.f32.mrb[16].mxu1 }
 0xf9a   : > { %v5910_v36 = vpop.f32.mrb[17].mxu1  ;;  %v5390_v37 = vpack.i.bf16 %v1739_v35, %v1733_v33 }
 0xf9b   : > { %v5395_v38 = vpack.i.bf16 %v5910_v36, %v5908_v34  ;;  %v5916_v39 = vpack.c.bf16 %v5910_v36, %v5908_v34 }
 0xf9c   : > { %5391 = vrot.lane.b32.xlu0 %v5390_v37, %s5577_s26  ;;  %5386 = vrot.lane.b32.xlu1 %v5390_v37, %s5578_s27 }
 0xf9e   : > { %v5475_v40 = vpop.eup %5474 }
 0xf9f   : > { %v4639_v41 = vadd.f32 -1.0, %v5475_v40 }
 0xfa0   : > { %1855 = vrot.lane.b32.xlu0 %v1733_v33, %s5576_s25  ;;  %1857 = vrot.lane.b32.xlu1 %v1739_v35, %s5576_s25 }
 0xfa1   : > { %v1544_v42 = vsel %vm1539_vm5, %v1536_v29, %v4639_v41 }
 0xfa2   : > { %4977 = vmatmul.mubr.msk.f32.vlgmr.msra.gmra.mrb[16].mxu0 %vm397_vm3, %v1544_v42 }
 0xfa3   : > { %4983 = vmatprep.mubr.msk.f32.mxu0 %vm397_vm3, %v1733_v33 }
0x100e   : > { %v5392_v43 = vpop.permute.xlu0 %5391  ;;  %v5387_v44 = vpop.permute.xlu1 %5386 }
0x100f   : > { %v5394_v45 = vunpack.i.h.bf16 %v5392_v43  ;;  %v5393_v46 = vunpack.i.l.bf16 %v5392_v43  ;;  %v5389_v47 = vunpack.i.h.bf16 %v5387_v44  ;;  %v5388_v48 = vunpack.i.l.bf16 %v5387_v44 }
0x1011   : > { %v5241_v50 = vpack.c.bf16 %v5394_v45, %v5393_v46  ;;  %v5247_v51 = vpack.c.bf16 %v5389_v47, %v5388_v48 }
0x1012   : > { %v1856_v52 = vpop.permute.xlu0 %1855  ;;  %v1858_v53 = vpop.permute.xlu1 %1857 }
0x1013   : > { %5243 = vmatprep.subr.msk.bf16.mxu0 %vm5926_vm6, %v5241_v50  ;;  %5249 = vmatprep.subr.msk.bf16.mxu1 %vm5926_vm6, %v5247_v51 }
0x1014   : > { %4990 = vmatprep.mubr.msk.f32.mxu1 %vm397_vm3, %v1856_v52  ;;  %5246 = vmatpush3.bf16.xpose.msk.msra.mxu0 %vm5926_vm6, %v5241_v50 }
0x1015   : > { %5252 = vmatpush3.bf16.xpose.msk.msra.mxu1 %vm5926_vm6, %v5247_v51 }
0x101b   : > { %4984 = vmatmul.mubr.msk.f32.vlgmr.msra.gmra.mrb[18].mxu0 %vm397_vm3, %v1739_v35 }
0x101c   : > { %4991 = vmatmul.mubr.msk.f32.vlgmr.msra.gmra.mrb[18].mxu1 %vm397_vm3, %v1858_v53 }
0x1075   : > { %v5941_v54 = vpop.f32.mrb[16].mxu0 }
0x1076   : > { %v4978_v55 = vpop.f32.mrb[17].mxu0 }
0x10ee   : > { %v4985_v56 = vpop.f32.mrb[18].mxu0 }
0x10ef   : > { %v4992_v57 = vpop.f32.mrb[18].mxu1  ;;  %v1824_v58 = vpop.f32.mrb[19].mxu0  ;;  %v1836_v63 = vsel %vm223_vm1, %v4985_v56, -inf }
0x10f0   : > { %v1937_v59 = vpop.f32.mrb[19].mxu1  ;;  %v1949_v60 = vsel %vm223_vm1, %v4992_v57, -inf  ;;  %v1833_v62 = vsel %vm223_vm1, %v1824_v58, -inf }
0x10f1   : > { %1950 = vmax.xlane.f32.xlu1 %v1949_v60  ;;  %v1946_v61 = vsel %vm223_vm1, %v1937_v59, -inf  ;;  %v2182_v60 = vld [vmem:[%s6429_s3 + $0xc0] sm:$0xff] }
0x10f2   : > { %1947 = vmax.xlane.f32.xlu0 %v1946_v61  ;;  %v2183_v61 = vld [vmem:[%s6429_s3 + $0xc8] sm:$0xff] }
0x10f6   : > { %1834 = vmax.xlane.f32.xlu0 %v1833_v62  ;;  %v5265_v62 = vpack.c.bf16 %v2183_v61, %v2182_v60  ;;  %v2415_v60 = vld [vmem:[%s6428_s2 + $0xc8] sm:$0xff]  ;;  %v2417_v61 = vld [vmem:[%s6428_s2 + $0xd8] sm:$0xff] }
0x10fa   : > { %1837 = vmax.xlane.f32.xlu0 %v1836_v63 }
0x117e   : > { %v1951_v0 = vpop.xlane.xlu1 %1950 }
0x117f   : > { %v1953_v1 = vsub.f32 %v4992_v57, %v1951_v0  ;;  %v1948_v3 = vpop.xlane.xlu0 %1947 }
0x1180   : > { %v1952_v5 = vsub.f32 %v1937_v59, %v1948_v3 }
0x1181   : > { %v1956_v6 = vmul.f32 1.442695, %v1953_v1 }
0x1182   : > { %v1954_v7 = vmul.f32 1.442695, %v1952_v5 }
0x1183   : > { %5476 = vpow2.f32 %v1956_v6  ;;  %v1835_v8 = vpop.xlane.xlu0 %1834 }
0x1184   : > { %5478 = vpow2.f32 %v1954_v7  ;;  %v1839_v10 = vsub.f32 %v1824_v58, %v1835_v8  ;;  %v2181_v58 = vld [vmem:[%s6429_s3 + $0xb8] sm:$0xff]  ;;  %v4658_v8 = vld [vmem:[%s6429_s3 + $0x183] ss:$0 sm:$0xff] }
0x1186   : > { %v1841_v11 = vmul.f32 1.442695, %v1839_v10 }
0x1187   : > { %v1838_v12 = vpop.xlane.xlu0 %1837 }
0x1188   : > { %5480 = vpow2.f32 %v1841_v11  ;;  %v1840_v13 = vsub.f32 %v4985_v56, %v1838_v12  ;;  %v4659_v11 = vld [vmem:[%s6429_s3 + $0x184] ss:$0 sm:$0xff] }
0x118a   : > { %v1843_v14 = vmul.f32 1.442695, %v1840_v13 }
0x118c   : > { %5482 = vpow2.f32 %v1843_v14 }
0x118d   : > { %v5477_v15 = vpop.eup %5476 }
0x118e   : > { %v5479_v16 = vpop.eup %5478  ;;  %v1961_v17 = vsel %vm223_vm1, %v5477_v15, 0.0 }
0x118f   : > { %1962 = vadd.xlane.f32.xlu0 %v1961_v17  ;;  %v1958_v19 = vsel %vm223_vm1, %v5479_v16, 0.0 }
0x1190   : > { %1959 = vadd.xlane.f32.xlu1 %v1958_v19  ;;  %v2282_v19 = vld [vmem:[%s6429_s3 + $0xd0] sm:$0xff] }
0x1192   : > { %v5481_v25 = vpop.eup %5480 }
0x1193   : > { %v1845_v20 = vsel %vm223_vm1, %v5481_v25, 0.0 }
0x1194   : > { %1846 = vadd.xlane.f32.xlu1 %v1845_v20 }
0x1196   : > { %v5483_v21 = vpop.eup %5482 }
0x1197   : > { %v1848_v22 = vsel %vm223_vm1, %v5483_v21, 0.0 }
0x1198   : > { %1849 = vadd.xlane.f32.xlu0 %v1848_v22  ;;  %v2285_v22 = vld [vmem:[%s6429_s3 + $0xe8] sm:$0xff] }
0x11a5   : > { %5396 = vrot.lane.b32.xlu1 %v5395_v38, %s5576_s25 }
0x121c   : > { %v1963_v23 = vpop.xlane.xlu0 %1962 }
0x121d   : > { %v1960_v24 = vpop.xlane.xlu1 %1959 }
0x121e   : > { %5484 = vrcp.f32 %v1960_v24  ;;  %v4660_v24 = vld [vmem:[%s6429_s3 + $0x181] ss:$0 sm:$0xff] }
0x121f   : > { %5486 = vrcp.f32 %v1963_v23 }
0x1221   : > { %v1847_v27 = vpop.xlane.xlu1 %1846 }
0x1222   : > { %5488 = vrcp.f32 %v1847_v27 }
0x1225   : > { %v5397_v28 = vpop.permute.xlu1 %5396  ;;  %v1850_v29 = vpop.xlane.xlu0 %1849 }
0x1226   : > { %v5399_v30 = vunpack.i.h.bf16 %v5397_v28  ;;  %v5398_v31 = vunpack.i.l.bf16 %v5397_v28  ;;  %5490 = vrcp.f32 %v1850_v29 }
0x1228   : > { %v5485_v32 = vpop.eup %5484  ;;  %v5253_v33 = vpack.c.bf16 %v5399_v30, %v5398_v31 }
0x1229   : > { %v5487_v35 = vpop.eup %5486  ;;  %v1965_v37 = vmul.f32 %v5485_v32, %v5479_v16 }
0x122a   : > { %5254 = vmatprep.subr.bf16.mxu0 %v5253_v33  ;;  %v1967_v36 = vmul.f32 %v5487_v35, %v5477_v15 }
0x122b   : > { %5256 = vmatpush3.bf16.msra.mxu0 %v5253_v33  ;;  %4997 = vmatprep.mubr.msk.f32.mxu0 %vm223_vm1, %v1965_v37 }
0x122c   : > { %v5489_v34 = vpop.eup %5488  ;;  %5258 = vmatprep.subr.bf16.mxu0 %v5916_v39 }
0x122d   : > { %v1852_v38 = vmul.f32 %v5489_v34, %v5481_v25  ;;  %v2283_v25 = vld [vmem:[%s6429_s3 + $0xd8] sm:$0xff] }
0x122e   : > { %4998 = vmatmul.mubr.msk.f32.vlgmr.msra.gmra.mrb[20].mxu0 %vm223_vm1, %v1967_v36  ;;  %v5269_v20 = vpack.c.bf16 %v2283_v25, %v2282_v19  ;;  %v4668_v19 = vld [vmem:[%s6429_s3 + $0x185] ss:$0 sm:$0xff] }
0x122f   : > { %5260 = vmatpush3.bf16.msra.mxu0 %v5916_v39  ;;  %5004 = vmatprep.mubr.msk.f32.mxu0 %vm223_vm1, %v1852_v38 }
0x1230   : > { %v5491_v40 = vpop.eup %5490  ;;  %5270 = vmatprep.subr.bf16.mxu0 %v5269_v20 }
0x1231   : > { %v1854_v41 = vmul.f32 %v5491_v40, %v5483_v21  ;;  %v2284_v21 = vld [vmem:[%s6429_s3 + $0xe0] sm:$0xff] }
0x1232   : > { %v5273_v23 = vpack.c.bf16 %v2285_v22, %v2284_v21 }
0x1236   : > { %5005 = vmatmul.mubr.msk.f32.vlgmr.msra.gmra.mrb[20].mxu0 %vm223_vm1, %v1854_v41 }
0x1237   : > { %5272 = vmatpush3.bf16.msra.mxu0 %v5269_v20  ;;  %v4669_v20 = vld [vmem:[%s6429_s3 + $0x186] ss:$0 sm:$0xff] }
0x1238   : > { %5274 = vmatprep.subr.bf16.mxu0 %v5273_v23 }
0x123b   : > { %5276 = vmatpush3.bf16.msra.mxu0 %v5273_v23 }
0x1309   : > { %v5006_v42 = vpop.f32.mrb[20].mxu0 }
0x130a   : > { %v2129_v43 = vpop.f32.mrb[21].mxu0  ;;  %v2139_v45 = vadd.f32 %v5006_v42, %v5888_v26  ;;  %v2180_v26 = vld [vmem:[%s6429_s3 + $0xb0] sm:$0xff]  ;;  %v4665_v42 = vld [vmem:[%s6429_s3 + $0x182] ss:$0 sm:$0xff] }
0x130b   : > { %v2138_v44 = vadd.f32 %v2129_v43, %v5880_v18  ;;  %v5261_v59 = vpack.c.bf16 %v2181_v58, %v2180_v26 }
0x130c   : > { %v2143_v47 = vsel %vm397_vm3, %v2139_v45, 0.0 }
0x130d   : > { %v2140_v46 = vsel %vm397_vm3, %v2138_v44, 0.0  ;;  %5262 = vmatprep.subr.bf16.mxu1 %v5261_v59 }
0x130e   : > { %2141 = vadd.xlane.f32.xlu0 %v2140_v46  ;;  %5264 = vmatpush3.bf16.msra.mxu1 %v5261_v59 }
0x130f   : > { %5266 = vmatprep.subr.bf16.mxu1 %v5265_v62 }
0x1312   : > { %2144 = vadd.xlane.f32.xlu0 %v2143_v47  ;;  %5268 = vmatpush3.bf16.msra.mxu1 %v5265_v62  ;;  %v5277_v62 = vpack.c.bf16 %v2417_v61, %v2415_v60 }
0x1314   : > { %5278 = vmatprep.subr.bf16.mxu1 %v5277_v62 }
0x139b   : > { %v2142_v48 = vpop.xlane.xlu0 %2141 }
0x139c   : > { %v2146_v39 = vmul.f32 0.03125, %v2142_v48 }
0x139e   : > { %v2148_v50 = vsub.f32 %v2138_v44, %v2146_v39 }
0x139f   : > { %v2145_v51 = vpop.xlane.xlu0 %2144 }
0x13a0   : > { %v2147_v52 = vmul.f32 0.03125, %v2145_v51  ;;  %v2150_v53 = vmul.f32 %v2148_v50, %v2148_v50 }
0x13a2   : > { %v2149_v55 = vsub.f32 %v2139_v45, %v2147_v52  ;;  %v2152_v56 = vsel %vm397_vm3, %v2150_v53, 0.0 }
0x13a3   : > { %2153 = vadd.xlane.f32.xlu0 %v2152_v56 }
0x13a4   : > { %v2151_v57 = vmul.f32 %v2149_v55, %v2149_v55 }
0x13a6   : > { %v2155_v18 = vsel %vm397_vm3, %v2151_v57, 0.0 }
0x13a7   : > { %2156 = vadd.xlane.f32.xlu0 %v2155_v18 }
0x1430   : > { %v2154_v63 = vpop.xlane.xlu0 %2153 }
0x1431   : > { %v2158_v0 = vmul.f32 0.03125, %v2154_v63  ;;  %v2414_v63 = vld [vmem:[%s6428_s2 + $0xc0] sm:$0xff] }
0x1433   : > { %v2160_v1 = vadd.f32 1e-05, %v2158_v0  ;;  %v2416_v0 = vld [vmem:[%s6428_s2 + $0xd0] sm:$0xff] }
0x1434   : > { %v2157_v3 = vpop.xlane.xlu0 %2156 }
0x1435   : > { %5492 = vrsqrt.f32 %v2160_v1  ;;  %v2159_v5 = vmul.f32 0.03125, %v2157_v3  ;;  %v5279_v1 = vpack.c.bf16 %v2416_v0, %v2414_v63  ;;  %v2419_v3 = vld [vmem:[%s6428_s2 + $0xe8] sm:$0xff] }
0x1437   : > { %v2161_v6 = vadd.f32 1e-05, %v2159_v5  ;;  %v2421_v5 = vld [vmem:[%s6428_s2 + $0xf8] sm:$0xff] }
0x1439   : > { %5494 = vrsqrt.f32 %v2161_v6  ;;  %v5281_v6 = vpack.c.bf16 %v2421_v5, %v2419_v3 }
0x143f   : > { %v5493_v7 = vpop.eup %5492 }
0x1440   : > { %v2164_v10 = vmul.f32 %v5493_v7, %v2148_v50  ;;  %v2418_v7 = vld [vmem:[%s6428_s2 + $0xe0] sm:$0xff] }
0x1442   : > { %v2171_v12 = vmul.f32 %v4658_v8, %v2164_v10 }
0x1443   : > { %v5495_v13 = vpop.eup %5494 }
0x1444   : > { %v2165_v14 = vmul.f32 %v5495_v13, %v2149_v55  ;;  %v2178_v15 = vadd.f32 %v4659_v11, %v2171_v12 }
0x1446   : > { %v2172_v16 = vmul.f32 %v4658_v8, %v2165_v14  ;;  %5015 = vmatprep.mubr.msk.f32.mxu1 %vm397_vm3, %v2178_v15  ;;  %v2420_v8 = vld [vmem:[%s6428_s2 + $0xf0] sm:$0xff] }
0x1447   : > { %v5283_v10 = vpack.c.bf16 %v2420_v8, %v2418_v7 }
0x1448   : > { %v2179_v17 = vadd.f32 %v4659_v11, %v2172_v16 }
0x144a   : > { %5016 = vmatmul.mubr.msk.f32.vlgmr.msra.gmra.mrb[20].mxu1 %vm397_vm3, %v2179_v17 }
0x144b   : > { %2492 = vmatprep.mubr.f32.mxu1 %v5575_v4  ;;  %5280 = vmatpush1.bf16.msra.mxu1 %v5279_v1 }
0x144c   : > { %5282 = vmatprep.subr.bf16.mxu1 %v5281_v6 }
0x144f   : > { %5284 = vmatpush1.bf16.msra.mxu1 %v5283_v10 }
0x151d   : > { %v5017_v27 = vpop.f32.mrb[20].mxu1 }
0x151e   : > { %v2267_v28 = vadd.f32 %v5017_v27, %v4660_v24  ;;  %v2261_v29 = vpop.f32.mrb[21].mxu1 }
0x151f   : > { %v2262_v30 = vadd.f32 %v4660_v24, %v2261_v29 }
0x1520   : > { %v2273_v31 = vmin.f32 %v2267_v28, 0.0  ;;  %vm2271_vm8 = vcmp.gt.f32.partialorder %v2267_v28, 0.0 }
0x1521   : > { %v2272_v32 = vmin.f32 %v2262_v30, 0.0  ;;  %vm2270_vm7 = vcmp.gt.f32.partialorder %v2262_v30, 0.0 }
0x1522   : > { %v2276_v33 = vmul.f32 1.442695, %v2273_v31 }
0x1523   : > { %v2274_v35 = vmul.f32 1.442695, %v2272_v32 }
0x1524   : > { %5496 = vpow2.f32 %v2276_v33 }
0x1525   : > { %5498 = vpow2.f32 %v2274_v35 }
0x152e   : > { %v5497_v37 = vpop.eup %5496 }
0x152f   : > { %v5499_v34 = vpop.eup %5498  ;;  %v4664_v36 = vadd.f32 -1.0, %v5497_v37 }
0x1530   : > { %v4663_v38 = vadd.f32 -1.0, %v5499_v34 }
0x1531   : > { %v2281_v41 = vsel %vm2271_vm8, %v2267_v28, %v4664_v36 }
0x1532   : > { %v2280_v40 = vsel %vm2270_vm7, %v2262_v30, %v4663_v38 }
0x1533   : > { %5026 = vmatprep.mubr.msk.f32.mxu0 %vm397_vm3, %v2280_v40 }
0x1534   : > { %5027 = vmatmul.mubr.msk.f32.vlgmr.msra.gmra.mrb[22].mxu0 %vm397_vm3, %v2281_v41 }
0x1607   : > { %v5028_v43 = vpop.f32.mrb[22].mxu0 }
0x1608   : > { %v2369_v44 = vadd.f32 %v5028_v43, %v4665_v42  ;;  %v2363_v45 = vpop.f32.mrb[23].mxu0 }
0x1609   : > { %v2364_v46 = vadd.f32 %v4665_v42, %v2363_v45 }
0x160a   : > { %v2373_v47 = vadd.f32 %v2369_v44, %v2179_v17 }
0x160b   : > { %v2372_v48 = vadd.f32 %v2364_v46, %v2178_v15 }
0x160c   : > { %v2377_v39 = vsel %vm397_vm3, %v2373_v47, 0.0 }
0x160d   : > { %2378 = vadd.xlane.f32.xlu0 %v2377_v39  ;;  %v2374_v50 = vsel %vm397_vm3, %v2372_v48, 0.0 }
0x160e   : > { %2375 = vadd.xlane.f32.xlu1 %v2374_v50 }
0x169a   : > { %v2379_v51 = vpop.xlane.xlu0 %2378 }
0x169b   : > { %v2381_v52 = vmul.f32 0.03125, %v2379_v51  ;;  %v2376_v53 = vpop.xlane.xlu1 %2375 }
0x169c   : > { %v2380_v55 = vmul.f32 0.03125, %v2376_v53 }
0x169d   : > { %v2383_v56 = vsub.f32 %v2373_v47, %v2381_v52 }
0x169e   : > { %v2382_v57 = vsub.f32 %v2372_v48, %v2380_v55 }
0x169f   : > { %v2385_v58 = vmul.f32 %v2383_v56, %v2383_v56 }
0x16a0   : > { %v2384_v18 = vmul.f32 %v2382_v57, %v2382_v57 }
0x16a1   : > { %v2389_v59 = vsel %vm397_vm3, %v2385_v58, 0.0 }
0x16a2   : > { %v2386_v26 = vsel %vm397_vm3, %v2384_v18, 0.0 }
0x16a3   : > { %2387 = vadd.xlane.f32.xlu0 %v2386_v26 }
0x16a7   : > { %2390 = vadd.xlane.f32.xlu0 %v2389_v59 }
0x1730   : > { %v2388_v11 = vpop.xlane.xlu0 %2387 }
0x1731   : > { %v2392_v12 = vmul.f32 0.03125, %v2388_v11 }
0x1733   : > { %v2394_v13 = vadd.f32 1e-05, %v2392_v12 }
0x1734   : > { %v2391_v14 = vpop.xlane.xlu0 %2390 }
0x1735   : > { %5500 = vrsqrt.f32 %v2394_v13  ;;  %v2393_v15 = vmul.f32 0.03125, %v2391_v14 }
0x1737   : > { %v2395_v16 = vadd.f32 1e-05, %v2393_v15 }
0x1739   : > { %5502 = vrsqrt.f32 %v2395_v16 }
0x173f   : > { %v5501_v17 = vpop.eup %5500 }
0x1740   : > { %v2398_v25 = vmul.f32 %v5501_v17, %v2382_v57 }
0x1742   : > { %v2405_v21 = vmul.f32 %v4668_v19, %v2398_v25 }
0x1743   : > { %v5503_v22 = vpop.eup %5502 }
0x1744   : > { %v6042_v23 = vadd.f32 %v4669_v20, %v2405_v21  ;;  %v2399_v24 = vmul.f32 %v5503_v22, %v2383_v56 }
0x1746   : > { %4670 = vmatmul.mubr.msk.f32.vlgmr.msra.gmra.mrb[22].mxu1 %vm397_vm3, %v6042_v23  ;;  %v2406_v27 = vmul.f32 %v4668_v19, %v2399_v24 }
0x1747   : > { %2498 = vmatprep.mubr.f32.mxu1 %v5575_v4 }
0x1748   : > { %v6047_v28 = vadd.f32 %v4669_v20, %v2406_v27 }
0x174a   : > { %4671 = vmatmul.mubr.msk.f32.gmra.mrb[24].mxu1 %vm397_vm3, %v6047_v28 }
0x1819   : > { %v2494_v29 = vpop.f32.mrb[22].mxu1 }
0x181a   : > { %2616 = vrot.lane.b32.xlu1 %v2494_v29, %s5576_s25  ;;  %v6052_v30 = vpop.f32.mrb[23].mxu1  ;;  %5033 = vmatprep.mubr.msk.f32.mxu0 %vm397_vm3, %v2494_v29 }
0x181d   : > { %v2500_v31 = vpop.f32.mrb[24].mxu1 }
0x181e   : > { %v6055_v32 = vpop.f32.mrb[25].mxu1  ;;  %v5400_v33 = vpack.i.bf16 %v2500_v31, %v2494_v29 }
0x181f   : > { %v5410_v35 = vpack.i.bf16 %v6055_v32, %v6052_v30  ;;  %v6061_v37 = vpack.c.bf16 %v6055_v32, %v6052_v30 }
0x1820   : > { %5401 = vrot.lane.b32.xlu0 %v5400_v33, %s5578_s27 }
0x1824   : > { %5406 = vrot.lane.b32.xlu0 %v5400_v33, %s5577_s26 }
0x1828   : > { %2618 = vrot.lane.b32.xlu0 %v2500_v31, %s5576_s25 }
0x188c   : > { %v2617_v34 = vpop.permute.xlu1 %2616 }
0x188d   : > { %5040 = vmatprep.mubr.msk.f32.mxu1 %vm397_vm3, %v2617_v34 }
0x1892   : > { %v5402_v36 = vpop.permute.xlu0 %5401 }
0x1893   : > { %v5404_v38 = vunpack.i.h.bf16 %v5402_v36  ;;  %v5403_v40 = vunpack.i.l.bf16 %v5402_v36 }
0x1895   : > { %v5291_v41 = vpack.c.bf16 %v5404_v38, %v5403_v40 }
0x1896   : > { %v5407_v42 = vpop.permute.xlu0 %5406 }
0x1897   : > { %v5409_v43 = vunpack.i.h.bf16 %v5407_v42  ;;  %v5408_v44 = vunpack.i.l.bf16 %v5407_v42  ;;  %5293 = vmatprep.subr.msk.bf16.mxu1 %vm5926_vm6, %v5291_v41 }
0x1898   : > { %5296 = vmatpush3.bf16.xpose.msk.msra.mxu1 %vm5926_vm6, %v5291_v41 }
0x1899   : > { %v5285_v45 = vpack.c.bf16 %v5409_v43, %v5408_v44 }
0x189a   : > { %v2619_v46 = vpop.permute.xlu0 %2618 }
0x189b   : > { %5287 = vmatprep.subr.msk.bf16.mxu0 %vm5926_vm6, %v5285_v45 }
0x189c   : > { %5290 = vmatpush3.bf16.xpose.msk.msra.mxu0 %vm5926_vm6, %v5285_v45 }
0x189f   : > { %5041 = vmatmul.mubr.msk.f32.vlgmr.msra.gmra.mrb[26].mxu1 %vm397_vm3, %v2619_v46 }
0x18a3   : > { %5034 = vmatmul.mubr.msk.f32.vlgmr.msra.gmra.mrb[24].mxu0 %vm397_vm3, %v2500_v31 }
0x1972   : > { %v5042_v47 = vpop.f32.mrb[26].mxu1 }
0x1973   : > { %v2698_v48 = vpop.f32.mrb[27].mxu1  ;;  %v2710_v39 = vsel %vm223_vm1, %v5042_v47, -inf }
0x1974   : > { %2711 = vmax.xlane.f32.xlu1 %v2710_v39  ;;  %v2707_v50 = vsel %vm223_vm1, %v2698_v48, -inf  ;;  %v2942_v39 = vld [vmem:[%s6429_s3 + $0xf8] sm:$0xff] }
0x1975   : > { %2708 = vmax.xlane.f32.xlu0 %v2707_v50 }
0x1976   : > { %v5035_v51 = vpop.f32.mrb[24].mxu0 }
0x1977   : > { %v2585_v52 = vpop.f32.mrb[25].mxu0  ;;  %v2597_v55 = vsel %vm223_vm1, %v5035_v51, -inf }
0x1978   : > { %v2594_v53 = vsel %vm223_vm1, %v2585_v52, -inf }
0x1979   : > { %2595 = vmax.xlane.f32.xlu0 %v2594_v53 }
0x197d   : > { %2598 = vmax.xlane.f32.xlu0 %v2597_v55 }
0x1a01   : > { %v2712_v56 = vpop.xlane.xlu1 %2711 }
0x1a02   : > { %v2714_v57 = vsub.f32 %v5042_v47, %v2712_v56  ;;  %v2709_v18 = vpop.xlane.xlu0 %2708 }
0x1a03   : > { %v2713_v26 = vsub.f32 %v2698_v48, %v2709_v18 }
0x1a04   : > { %v2717_v58 = vmul.f32 1.442695, %v2714_v57 }
0x1a05   : > { %v2715_v59 = vmul.f32 1.442695, %v2713_v26 }
0x1a06   : > { %v2596_v60 = vpop.xlane.xlu0 %2595 }
0x1a07   : > { %5504 = vpow2.f32 %v2715_v59  ;;  %v2600_v61 = vsub.f32 %v2585_v52, %v2596_v60  ;;  %v2944_v52 = vld [vmem:[%s6429_s3 + $0x108] sm:$0xff] }
0x1a08   : > { %5506 = vpow2.f32 %v2717_v58  ;;  %v4684_v60 = vld [vmem:[%s6429_s3 + $0x189] ss:$0 sm:$0xff] }
0x1a09   : > { %v2602_v62 = vmul.f32 1.442695, %v2600_v61 }
0x1a0a   : > { %v2599_v63 = vpop.xlane.xlu0 %2598 }
0x1a0b   : > { %5508 = vpow2.f32 %v2602_v62  ;;  %v2601_v0 = vsub.f32 %v5035_v51, %v2599_v63  ;;  %v2943_v51 = vld [vmem:[%s6429_s3 + $0x100] sm:$0xff]  ;;  %v4685_v62 = vld [vmem:[%s6429_s3 + $0x18a] ss:$0 sm:$0xff] }
0x1a0c   : > { %v5309_v53 = vpack.c.bf16 %v2944_v52, %v2943_v51 }
0x1a0d   : > { %v2604_v1 = vmul.f32 1.442695, %v2601_v0 }
0x1a0f   : > { %5510 = vpow2.f32 %v2604_v1 }
0x1a11   : > { %v5505_v3 = vpop.eup %5504 }
0x1a12   : > { %v2719_v5 = vsel %vm223_vm1, %v5505_v3, 0.0  ;;  %v5507_v6 = vpop.eup %5506 }
0x1a13   : > { %2720 = vadd.xlane.f32.xlu0 %v2719_v5  ;;  %v2722_v8 = vsel %vm223_vm1, %v5507_v6, 0.0 }
0x1a15   : > { %v5509_v7 = vpop.eup %5508 }
0x1a16   : > { %v2606_v10 = vsel %vm223_vm1, %v5509_v7, 0.0 }
0x1a17   : > { %2723 = vadd.xlane.f32.xlu0 %v2722_v8  ;;  %2607 = vadd.xlane.f32.xlu1 %v2606_v10  ;;  %v5564_v8 = vld [vmem:[%s5654_s18 + $0x8] sm:$0xff] }
0x1a18   : > { %v3236_v10 = vrot.slane %v5564_v8, 4 }
0x1a19   : > { %v5511_v11 = vpop.eup %5510 }
0x1a1a   : > { %v2609_v12 = vsel %vm223_vm1, %v5511_v11, 0.0 }
0x1a1b   : > { %2610 = vadd.xlane.f32.xlu0 %v2609_v12  ;;  %v3044_v12 = vld [vmem:[%s6429_s3 + $0x118] sm:$0xff] }
0x1a28   : > { %5411 = vrot.lane.b32.xlu1 %v5410_v35, %s5576_s25 }
0x1aa0   : > { %v2721_v13 = vpop.xlane.xlu0 %2720 }
0x1aa1   : > { %5512 = vrcp.f32 %v2721_v13 }
0x1aa4   : > { %v2608_v14 = vpop.xlane.xlu1 %2607  ;;  %v2724_v15 = vpop.xlane.xlu0 %2723 }
0x1aa5   : > { %5514 = vrcp.f32 %v2608_v14  ;;  %v3045_v14 = vld [vmem:[%s6429_s3 + $0x120] sm:$0xff] }
0x1aa6   : > { %5516 = vrcp.f32 %v2724_v15  ;;  %v3046_v15 = vld [vmem:[%s6429_s3 + $0x128] sm:$0xff] }
0x1aa8   : > { %v5412_v16 = vpop.permute.xlu1 %5411  ;;  %v2611_v25 = vpop.xlane.xlu0 %2610 }
0x1aa9   : > { %v5414_v17 = vunpack.i.h.bf16 %v5412_v16  ;;  %v5413_v19 = vunpack.i.l.bf16 %v5412_v16  ;;  %5518 = vrcp.f32 %v2611_v25  ;;  %v5317_v16 = vpack.c.bf16 %v3046_v15, %v3045_v14 }
0x1aab   : > { %v5513_v20 = vpop.eup %5512  ;;  %v5297_v21 = vpack.c.bf16 %v5414_v17, %v5413_v19  ;;  %v3310_v17 = vld [vmem:[%s6428_s2 + $0x108] sm:$0xff]  ;;  %v3312_v19 = vld [vmem:[%s6428_s2 + $0x118] sm:$0xff] }
0x1aac   : > { %v2726_v22 = vmul.f32 %v5513_v20, %v5505_v3  ;;  %v5321_v25 = vpack.c.bf16 %v3312_v19, %v3310_v17  ;;  %v4686_v20 = vld [vmem:[%s6429_s3 + $0x187] ss:$0 sm:$0xff] }
0x1aad   : > { %5298 = vmatprep.subr.bf16.mxu0 %v5297_v21 }
0x1aae   : > { %5300 = vmatpush3.bf16.msra.mxu0 %v5297_v21  ;;  %5047 = vmatprep.mubr.msk.f32.mxu0 %vm223_vm1, %v2726_v22 }
0x1aaf   : > { %v5515_v24 = vpop.eup %5514  ;;  %5302 = vmatprep.subr.bf16.mxu0 %v6061_v37 }
0x1ab0   : > { %v5517_v27 = vpop.eup %5516  ;;  %v2613_v29 = vmul.f32 %v5515_v24, %v5509_v7  ;;  %v3230_v7 = vld [vmem:[%s6429_s3 + $0x18] sm:$0xff] }
0x1ab1   : > { %v2728_v30 = vmul.f32 %v5517_v27, %v5507_v6 }
0x1ab3   : > { %5048 = vmatmul.mubr.msk.f32.vlgmr.msra.gmra.mrb[26].mxu0 %vm223_vm1, %v2728_v30  ;;  %v5519_v31 = vpop.eup %5518 }
0x1ab4   : > { %5304 = vmatpush3.bf16.msra.mxu0 %v6061_v37  ;;  %5054 = vmatprep.mubr.msk.f32.mxu0 %vm223_vm1, %v2613_v29  ;;  %v2615_v32 = vmul.f32 %v5519_v31, %v5511_v11  ;;  %v3043_v11 = vld [vmem:[%s6429_s3 + $0x110] sm:$0xff] }
0x1ab5   : > { %v5313_v13 = vpack.c.bf16 %v3044_v12, %v3043_v11 }
0x1ab7   : > { %5314 = vmatprep.subr.bf16.mxu0 %v5313_v13 }
0x1abb   : > { %5055 = vmatmul.mubr.msk.f32.vlgmr.msra.gmra.mrb[26].mxu0 %vm223_vm1, %v2615_v32  ;;  %vm4036_vm1 = vcmask 191488  }
0x1abc   : > { %5316 = vmatpush3.bf16.msra.mxu0 %v5313_v13 }
0x1abd   : > { %5318 = vmatprep.subr.bf16.mxu0 %v5317_v16 }
0x1ac0   : > { %5320 = vmatpush3.bf16.msra.mxu0 %v5317_v16 }
0x1ac1   : > { %5322 = vmatprep.subr.bf16.mxu0 %v5321_v25 }
0x1b8e   : > { %v5056_v33 = vpop.f32.mrb[26].mxu0 }
0x1b8f   : > { %v2890_v35 = vpop.f32.mrb[27].mxu0  ;;  %v2900_v36 = vadd.f32 %v5056_v33, %v6047_v28  ;;  %v2941_v28 = vld [vmem:[%s6429_s3 + $0xf0] sm:$0xff] }
0x1b90   : > { %v2899_v34 = vadd.f32 %v2890_v35, %v6042_v23  ;;  %v5305_v50 = vpack.c.bf16 %v2942_v39, %v2941_v28  ;;  %v4698_v28 = vld [vmem:[%s6429_s3 + $0x172] ss:$0 sm:$0xff] }
0x1b91   : > { %v2904_v40 = vsel %vm397_vm3, %v2900_v36, 0.0 }
0x1b92   : > { %v2901_v38 = vsel %vm397_vm3, %v2899_v34, 0.0  ;;  %5306 = vmatprep.subr.bf16.mxu1 %v5305_v50 }
0x1b93   : > { %2902 = vadd.xlane.f32.xlu0 %v2901_v38  ;;  %5308 = vmatpush3.bf16.msra.mxu1 %v5305_v50  ;;  %v3311_v38 = vld [vmem:[%s6428_s2 + $0x110] sm:$0xff] }
0x1b94   : > { %5310 = vmatprep.subr.bf16.mxu1 %v5309_v53 }
0x1b97   : > { %2905 = vadd.xlane.f32.xlu0 %v2904_v40  ;;  %5312 = vmatpush3.bf16.msra.mxu1 %v5309_v53 }
0x1b98   : > { %5079 = vmatprep.subr.mxu1 %v5575_v4 }
0x1c20   : > { %v2903_v41 = vpop.xlane.xlu0 %2902 }
0x1c21   : > { %v2907_v37 = vmul.f32 0.03125, %v2903_v41 }
0x1c23   : > { %v2909_v42 = vsub.f32 %v2899_v34, %v2907_v37  ;;  %v3314_v37 = vld [vmem:[%s6428_s2 + $0x128] sm:$0xff] }
0x1c24   : > { %v2906_v43 = vpop.xlane.xlu0 %2905 }
0x1c25   : > { %v2908_v44 = vmul.f32 0.03125, %v2906_v43  ;;  %v2911_v45 = vmul.f32 %v2909_v42, %v2909_v42 }
0x1c27   : > { %v2910_v46 = vsub.f32 %v2900_v36, %v2908_v44  ;;  %v2913_v47 = vsel %vm397_vm3, %v2911_v45, 0.0  ;;  %v3309_v36 = vld [vmem:[%s6428_s2 + $0x100] sm:$0xff] }
0x1c28   : > { %2914 = vadd.xlane.f32.xlu0 %v2913_v47  ;;  %v5323_v44 = vpack.c.bf16 %v3311_v38, %v3309_v36  ;;  %v3313_v47 = vld [vmem:[%s6428_s2 + $0x120] sm:$0xff] }
0x1c29   : > { %v2912_v48 = vmul.f32 %v2910_v46, %v2910_v46 }
0x1c2b   : > { %v2916_v23 = vsel %vm397_vm3, %v2912_v48, 0.0  ;;  %v3315_v48 = vld [vmem:[%s6428_s2 + $0x130] sm:$0xff] }
0x1c2c   : > { %2917 = vadd.xlane.f32.xlu0 %v2916_v23  ;;  %v5327_v39 = vpack.c.bf16 %v3315_v48, %v3313_v47 }
0x1cb5   : > { %v2915_v55 = vpop.xlane.xlu0 %2914 }
0x1cb6   : > { %v2919_v56 = vmul.f32 0.03125, %v2915_v55 }
0x1cb8   : > { %v2921_v57 = vadd.f32 1e-05, %v2919_v56 }
0x1cb9   : > { %v2918_v18 = vpop.xlane.xlu0 %2917 }
0x1cba   : > { %5520 = vrsqrt.f32 %v2921_v57  ;;  %v2920_v26 = vmul.f32 0.03125, %v2918_v18 }
0x1cbc   : > { %v2922_v58 = vadd.f32 1e-05, %v2920_v26  ;;  %v4640_v26 = vld [vmem:[%s6429_s3 + $0x17c] ss:$0 sm:$0xff] }
0x1cbe   : > { %5522 = vrsqrt.f32 %v2922_v58 }
0x1cc4   : > { %v5521_v59 = vpop.eup %5520 }
0x1cc5   : > { %v2925_v61 = vmul.f32 %v5521_v59, %v2909_v42  ;;  %v3316_v42 = vld [vmem:[%s6428_s2 + $0x138] sm:$0xff]  ;;  %v1624_v59 = vadd.f32 %v4640_v26, %v5941_v54 }
0x1cc7   : > { %v2932_v63 = vmul.f32 %v4684_v60, %v2925_v61 }
0x1cc8   : > { %v5523_v0 = vpop.eup %5522 }
0x1cc9   : > { %v2926_v1 = vmul.f32 %v5523_v0, %v2910_v46  ;;  %v6117_v3 = vadd.f32 %v4685_v62, %v2932_v63  ;;  %v5325_v46 = vpack.c.bf16 %v3316_v42, %v3314_v37 }
0x1ccb   : > { %v2933_v5 = vmul.f32 %v4684_v60, %v2926_v1  ;;  %5065 = vmatprep.mubr.msk.f32.mxu1 %vm397_vm3, %v6117_v3 }
0x1ccd   : > { %v6121_v6 = vadd.f32 %v4685_v62, %v2933_v5  ;;  %v4691_v62 = vld [vmem:[%s6429_s3 + $0x188] ss:$0 sm:$0xff] }
0x1ccf   : > { %5066 = vmatmul.mubr.msk.f32.vlgmr.msra.gmra.mrb[28].mxu1 %vm397_vm3, %v6121_v6 }
0x1cd0   : > { %5080 = vmatpush3.msra.mxu1 %v3230_v7  ;;  %5081 = vmatprep.mubr.msk.f32.mxu1 %vm5574_vm0, %v5575_v4  ;;  %v1627_v7 = vadd.f32 %v1624_v59, %v5861_v9 }
0x1cd1   : > { %5084 = vmatprep.subr.mxu1 %v5575_v4 }
0x1cd3   : > { %5082 = vmatmul.mubr.msk.f32.vlgmr.msra.gmra.mrb[30].mxu1 %vm303_vm2, %v3236_v10  ;;  %v1628_v10 = vsel %vm397_vm3, %v1627_v7, 0.0  ;;  %vm4154_vm2 = vcmask 195584  }
0x1cd4   : > { %5086 = vmatprep.mubr.msk.f32.mxu1 %vm5574_vm0, %v5575_v4 }
0x1da2   : > { %v5067_v21 = vpop.f32.mrb[28].mxu1 }
0x1da3   : > { %v3028_v22 = vadd.f32 %v5067_v21, %v4686_v20  ;;  %v3022_v24 = vpop.f32.mrb[29].mxu1 }
0x1da4   : > { %v3023_v27 = vadd.f32 %v4686_v20, %v3022_v24 }
0x1da5   : > { %v3034_v29 = vmin.f32 %v3028_v22, 0.0  ;;  %vm3032_vm10 = vcmp.gt.f32.partialorder %v3028_v22, 0.0 }
0x1da6   : > { %v3033_v30 = vmin.f32 %v3023_v27, 0.0  ;;  %v3305_v31 = vpop.f32.mrb[30].mxu1  ;;  %vm3031_vm9 = vcmp.gt.f32.partialorder %v3023_v27, 0.0 }
0x1da7   : > { %v3037_v32 = vmul.f32 1.442695, %v3034_v29  ;;  %v5083_v33 = vpop.f32.mrb[31].mxu1  ;;  %v6180_v50 = vadd.f32 %v4698_v28, %v3305_v31  ;;  %v4642_v28 = vld [vmem:[%s6429_s3 + $0x17f] ss:$0 sm:$0xff] }
0x1da8   : > { %v3035_v35 = vmul.f32 1.442695, %v3033_v30 }
0x1da9   : > { %5524 = vpow2.f32 %v3037_v32 }
0x1daa   : > { %5526 = vpow2.f32 %v3035_v35 }
0x1db3   : > { %v5525_v34 = vpop.eup %5524 }
0x1db4   : > { %v5527_v40 = vpop.eup %5526  ;;  %v4690_v41 = vadd.f32 -1.0, %v5525_v34 }
0x1db5   : > { %v4689_v43 = vadd.f32 -1.0, %v5527_v40 }
0x1db6   : > { %v3042_v23 = vsel %vm3032_vm10, %v3028_v22, %v4690_v41 }
0x1db7   : > { %v3041_v45 = vsel %vm3031_vm9, %v3023_v27, %v4689_v43 }
0x1db8   : > { %5076 = vmatprep.mubr.msk.f32.mxu0 %vm397_vm3, %v3041_v45 }
0x1db9   : > { %5077 = vmatmul.mubr.msk.f32.vlgmr.msra.gmra.mrb[28].mxu0 %vm397_vm3, %v3042_v23 }
0x1dba   : > { %5324 = vmatpush1.bf16.msra.mxu0 %v5323_v44  ;;  %3384 = vmatprep.mubr.f32.mxu0 %v5575_v4 }
0x1dbb   : > { %5326 = vmatprep.subr.bf16.mxu0 %v5325_v46 }
0x1dbe   : > { %5328 = vmatpush1.bf16.msra.mxu0 %v5327_v39 }
0x1dbf   : > { %5094 = vmatprep.subr.mxu0 %v5575_v4 }
0x1dc1   : > { %4700 = vmatmul.mubr.msk.f32.vlgmr.msra.gmra.mrb[30].mxu0 %vm397_vm3, %v6180_v50 }
0x1dc2   : > { %5096 = vmatprep.mubr.msk.f32.mxu0 %vm5574_vm0, %v5575_v4 }
0x1e8c   : > { %v5078_v51 = vpop.f32.mrb[28].mxu0 }
0x1e8d   : > { %v3124_v52 = vpop.f32.mrb[29].mxu0  ;;  %v3130_v8 = vadd.f32 %v5078_v51, %v4691_v62 }
0x1e8e   : > { %v3125_v0 = vadd.f32 %v4691_v62, %v3124_v52 }
0x1e8f   : > { %v3134_v12 = vadd.f32 %v3130_v8, %v6121_v6 }
0x1e90   : > { %v3133_v54 = vadd.f32 %v3125_v0, %v6117_v3 }
0x1e91   : > { %v3138_v13 = vsel %vm397_vm3, %v3134_v12, 0.0 }
0x1e92   : > { %v3135_v11 = vsel %vm397_vm3, %v3133_v54, 0.0 }
0x1e94   : > { %v3386_v53 = vpop.f32.mrb[30].mxu0 }
0x1e95   : > { %3482 = vrot.lane.b32.xlu0 %v3386_v53, %s5578_s27  ;;  %3392 = vrot.lane.b32.xlu1 %v3386_v53, %s5577_s26  ;;  %v6189_v55 = vpop.f32.mrb[31].mxu0 }
0x1e99   : > { %3480 = vrot.lane.b32.xlu1 %v3386_v53, %s5576_s25 }
0x1f07   : > { %v3393_v56 = vpop.permute.xlu1 %3392  ;;  %v3483_v57 = vpop.permute.xlu0 %3482 }
0x1f08   : > { %5085 = vmatpush3.xpose.msk.msra.mxu1 %vm397_vm3, %v3393_v56 }
0x1f09   : > { %5089 = vmatprep.subr.mxu1 %v5575_v4 }
0x1f0b   : > { %5087 = vmatmul.mubr.msk.f32.vlgmr.msra.gmra.mrb[32].mxu1 %vm397_vm3, %v3386_v53  ;;  %v3481_v18 = vpop.permute.xlu1 %3480  ;;  %v4643_v53 = vld [vmem:[%s6429_s3 + $0x180] ss:$0 sm:$0xff] }
0x1f0c   : > { %5090 = vmatpush3.xpose.msk.msra.mxu1 %vm397_vm3, %v3483_v57  ;;  %5091 = vmatprep.mubr.msk.f32.mxu1 %vm5574_vm0, %v5575_v4 }
0x1f0d   : > { %5099 = vmatprep.subr.mxu1 %v5575_v4 }
0x1f0f   : > { %5092 = vmatmul.mubr.msk.f32.vlgmr.msra.gmra.mrb[34].mxu1 %vm397_vm3, %v3481_v18 }
0x1f10   : > { %5100 = vmatpush3.msk.msra.mxu1 %vm3576_vm11, %v6189_v55  ;;  %5101 = vmatprep.mubr.msk.f32.mxu1 %vm5574_vm0, %v5575_v4 }
0x1f11   : > { %5335 = vmatprep.subr.bf16.mxu1 %v5573_v2 }
0x1fde   : > { %v3464_v58 = vpop.f32.mrb[32].mxu1 }
0x1fdf   : > { %v5088_v60 = vpop.f32.mrb[33].mxu1  ;;  %v3469_v61 = vsel %vm3468_vm12, %v3464_v58, -inf }
0x1fe0   : > { %3470 = vmax.xlane.f32.xlu1 %v3469_v61 }
0x1fe2   : > { %v3554_v63 = vpop.f32.mrb[34].mxu1 }
0x1fe3   : > { %v5093_v1 = vpop.f32.mrb[35].mxu1  ;;  %v3558_v5 = vsel %vm3468_vm12, %v3554_v63, -inf }
0x1fe4   : > { %3559 = vmax.xlane.f32.xlu0 %v3558_v5  ;;  %v4694_v1 = vld [vmem:[%s6429_s3 + $0x18b] ss:$0 sm:$0xff] }
0x1fe8   : > { %1629 = vadd.xlane.f32.xlu0 %v1628_v10  ;;  %v4695_v10 = vld [vmem:[%s6429_s3 + $0x18c] ss:$0 sm:$0xff] }
0x1fec   : > { %3136 = vadd.xlane.f32.xlu0 %v3135_v11 }
0x1ff0   : > { %3139 = vadd.xlane.f32.xlu0 %v3138_v13 }
0x206d   : > { %v3471_v14 = vpop.xlane.xlu1 %3470 }
0x206e   : > { %v3472_v15 = vsub.f32 %v3464_v58, %v3471_v14 }
0x2070   : > { %v3473_v16 = vmul.f32 1.442695, %v3472_v15 }
0x2071   : > { %v3560_v17 = vpop.xlane.xlu0 %3559 }
0x2072   : > { %5528 = vpow2.f32 %v3473_v16  ;;  %v3561_v9 = vsub.f32 %v3554_v63, %v3560_v17 }
0x2074   : > { %v3562_v19 = vmul.f32 1.442695, %v3561_v9 }
0x2075   : > { %v1630_v25 = vpop.xlane.xlu0 %1629 }
0x2076   : > { %5530 = vpow2.f32 %v3562_v19  ;;  %v1631_v20 = vmul.f32 0.03125, %v1630_v25 }
0x2078   : > { %v1632_v3 = vsub.f32 %v1627_v7, %v1631_v20 }
0x2079   : > { %v3137_v21 = vpop.xlane.xlu0 %3136 }
0x207a   : > { %v1633_v22 = vmul.f32 %v1632_v3, %v1632_v3  ;;  %v3141_v36 = vmul.f32 0.03125, %v3137_v21 }
0x207c   : > { %v5529_v24 = vpop.eup %5528  ;;  %v1634_v6 = vsel %vm397_vm3, %v1633_v22, 0.0  ;;  %v3143_v38 = vsub.f32 %v3133_v54, %v3141_v36  ;;  %v3751_v36 = vld [vmem:[%s6428_s2 + $0x140] sm:$0xff] }
0x207d   : > { %1635 = vadd.xlane.f32.xlu0 %v1634_v6  ;;  %v3140_v27 = vpop.xlane.xlu0 %3139  ;;  %v3475_v29 = vsel %vm3468_vm12, %v5529_v24, 0.0 }
0x207e   : > { %v3142_v30 = vmul.f32 0.03125, %v3140_v27  ;;  %3476 = vadd.xlane.f32.xlu1 %v3475_v29  ;;  %v3145_v40 = vmul.f32 %v3143_v38, %v3143_v38 }
0x2080   : > { %v5531_v31 = vpop.eup %5530  ;;  %v3144_v32 = vsub.f32 %v3134_v12, %v3142_v30  ;;  %v3147_v41 = vsel %vm397_vm3, %v3145_v40, 0.0  ;;  %v3753_v40 = vld [vmem:[%s6428_s2 + $0x150] sm:$0xff] }
0x2081   : > { %v3564_v33 = vsel %vm3468_vm12, %v5531_v31, 0.0 }
0x2082   : > { %3565 = vadd.xlane.f32.xlu1 %v3564_v33  ;;  %v3146_v35 = vmul.f32 %v3144_v32, %v3144_v32 }
0x2084   : > { %v3150_v34 = vsel %vm397_vm3, %v3146_v35, 0.0 }
0x2085   : > { %3151 = vadd.xlane.f32.xlu0 %v3150_v34 }
0x2093   : > { %3570 = vrot.lane.b32.xlu1 %v6189_v55, %s5576_s25 }
0x20b7   : > { %3148 = vadd.xlane.f32.xlu1 %v3147_v41 }
0x210a   : > { %v1636_v37 = vpop.xlane.xlu0 %1635 }
0x210b   : > { %v1637_v42 = vmul.f32 0.03125, %v1636_v37  ;;  %v3477_v43 = vpop.xlane.xlu1 %3476  ;;  %v5330_v37 = vpack.c.bf16 %v3753_v40, %v3751_v36 }
0x210c   : > { %5532 = vrcp.f32 %v3477_v43  ;;  %v3756_v43 = vld [vmem:[%s6428_s2 + $0x168] sm:$0xff] }
0x210d   : > { %v1638_v44 = vadd.f32 1e-05, %v1637_v42  ;;  %v3755_v42 = vld [vmem:[%s6428_s2 + $0x160] sm:$0xff] }
0x210f   : > { %5534 = vrsqrt.f32 %v1638_v44  ;;  %v3566_v45 = vpop.xlane.xlu1 %3565  ;;  %v3757_v44 = vld [vmem:[%s6428_s2 + $0x170] sm:$0xff] }
0x2110   : > { %5536 = vrcp.f32 %v3566_v45  ;;  %v5425_v45 = vpack.i.bf16 %v3756_v43, %v3755_v42 }
0x2112   : > { %v3152_v18 = vpop.xlane.xlu0 %3151 }
0x2113   : > { %v3571_v46 = vpop.permute.xlu1 %3570  ;;  %v3154_v26 = vmul.f32 0.03125, %v3152_v18 }
0x2114   : > { %5095 = vmatpush3.msk.msra.mxu0 %vm3576_vm11, %v3571_v46  ;;  %v5333_v46 = vpack.c.bf16 %v3757_v44, %v3755_v42 }
0x2115   : > { %5329 = vmatprep.subr.bf16.mxu0 %v5573_v2  ;;  %v3156_v58 = vadd.f32 1e-05, %v3154_v26 }
0x2116   : > { %v5533_v47 = vpop.eup %5532 }
0x2117   : > { %v3479_v48 = vmul.f32 %v5533_v47, %v5529_v24  ;;  %5538 = vrsqrt.f32 %v3156_v58  ;;  %v3758_v47 = vld [vmem:[%s6428_s2 + $0x178] sm:$0xff] }
0x2119   : > { %v5535_v23 = vpop.eup %5534  ;;  %5102 = vmatmul.mubr.msk.f32.vlgmr.msra.gmra.mrb[36].mxu1 %vm3572_vm13, %v3479_v48  ;;  %v5430_v48 = vpack.i.bf16 %v3758_v47, %v3757_v44 }
0x211a   : > { %v5537_v39 = vpop.eup %5536  ;;  %v1640_v51 = vmul.f32 %v5535_v23, %v1632_v3  ;;  %5123 = vmatprep.mubr.msk.f32.mxu1 %vm5574_vm0, %v5575_v4 }
0x211b   : > { %v3568_v52 = vmul.f32 %v5537_v39, %v5531_v31 }
0x211c   : > { %v1646_v55 = vmul.f32 %v4642_v28, %v1640_v51 }
0x211d   : > { %5097 = vmatmul.mubr.msk.f32.vlgmr.msra.gmra.mrb[32].mxu0 %vm3572_vm13, %v3568_v52 }
0x211e   : > { %v1652_v56 = vadd.f32 %v4643_v53, %v1646_v55  ;;  %5112 = vmatprep.mubr.msk.f32.mxu0 %vm5574_vm0, %v5575_v4  ;;  %5331 = vmatpush3.bf16.msra.mxu0 %v5330_v37  ;;  %v3754_v53 = vld [vmem:[%s6428_s2 + $0x158] sm:$0xff] }
0x211f   : > { %5332 = vmatprep.subr.bf16.mxu0 %v5573_v2  ;;  %v5420_v55 = vpack.i.bf16 %v3754_v53, %v3753_v40 }
0x2120   : > { %v3175_v57 = vsel %vm397_vm3, %v1652_v56, 0.0 }
0x2121   : > { %3176 = vadd.xlane.f32.xlu0 %v3175_v57  ;;  %v5539_v62 = vpop.eup %5538 }
0x2122   : > { %v3160_v63 = vmul.f32 %v5539_v62, %v3144_v32  ;;  %5334 = vmatpush3.bf16.msra.mxu0 %v5333_v46 }
0x2123   : > { %5341 = vmatprep.subr.bf16.mxu0 %v5573_v2 }
0x2124   : > { %v3167_v8 = vmul.f32 %v4694_v1, %v3160_v63 }
0x2126   : > { %v3174_v12 = vadd.f32 %v4695_v10, %v3167_v8 }
0x2128   : > { %v3181_v13 = vsel %vm397_vm3, %v3174_v12, 0.0 }
0x2144   : > { %v3149_v59 = vpop.xlane.xlu1 %3148 }
0x2145   : > { %v3153_v60 = vmul.f32 0.03125, %v3149_v59 }
0x2147   : > { %v3155_v61 = vadd.f32 1e-05, %v3153_v60 }
0x2149   : > { %5540 = vrsqrt.f32 %v3155_v61 }
0x2153   : > { %v5541_v0 = vpop.eup %5540 }
0x2154   : > { %v3159_v5 = vmul.f32 %v5541_v0, %v3143_v38  ;;  %v3752_v38 = vld [vmem:[%s6428_s2 + $0x148] sm:$0xff] }
0x2155   : > { %v5415_v41 = vpack.i.bf16 %v3752_v38, %v3751_v36  ;;  %v4709_v38 = vld [vmem:[%s6429_s3 + $0x18f] ss:$0 sm:$0xff] }
0x2156   : > { %v3166_v7 = vmul.f32 %v4694_v1, %v3159_v5 }
0x2157   : > { %5416 = vrot.lane.b32.xlu1 %v5415_v41, %s5577_s26 }
0x2158   : > { %v3173_v54 = vadd.f32 %v4695_v10, %v3166_v7 }
0x215a   : > { %v3178_v11 = vsel %vm397_vm3, %v3173_v54, 0.0 }
0x215b   : > { %3179 = vadd.xlane.f32.xlu0 %v3178_v11  ;;  %5426 = vrot.lane.b32.xlu1 %v5425_v45, %s5577_s26 }
0x215f   : > { %3182 = vadd.xlane.f32.xlu0 %v3181_v13  ;;  %5431 = vrot.lane.b32.xlu1 %v5430_v48, %s5577_s26 }
0x21ae   : > { %v3177_v14 = vpop.xlane.xlu0 %3176 }
0x21af   : > { %v3184_v17 = vmul.f32 0.03125, %v3177_v14 }
0x21b1   : > { %v6248_v25 = vsub.f32 %v1652_v56, %v3184_v17 }
0x21b3   : > { %v3190_v30 = vmul.f32 %v6248_v25, %v6248_v25 }
0x21b5   : > { %v3193_v32 = vsel %vm397_vm3, %v3190_v30, 0.0 }
0x21c9   : > { %v5417_v26 = vpop.permute.xlu1 %5416 }
0x21ca   : > { %v5419_v8 = vunpack.i.h.bf16 %v5417_v26  ;;  %v5418_v10 = vunpack.i.l.bf16 %v5417_v26 }
0x21cd   : > { %v5427_v63 = vpop.permute.xlu1 %5426 }
0x21ce   : > { %v5428_v13 = vunpack.i.l.bf16 %v5427_v63 }
0x21d1   : > { %v5432_v7 = vpop.permute.xlu1 %5431 }
0x21d2   : > { %v5434_v14 = vunpack.i.h.bf16 %v5432_v7 }
0x21e8   : > { %v3180_v15 = vpop.xlane.xlu0 %3179 }
0x21e9   : > { %v3185_v20 = vmul.f32 0.03125, %v3180_v15 }
0x21eb   : > { %v6251_v6 = vsub.f32 %v3173_v54, %v3185_v20  ;;  %v3857_v20 = vsel %vm3856_vm15, %v5418_v10, %v5419_v8 }
0x21ec   : > { %v3720_v16 = vpop.f32.mrb[36].mxu1  ;;  %v3183_v22 = vpop.xlane.xlu0 %3182 }
0x21ed   : > { %v5103_v9 = vpop.f32.mrb[37].mxu1  ;;  %v3186_v27 = vmul.f32 0.03125, %v3183_v22  ;;  %v3191_v33 = vmul.f32 %v6251_v6, %v6251_v6 }
0x21ef   : > { %v6256_v31 = vsub.f32 %v3174_v12, %v3186_v27  ;;  %v3196_v35 = vsel %vm397_vm3, %v3191_v33, 0.0  ;;  %v5429_v12 = vunpack.i.h.bf16 %v5427_v63 }
0x21f0   : > { %v3645_v19 = vpop.f32.mrb[32].mxu0 }
0x21f1   : > { %v3721_v3 = vadd.f32 %v3720_v16, %v3645_v19  ;;  %v5098_v21 = vpop.f32.mrb[33].mxu0  ;;  %v5433_v16 = vunpack.i.l.bf16 %v5432_v7  ;;  %v3859_v27 = vsel %vm3856_vm15, %v5428_v13, %v5429_v12 }
0x21f3   : > { %v3724_v24 = vadd.f32 %v3721_v3, %v6180_v50  ;;  %v3192_v50 = vmul.f32 %v6256_v31, %v6256_v31 }
0x21f5   : > { %v3726_v29 = vsel %vm3725_vm14, %v3724_v24, 0.0  ;;  %v3199_v34 = vsel %vm397_vm3, %v3192_v50, 0.0 }
0x21f6   : > { %3727 = vadd.xlane.f32.xlu0 %v3726_v29  ;;  %v3860_v29 = vsel %vm3856_vm15, %v5433_v16, %v5434_v14 }
0x21f7   : > { %v5339_v33 = vpack.c.bf16 %v3860_v29, %v3859_v27 }
0x21fa   : > { %3194 = vadd.xlane.f32.xlu0 %v3193_v32 }
0x21fe   : > { %3197 = vadd.xlane.f32.xlu0 %v3196_v35  ;;  %v4697_v35 = vld [vmem:[%s6429_s3 + $0x174] ss:$0 sm:$0xff] }
0x2202   : > { %3200 = vadd.xlane.f32.xlu0 %v3199_v34 }
0x2283   : > { %v3728_v23 = vpop.xlane.xlu0 %3727 }
0x2284   : > { %v3729_v28 = vmul.f32 0.03125, %v3728_v23 }
0x2286   : > { %v3730_v39 = vsub.f32 %v3724_v24, %v3729_v28  ;;  %v4696_v24 = vld [vmem:[%s6429_s3 + $0x173] ss:$0 sm:$0xff] }
0x2287   : > { %v3195_v56 = vpop.xlane.xlu0 %3194 }
0x2288   : > { %v3731_v51 = vmul.f32 %v3730_v39, %v3730_v39  ;;  %v3202_v18 = vmul.f32 0.03125, %v3195_v56 }
0x228a   : > { %v3732_v52 = vsel %vm3725_vm14, %v3731_v51, 0.0  ;;  %v3205_v58 = vadd.f32 1e-05, %v3202_v18 }
0x228b   : > { %3733 = vadd.xlane.f32.xlu0 %v3732_v52  ;;  %v3198_v57 = vpop.xlane.xlu0 %3197 }
0x228c   : > { %v3203_v59 = vmul.f32 0.03125, %v3198_v57  ;;  %5542 = vrsqrt.f32 %v3205_v58 }
0x228e   : > { %v3206_v61 = vadd.f32 1e-05, %v3203_v59 }
0x228f   : > { %v3201_v60 = vpop.xlane.xlu0 %3200 }
0x2290   : > { %v3204_v62 = vmul.f32 0.03125, %v3201_v60  ;;  %5544 = vrsqrt.f32 %v3206_v61 }
0x2292   : > { %v3207_v0 = vadd.f32 1e-05, %v3204_v62 }
0x2294   : > { %5546 = vrsqrt.f32 %v3207_v0 }
0x2296   : > { %v5543_v11 = vpop.eup %5542 }
0x2297   : > { %v3211_v19 = vmul.f32 %v5543_v11, %v6248_v25 }
0x2299   : > { %v3219_v30 = vmul.f32 %v4696_v24, %v3211_v19 }
0x229a   : > { %v5545_v21 = vpop.eup %5544 }
0x229b   : > { %v3212_v25 = vmul.f32 %v5545_v21, %v6251_v6  ;;  %v3227_v34 = vadd.f32 %v4697_v35, %v3219_v30  ;;  %v4710_v6 = vld [vmem:[%s6429_s3 + $0x190] ss:$0 sm:$0xff] }
0x229d   : > { %v3220_v36 = vmul.f32 %v4696_v24, %v3212_v25 }
0x229e   : > { %v5547_v32 = vpop.eup %5546 }
0x229f   : > { %v3213_v40 = vmul.f32 %v5547_v32, %v6256_v31  ;;  %v3228_v42 = vadd.f32 %v4697_v35, %v3220_v36 }
0x22a1   : > { %5421 = vrot.lane.b32.xlu0 %v5420_v55, %s5577_s26  ;;  %v3221_v43 = vmul.f32 %v4696_v24, %v3213_v40 }
0x22a3   : > { %v3229_v31 = vadd.f32 %v4697_v35, %v3221_v43 }
0x2318   : > { %v3734_v1 = vpop.xlane.xlu0 %3733 }
0x2319   : > { %v3735_v5 = vmul.f32 0.03125, %v3734_v1 }
0x231b   : > { %v3736_v54 = vadd.f32 1e-05, %v3735_v5 }
0x231c   : > { %v5422_v15 = vpop.permute.xlu0 %5421 }
0x231d   : > { %5548 = vrsqrt.f32 %v3736_v54  ;;  %v5424_v17 = vunpack.i.h.bf16 %v5422_v15  ;;  %v5423_v9 = vunpack.i.l.bf16 %v5422_v15 }
0x231f   : > { %v3858_v3 = vsel %vm3856_vm15, %v5423_v9, %v5424_v17 }
0x2320   : > { %v5336_v22 = vpack.c.bf16 %v3858_v3, %v3857_v20 }
0x2322   : > { %5337 = vmatpush3.bf16.msra.mxu1 %v5336_v22 }
0x2323   : > { %5338 = vmatprep.subr.bf16.mxu1 %v5573_v2 }
0x2326   : > { %5340 = vmatpush3.bf16.msra.mxu1 %v5339_v33 }
0x2327   : > { %v5549_v50 = vpop.eup %5548  ;;  %5345 = vmatprep.subr.bf16.mxu1 %v5573_v2 }
0x2328   : > { %v3738_v41 = vmul.f32 %v5549_v50, %v3730_v39 }
0x2329   : > { %5124 = vmatmul.mubr.msk.f32.vlgmr.msra.gmra.mrb[38].mxu1 %vm397_vm3, %v3227_v34 }
0x232a   : > { %5126 = vmatprep.mubr.msk.f32.mxu1 %vm5574_vm0, %v5575_v4  ;;  %v3744_v37 = vmul.f32 %v4709_v38, %v3738_v41 }
0x232c   : > { %v6320_v44 = vadd.f32 %v4710_v6, %v3744_v37 }
0x232d   : > { %5127 = vmatmul.mubr.msk.f32.gmra.mrb[40].mxu1 %vm397_vm3, %v3228_v42 }
0x232e   : > { %5113 = vmatmul.mubr.msk.f32.vlgmr.msra.gmra.mrb[34].mxu0 %vm397_vm3, %v6320_v44  ;;  %5129 = vmatprep.mubr.msk.f32.mxu1 %vm5574_vm0, %v5575_v4 }
0x232f   : > { %5138 = vmatprep.mubr.msk.f32.mxu0 %vm5574_vm0, %v5575_v4 }
0x2331   : > { %5130 = vmatmul.mubr.msk.f32.gmra.mrb[42].mxu1 %vm397_vm3, %v3229_v31  ;;  %v4337_v31 = vld [vmem:[%s6429_s3 + $0x138] sm:$0xff] }
0x2332   : > { %5147 = vmatprep.mubr.msk.f32.mxu1 %vm5574_vm0, %v5575_v4 }
0x23fc   : > { %v3940_v45 = vpop.f32.mrb[38].mxu1 }
0x23fd   : > { %v5125_v46 = vpop.f32.mrb[39].mxu1 }
0x23fe   : > { %v4339_v46 = vld [vmem:[%s6429_s3 + $0x148] sm:$0xff] }
0x2400   : > { %v3945_v47 = vpop.f32.mrb[40].mxu1 }
0x2401   : > { %v5440_v48 = vpack.i.bf16 %v3945_v47, %v3940_v45  ;;  %v5342_v23 = vpack.c.bf16 %v3945_v47, %v3940_v45  ;;  %v3828_v28 = vpop.f32.mrb[34].mxu0  ;;  %v5128_v39 = vpop.f32.mrb[41].mxu1 }
0x2402   : > { %v5114_v51 = vpop.f32.mrb[35].mxu0 }
0x2403   : > { %5436 = vrot.lane.b32.xlu0 %v5440_v48, %s5576_s25  ;;  %5344 = vmatpush3.bf16.xpose.msk.msra.mxu0 %vm5926_vm6, %v5342_v23  ;;  %v4725_v51 = vld [vmem:[%s6429_s3 + $0x191] ss:$0 sm:$0xff] }
0x2404   : > { %v3950_v52 = vpop.f32.mrb[42].mxu1  ;;  %5136 = vmatprep.subr.mxu0 %v5575_v4 }
0x2405   : > { %4054 = vrot.lane.b32.xlu1 %v3950_v52, %s5576_s25  ;;  %v5131_v53 = vpop.f32.mrb[43].mxu1 }
0x2406   : > { %v4726_v53 = vld [vmem:[%s6429_s3 + $0x192] ss:$0 sm:$0xff] }
0x2407   : > { %4048 = vrot.lane.b32.xlu0 %v3828_v28, %s5576_s25 }
0x240b   : > { %5137 = vmatpush3.xpose.msk.msra.mxu0 %vm397_vm3, %v3950_v52 }
0x240c   : > { %5349 = vmatprep.subr.bf16.mxu0 %v5573_v2 }
0x240e   : > { %5139 = vmatmul.mubr.msk.f32.vlgmr.msra.gmra.mrb[36].mxu0 %vm397_vm3, %v3828_v28 }
0x240f   : > { %5156 = vmatprep.mubr.msk.f32.mxu0 %vm5574_vm0, %v5575_v4 }
0x2475   : > { %v5437_v55 = vpop.permute.xlu0 %5436 }
0x2476   : > { %v5439_v56 = vunpack.i.h.bf16 %v5437_v55  ;;  %v5438_v57 = vunpack.i.l.bf16 %v5437_v55 }
0x2477   : > { %v4055_v26 = vpop.permute.xlu1 %4054 }
0x2478   : > { %v5346_v18 = vpack.c.bf16 %v5439_v56, %v5438_v57  ;;  %v4424_v57 = vld [vmem:[%s6429_s3 + $0x150] sm:$0xff] }
0x2479   : > { %v4049_v58 = vpop.permute.xlu0 %4048 }
0x247a   : > { %5348 = vmatpush3.bf16.xpose.msk.msra.mxu1 %vm5926_vm6, %v5346_v18  ;;  %v4425_v18 = vld [vmem:[%s6429_s3 + $0x158] sm:$0xff] }
0x247b   : > { %5145 = vmatprep.subr.mxu1 %v5575_v4 }
0x2482   : > { %5146 = vmatpush3.xpose.msk.msra.mxu1 %vm397_vm3, %v4055_v26  ;;  %v5362_v26 = vpack.c.bf16 %v4425_v18, %v4424_v57 }
0x2483   : > { %5352 = vmatprep.subr.bf16.mxu1 %v5573_v2 }
0x2485   : > { %5148 = vmatmul.mubr.msk.f32.vlgmr.msra.gmra.mrb[44].mxu1 %vm397_vm3, %v4049_v58  ;;  %v4426_v58 = vld [vmem:[%s6429_s3 + $0x160] sm:$0xff] }
0x2486   : > { %5165 = vmatprep.mubr.msk.f32.mxu1 %vm5574_vm0, %v5575_v4 }
0x24e1   : > { %v4032_v59 = vpop.f32.mrb[36].mxu0 }
0x24e2   : > { %v5140_v60 = vpop.f32.mrb[37].mxu0  ;;  %v4037_v61 = vsel %vm4036_vm1, %v4032_v59, -inf }
0x24e3   : > { %4038 = vmax.xlane.f32.xlu1 %v4037_v61  ;;  %v4727_v61 = vld [vmem:[%s6429_s3 + $0x18d] ss:$0 sm:$0xff] }
0x24f4   : > { %5446 = vrot.lane.b32.xlu1 %v5440_v48, %s5577_s26 }
0x2558   : > { %v4130_v49 = vpop.f32.mrb[44].mxu1 }
0x2559   : > { %v5149_v62 = vpop.f32.mrb[45].mxu1  ;;  %v4134_v63 = vsel %vm4036_vm1, %v4130_v49, -inf }
0x255a   : > { %4135 = vmax.xlane.f32.xlu0 %v4134_v63 }
0x2570   : > { %v4039_v0 = vpop.xlane.xlu1 %4038  ;;  %5441 = vrot.lane.b32.xlu0 %v5440_v48, %s5578_s27 }
0x2571   : > { %v4040_v10 = vsub.f32 %v4032_v59, %v4039_v0  ;;  %v4427_v59 = vld [vmem:[%s6429_s3 + $0x168] sm:$0xff] }
0x2572   : > { %v5365_v60 = vpack.c.bf16 %v4427_v59, %v4426_v58 }
0x2573   : > { %v4041_v54 = vmul.f32 1.442695, %v4040_v10 }
0x2574   : > { %v5447_v1 = vpop.permute.xlu1 %5446 }
0x2575   : > { %v5449_v5 = vunpack.i.h.bf16 %v5447_v1  ;;  %v5448_v7 = vunpack.i.l.bf16 %v5447_v1  ;;  %5550 = vpow2.f32 %v4041_v54 }
0x2577   : > { %v5353_v8 = vpack.c.bf16 %v5449_v5, %v5448_v7 }
0x2579   : > { %5354 = vmatpush3.bf16.msra.mxu1 %v5353_v8  ;;  %v4730_v8 = vld [vmem:[%s6429_s3 + $0x18e] ss:$0 sm:$0xff] }
0x257a   : > { %5163 = vmatprep.subr.mxu1 %v5575_v4 }
0x257f   : > { %v5551_v11 = vpop.eup %5550 }
0x2580   : > { %v4043_v12 = vsel %vm4036_vm1, %v5551_v11, 0.0 }
0x258f   : > { %4044 = vadd.xlane.f32.xlu0 %v4043_v12 }
0x25a5   : > { %4232 = vrot.lane.b32.xlu0 %v3950_v52, %s5577_s26 }
0x25e7   : > { %v4136_v13 = vpop.xlane.xlu0 %4135 }
0x25e8   : > { %v4137_v14 = vsub.f32 %v4130_v49, %v4136_v13 }
0x25ea   : > { %v4138_v15 = vmul.f32 1.442695, %v4137_v14 }
0x25eb   : > { %v5442_v16 = vpop.permute.xlu0 %5441 }
0x25ec   : > { %5552 = vpow2.f32 %v4138_v15  ;;  %v5444_v17 = vunpack.i.h.bf16 %v5442_v16  ;;  %v5443_v9 = vunpack.i.l.bf16 %v5442_v16 }
0x25ee   : > { %v5350_v19 = vpack.c.bf16 %v5444_v17, %v5443_v9 }
0x25f0   : > { %5351 = vmatpush3.bf16.msra.mxu0 %v5350_v19 }
0x25f1   : > { %5154 = vmatprep.subr.mxu0 %v5575_v4 }
0x25f6   : > { %v5553_v20 = vpop.eup %5552 }
0x25f7   : > { %v4140_v3 = vsel %vm4036_vm1, %v5553_v20, 0.0 }
0x25f8   : > { %4141 = vadd.xlane.f32.xlu1 %v4140_v3 }
0x2609   : > { %4149 = vrot.lane.b32.xlu1 %v3950_v52, %s5578_s27  ;;  %s4606_s27 = sshll.u32 %s6434_s16, 2 }
0x260a   : > { %s212_s12 = scalar_lea.vmem %s6430_s4, %s4606_s27 }
0x261c   : > { %v4045_v21 = vpop.xlane.xlu0 %4044 }
0x261d   : > { %5554 = vrcp.f32 %v4045_v21 }
0x2620   : > { %v4233_v22 = vpop.permute.xlu0 %4232 }
0x2621   : > { %5164 = vmatpush3.msra.mxu1 %v4233_v22  ;;  %v4732_v22 = vld [vmem:[%s6429_s3 + $0x193] ss:$0 sm:$0xff] }
0x2622   : > { %5361 = vmatprep.subr.bf16.mxu1 %v5573_v2 }
0x2627   : > { %v5555_v24 = vpop.eup %5554 }
0x2628   : > { %v4047_v27 = vmul.f32 %v5555_v24, %v5551_v11 }
0x262a   : > { %5166 = vmatmul.mubr.msk.f32.vlgmr.msra.gmra.mrb[46].mxu1 %vm4154_vm2, %v4047_v27  ;;  %v4733_v27 = vld [vmem:[%s6429_s3 + $0x194] ss:$0 sm:$0xff] }
0x262b   : > { %5187 = vmatprep.mubr.msk.f32.mxu1 %vm5574_vm0, %v5575_v4  ;;  %5363 = vmatpush3.bf16.msra.mxu1 %v5362_v26 }
0x262c   : > { %5364 = vmatprep.subr.bf16.mxu1 %v5573_v2 }
0x262f   : > { %5366 = vmatpush3.bf16.msra.mxu1 %v5365_v60 }
0x2685   : > { %v4142_v29 = vpop.xlane.xlu1 %4141 }
0x2686   : > { %5556 = vrcp.f32 %v4142_v29 }
0x2689   : > { %v4150_v30 = vpop.permute.xlu1 %4149 }
0x268a   : > { %5155 = vmatpush3.msra.mxu0 %v4150_v30 }
0x268b   : > { %5355 = vmatprep.subr.bf16.mxu0 %v5573_v2 }
0x2690   : > { %v5557_v25 = vpop.eup %5556 }
0x2691   : > { %v4144_v32 = vmul.f32 %v5557_v25, %v5553_v20 }
0x2693   : > { %5157 = vmatmul.mubr.msk.f32.vlgmr.msra.gmra.mrb[38].mxu0 %vm4154_vm2, %v4144_v32 }
0x2694   : > { %5176 = vmatprep.mubr.msk.f32.mxu0 %vm5574_vm0, %v5575_v4  ;;  %v4336_v4 = vld [vmem:[%s6429_s3 + $0x130] sm:$0xff] }
0x2695   : > { %v5356_v45 = vpack.c.bf16 %v4337_v31, %v4336_v4 }
0x2697   : > { %5357 = vmatpush3.bf16.msra.mxu0 %v5356_v45 }
0x2698   : > { %5358 = vmatprep.subr.bf16.mxu0 %v5573_v2 }
0x26fd   : > { %v4306_v33 = vpop.f32.mrb[46].mxu1 }
0x26fe   : > { %v5167_v35 = vpop.f32.mrb[47].mxu1 }
0x2766   : > { %v4224_v50 = vpop.f32.mrb[38].mxu0 }
0x2767   : > { %v4307_v34 = vadd.f32 %v4306_v33, %v4224_v50  ;;  %v5158_v36 = vpop.f32.mrb[39].mxu0 }
0x2769   : > { %v4310_v38 = vadd.f32 %v4307_v34, %v6320_v44  ;;  %v4338_v44 = vld [vmem:[%s6429_s3 + $0x140] sm:$0xff] }
0x276a   : > { %v5359_v47 = vpack.c.bf16 %v4339_v46, %v4338_v44 }
0x276b   : > { %v4311_v40 = vsel %vm3725_vm14, %v4310_v38, 0.0 }
0x276c   : > { %4312 = vadd.xlane.f32.xlu1 %v4311_v40  ;;  %5360 = vmatpush3.bf16.msra.mxu0 %v5359_v47 }
0x27f9   : > { %v4313_v41 = vpop.xlane.xlu1 %4312 }
0x27fa   : > { %v4314_v6 = vmul.f32 0.03125, %v4313_v41 }
0x27fc   : > { %v4315_v37 = vsub.f32 %v4310_v38, %v4314_v6 }
0x27fe   : > { %v4316_v42 = vmul.f32 %v4315_v37, %v4315_v37 }
0x2800   : > { %v4317_v43 = vsel %vm3725_vm14, %v4316_v42, 0.0 }
0x2801   : > { %4318 = vadd.xlane.f32.xlu0 %v4317_v43 }
0x288e   : > { %v4319_v48 = vpop.xlane.xlu0 %4318 }
0x288f   : > { %v4320_v23 = vmul.f32 0.03125, %v4319_v48 }
0x2891   : > { %v4321_v28 = vadd.f32 1e-05, %v4320_v23 }
0x2893   : > { %5558 = vrsqrt.f32 %v4321_v28 }
0x289d   : > { %v5559_v39 = vpop.eup %5558 }
0x289e   : > { %v4323_v52 = vmul.f32 %v5559_v39, %v4315_v37 }
0x28a0   : > { %v4329_v55 = vmul.f32 %v4725_v51, %v4323_v52 }
0x28a2   : > { %v4335_v56 = vadd.f32 %v4726_v53, %v4329_v55 }
0x28a4   : > { %5177 = vmatmul.mubr.msk.f32.vlgmr.msra.gmra.mrb[40].mxu0 %vm397_vm3, %v4335_v56 }
0x2977   : > { %v4414_v49 = vpop.f32.mrb[40].mxu0 }
0x2978   : > { %v4415_v62 = vadd.f32 %v4727_v61, %v4414_v49  ;;  %v5178_v63 = vpop.f32.mrb[41].mxu0 }
0x297a   : > { %v4419_v0 = vmin.f32 %v4415_v62, 0.0  ;;  %vm4418_vm0 = vcmp.gt.f32.partialorder %v4415_v62, 0.0 }
0x297c   : > { %v4420_v1 = vmul.f32 1.442695, %v4419_v0 }
0x297e   : > { %5560 = vpow2.f32 %v4420_v1 }
0x2988   : > { %v5561_v2 = vpop.eup %5560 }
0x2989   : > { %v4729_v5 = vadd.f32 -1.0, %v5561_v2 }
0x298b   : > { %v4423_v7 = vsel %vm4418_vm0, %v4415_v62, %v4729_v5 }
0x298c   : > { %5188 = vmatmul.mubr.msk.f32.vlgmr.msra.gmra.mrb[48].mxu1 %vm397_vm3, %v4423_v7 }
0x2a5f   : > { %v4502_v10 = vpop.f32.mrb[48].mxu1 }
0x2a60   : > { %v4503_v54 = vadd.f32 %v4730_v8, %v4502_v10  ;;  %v5189_v11 = vpop.f32.mrb[49].mxu1 }
0x2a62   : > { %v4506_v12 = vadd.f32 %v4503_v54, %v4335_v56 }
0x2a64   : > { %v4507_v13 = vsel %vm3725_vm14, %v4506_v12, 0.0 }
0x2a65   : > { %4508 = vadd.xlane.f32.xlu0 %v4507_v13 }
0x2af2   : > { %v4509_v14 = vpop.xlane.xlu0 %4508 }
0x2af3   : > { %v4510_v15 = vmul.f32 0.03125, %v4509_v14 }
0x2af5   : > { %v4511_v16 = vsub.f32 %v4506_v12, %v4510_v15 }
0x2af7   : > { %v4512_v17 = vmul.f32 %v4511_v16, %v4511_v16 }
0x2af9   : > { %v4513_v9 = vsel %vm3725_vm14, %v4512_v17, 0.0 }
0x2afa   : > { %4514 = vadd.xlane.f32.xlu1 %v4513_v9 }
0x2b87   : > { %v4515_v19 = vpop.xlane.xlu1 %4514 }
0x2b88   : > { %v4516_v20 = vmul.f32 0.03125, %v4515_v19 }
0x2b8a   : > { %v4517_v3 = vadd.f32 1e-05, %v4516_v20 }
0x2b8c   : > { %5562 = vrsqrt.f32 %v4517_v3 }
0x2b96   : > { %v5563_v21 = vpop.eup %5562 }
0x2b97   : > { %v4519_v24 = vmul.f32 %v5563_v21, %v4511_v16 }
0x2b99   : > { %v4525_v29 = vmul.f32 %v4732_v22, %v4519_v24 }
0x2b9b   : > { %v4531_v30 = vadd.f32 %v4733_v27, %v4525_v29 }
0x2b9d   : > { %4532 = vst.msk [vmem:[%s212_s12] sm:$0xf] %vm3725_vm14, %v4531_v30 }
0x2b9e PF: > { %s14_s15 = sadd.s32 1, %s5571_s15  }
0x2b9f   : > { %p11_p4 = scmp.ge.s32.totalorder %s14_s15, 4  }
0x2ba1   :  { %13 = sbr.rel (!%p11_p4) target bundleno = 1 (0x1), region = 69 }

</bundles_post_ra>
